<compile_context>
chip_gen: v7x
topology: tpu7x:2x2x1
jax: 0.10.0
libtpu: 0.0.40
codegen_flags: <defaults>
</compile_context>

<pallas_src>
import functools

import jax
import jax.numpy as jnp
from jax import lax
from jax.experimental import pallas as pl
from jax.experimental.pallas import tpu as pltpu


# ----------------------------------------------------------------------------
# Pallas kernel: fused (DoG depthwise conv ∘ 1x1 conv) + sigmoid + channel mul
# ----------------------------------------------------------------------------
def _simplenet_kernel(z_ref, w_ref, b_ref, out_ref, zp_ref, *, fs, pad, N, Cin, H, W):
    # z_ref:   (N*Cin, H*W)        unpadded flat images, row r = n*Cin + c (VMEM)
    # w_ref:   (N*Cin, 2*fs*fs)    folded per-sublane weights,
    #                              column = j*fs*fs + dy*fs + dx            (VMEM)
    # b_ref:   (2,)                1x1-conv bias                            (SMEM)
    # out_ref: (N, H*W)            xxx, flattened, lane-dense               (VMEM)
    # zp_ref:  (N*Cin, (H+2*pad)*W) scratch: H-padded flat images           (VMEM)
    HW = H * W
    R = N * Cin
    taps = fs * fs

    # ---- Build the H-padded flat images once (SAME-padding rows are zeros). ----
    zp_ref[...] = jnp.zeros_like(zp_ref)
    zp_ref[:, pl.ds(pad * W, HW)] = z_ref[...]

    # ---- Hoisted: one centered (dx == pad) slice per dy.  Output pixel p reads
    #      padded flat index p + dy*W + (dx - pad); dx shifts come from roll. ----
    vc = [zp_ref[:, pl.ds(dy * W, HW)] for dy in range(fs)]

    # Lane -> image-column map for the per-dx wrap masks (TPU iota must be >=2-D;
    # hoisted out of the tap loops since broadcast_in_dim is not CSE'd).
    lane = lax.broadcasted_iota(jnp.int32, (R, HW), 1)
    if (W & (W - 1)) == 0:
        col = lane & (W - 1)
    else:
        col = lane % W

    acc0 = jnp.zeros((R, HW), jnp.float32)
    acc1 = jnp.zeros((R, HW), jnp.float32)

    for dx in range(fs):                       # static unroll: fs = 9
        t0 = jnp.zeros((R, HW), jnp.float32)
        t1 = jnp.zeros((R, HW), jnp.float32)
        sh = (pad - dx) % HW                   # np.roll-style shift, non-negative
        for dy in range(fs):                   # static unroll: fs = 9
            # v[p] = vc[dy][p + dx - pad]; wrapped lanes land in masked columns.
            v = vc[dy] if dx == pad else pltpu.roll(vc[dy], shift=sh, axis=1)
            t = dy * fs + dx
            w0 = w_ref[:, pl.ds(t, 1)]         # (R, 1) per-sublane weights, j = 0
            w1 = w_ref[:, pl.ds(taps + t, 1)]  # (R, 1) per-sublane weights, j = 1
            t0 = t0 + w0 * v                   # lane-broadcast MAC on the VPU
            t1 = t1 + w1 * v
        # Mask columns where the lane shift crossed / wrapped an image row.
        if dx == pad:                          # all columns valid, no mask
            acc0 = acc0 + t0
            acc1 = acc1 + t1
        elif dx < pad:                         # left edge invalid
            valid = col >= (pad - dx)
            acc0 = acc0 + jnp.where(valid, t0, 0.0)
            acc1 = acc1 + jnp.where(valid, t1, 0.0)
        else:                                  # right edge invalid
            valid = col < (W + pad - dx)
            acc0 = acc0 + jnp.where(valid, t0, 0.0)
            acc1 = acc1 + jnp.where(valid, t1, 0.0)

    # ---- Per batch: reduce the Cin sublanes (XLU), bias + sigmoid (EUP),
    #      channel product, lane-dense store. ----
    for n in range(N):                         # static unroll: N = 2
        a0 = jnp.sum(acc0[n * Cin:(n + 1) * Cin], axis=0, keepdims=True)
        a1 = jnp.sum(acc1[n * Cin:(n + 1) * Cin], axis=0, keepdims=True)
        xx0 = jax.nn.sigmoid(a0 + b_ref[0])
        xx1 = jax.nn.sigmoid(a1 + b_ref[1])
        out_ref[pl.ds(n, 1), :] = (xx0 * xx1).astype(out_ref.dtype)


# ----------------------------------------------------------------------------
# Parameter construction (deterministic, no checkpoint)
# ----------------------------------------------------------------------------
def make_dog_filters(in_channels, k, fs, sigma1, sigma2):
    """DoG2DIsotropic filters: normalized Gaussian(sigma1) - Gaussian(sigma2);
    output channel o belongs to input channel o // k (depthwise, multiplier k)."""
    half = fs // 2
    coords = jnp.arange(fs, dtype=jnp.float32) - half
    yv, xv = jnp.meshgrid(coords, coords, indexing="ij")
    r2 = xv * xv + yv * yv                                     # (fs, fs)
    g1 = jnp.exp(-r2[None] / (2.0 * sigma1[:, None, None] ** 2))
    g1 = g1 / jnp.sum(g1, axis=(1, 2), keepdims=True)
    g2 = jnp.exp(-r2[None] / (2.0 * sigma2[:, None, None] ** 2))
    g2 = g2 / jnp.sum(g2, axis=(1, 2), keepdims=True)
    return (g1 - g2).astype(jnp.float32)                       # (Cin*k, fs, fs)


# ----------------------------------------------------------------------------
# Wrapper: weight fold + flat sublane-packed layout + pallas_call
# ----------------------------------------------------------------------------
def simple_network_forward(x, dog_w, w2, b2, *, filter_size, k):
    """x: (N, Cin, H, W) NCHW float32. Returns (xxx, None) with xxx (N,1,H,W)."""
    N, Cin, H, W = x.shape
    fs = filter_size
    pad = fs // 2
    HW = H * W
    R = N * Cin

    # Fold the 1x1 conv into the DoG filters (both linear):
    #   M[j, c, dy, dx] = sum_m w2[j, c*k + m] * dog[c*k + m, dy, dx]
    dog4 = dog_w.reshape(Cin, k, fs, fs)                       # (Cin, k, fs, fs)
    w2r = w2.reshape(2, Cin, k)                                # (2, Cin, k)
    merged = jnp.sum(w2r[:, :, :, None, None] * dog4[None], axis=2)  # (2,Cin,fs,fs)

    # Per-sublane weight columns: row r = n*Cin + c, column j*fs*fs + dy*fs + dx.
    w_rows = merged.transpose(1, 0, 2, 3).reshape(Cin, 2 * fs * fs)   # (Cin, 2*fs*fs)
    w_full = jnp.tile(w_rows, (N, 1)).astype(jnp.float32)             # (R, 2*fs*fs)

    # Flattened, UNPADDED input: one (batch, channel) image per sublane row.
    z = x.reshape(R, HW)                                       # contiguous -> free

    zp_len = (H + 2 * pad) * W
    kern = functools.partial(_simplenet_kernel, fs=fs, pad=pad, N=N, Cin=Cin, H=H, W=W)
    out = pl.pallas_call(
        kern,
        out_shape=jax.ShapeDtypeStruct((N, HW), jnp.float32),
        grid_spec=pltpu.PrefetchScalarGridSpec(
            num_scalar_prefetch=0,
            grid=(1,),                                         # whole problem, one TC
            in_specs=[
                pl.BlockSpec((R, HW), lambda i: (0, 0)),
                pl.BlockSpec((R, 2 * fs * fs), lambda i: (0, 0)),
                pl.BlockSpec(memory_space=pltpu.MemorySpace.SMEM),
            ],
            out_specs=pl.BlockSpec((N, HW), lambda i: (0, 0)),
            scratch_shapes=[pltpu.VMEM((R, zp_len), jnp.float32)],
        ),
        compiler_params=pltpu.CompilerParams(
            dimension_semantics=("arbitrary",)),
    )(z, w_full, b2.astype(jnp.float32))

    xxx = out.reshape(N, 1, H, W)   # free metadata reshape back to NCHW
    return xxx, None                # return_intermediate=False


# ----------------------------------------------------------------------------
# Pure-JAX reference (verification only; unfused path)
# ----------------------------------------------------------------------------
def _reference_forward(x, dog_w, w2, b2, *, filter_size, k):
    N, Cin, H, W = x.shape
    pad = filter_size // 2
    y = lax.conv_general_dilated(
        x, dog_w[:, None],                                     # (Cout,1,fs,fs)
        window_strides=(1, 1), padding=[(pad, pad), (pad, pad)],
        dimension_numbers=("NCHW", "OIHW", "NCHW"),
        feature_group_count=Cin, precision=lax.Precision.HIGHEST)
    w2m = w2.reshape(2, Cin * k)
    zz = jnp.sum(y[:, None] * w2m[None, :, :, None, None], axis=2)
    zz = zz + b2[None, :, None, None]
    xx = jax.nn.sigmoid(zz)
    return xx[:, 0:1] * xx[:, 1:2]


if __name__ == "__main__":
    # SimpleNetwork(in_channels=4, filter_size=9, k=4)
    N, Cin, H, W = 2, 4, 16, 16
    fs, k = 9, 4
    Cout = Cin * k

    key = jax.random.PRNGKey(0)
    kx, kw, kb = jax.random.split(key, 3)
    x = jax.random.normal(kx, (N, Cin, H, W), dtype=jnp.float32)

    # Deterministic parameter init (synthetic; no checkpoint load).
    sigma1 = 1.0 + 0.10 * jnp.arange(Cout, dtype=jnp.float32)
    sigma2 = 2.0 + 0.05 * jnp.arange(Cout, dtype=jnp.float32)
    dog_w = make_dog_filters(Cin, k, fs, sigma1, sigma2)        # (Cout, fs, fs)
    w2 = 0.5 * jax.random.normal(kw, (2, Cout, 1, 1), dtype=jnp.float32)
    b2 = 0.1 * jax.random.normal(kb, (2,), dtype=jnp.float32)

    xxx, inter = simple_network_forward(x, dog_w, w2, b2, filter_size=fs, k=k)
    xxx = jax.block_until_ready(xxx)
    assert xxx.shape == (N, 1, H, W)
    assert inter is None

    ref = _reference_forward(x, dog_w, w2, b2, filter_size=fs, k=k)
    if not jnp.allclose(xxx, ref, rtol=1e-4, atol=1e-5):
        raise AssertionError("Pallas kernel output mismatch vs JAX reference")

    print("KERNEL_OK")
</pallas_src>

<mosaic_0001>
module attributes {stable_mosaic.version = 11 : i64} {
  func.func @_simplenet_kernel(%arg0: i32, %arg1: memref<8x256xf32, #tpu.memory_space<vmem>>, %arg2: memref<8x162xf32, #tpu.memory_space<vmem>>, %arg3: memref<2xf32, #tpu.memory_space<smem>>, %arg4: memref<2x256xf32, #tpu.memory_space<vmem>>, %arg5: memref<8x384xf32, #tpu.memory_space<vmem>>) attributes {dimension_semantics = [#tpu.dimension_semantics<arbitrary>], iteration_bounds = array<i64: 1>, scalar_prefetch = 0 : i64, scratch_operands = 1 : i64, tpu.core_type = #tpu.core_type<tc>, window_params = [{pipeline_mode = #tpu.pipeline_mode<synchronous>, transform_indices = @transform_0, window_bounds = array<i64: 8, 256>}, {pipeline_mode = #tpu.pipeline_mode<synchronous>, transform_indices = @transform_1, window_bounds = array<i64: 8, 162>}, {transform_indices = @transform_2, window_bounds = array<i64: 2>}, {pipeline_mode = #tpu.pipeline_mode<synchronous>, transform_indices = @transform_3, window_bounds = array<i64: 2, 256>}]} {
    %cst = arith.constant 0.000000e+00 : f32
    %0 = vector.broadcast %cst : f32 to vector<8x384xf32>
    %c0 = arith.constant 0 : index
    %c0_0 = arith.constant 0 : index
    %1 = vector.load %arg5[%c0, %c0_0] : memref<8x384xf32, #tpu.memory_space<vmem>>, vector<8x384xf32>
    tpu.vector_store %arg5[%c0, %c0_0], %0 {strides = array<i32>} : memref<8x384xf32, #tpu.memory_space<vmem>>, vector<8x384xf32>,
    %c0_1 = arith.constant 0 : index
    %c0_2 = arith.constant 0 : index
    %2 = vector.load %arg1[%c0_1, %c0_2] : memref<8x256xf32, #tpu.memory_space<vmem>>, vector<8x256xf32>
    %c0_3 = arith.constant 0 : index
    %c64 = arith.constant 64 : index
    %3 = vector.load %arg5[%c0_3, %c64] : memref<8x384xf32, #tpu.memory_space<vmem>>, vector<8x256xf32>
    tpu.vector_store %arg5[%c0_3, %c64], %2 {strides = array<i32>} : memref<8x384xf32, #tpu.memory_space<vmem>>, vector<8x256xf32>,
    %c0_4 = arith.constant 0 : index
    %c0_5 = arith.constant 0 : index
    %4 = vector.load %arg5[%c0_4, %c0_5] : memref<8x384xf32, #tpu.memory_space<vmem>>, vector<8x256xf32>
    %c0_6 = arith.constant 0 : index
    %c16 = arith.constant 16 : index
    %5 = vector.load %arg5[%c0_6, %c16] : memref<8x384xf32, #tpu.memory_space<vmem>>, vector<8x256xf32>
    %c0_7 = arith.constant 0 : index
    %c32 = arith.constant 32 : index
    %6 = vector.load %arg5[%c0_7, %c32] : memref<8x384xf32, #tpu.memory_space<vmem>>, vector<8x256xf32>
    %c0_8 = arith.constant 0 : index
    %c48 = arith.constant 48 : index
    %7 = vector.load %arg5[%c0_8, %c48] : memref<8x384xf32, #tpu.memory_space<vmem>>, vector<8x256xf32>
    %c0_9 = arith.constant 0 : index
    %c64_10 = arith.constant 64 : index
    %8 = vector.load %arg5[%c0_9, %c64_10] : memref<8x384xf32, #tpu.memory_space<vmem>>, vector<8x256xf32>
    %c0_11 = arith.constant 0 : index
    %c80 = arith.constant 80 : index
    %9 = vector.load %arg5[%c0_11, %c80] : memref<8x384xf32, #tpu.memory_space<vmem>>, vector<8x256xf32>
    %c0_12 = arith.constant 0 : index
    %c96 = arith.constant 96 : index
    %10 = vector.load %arg5[%c0_12, %c96] : memref<8x384xf32, #tpu.memory_space<vmem>>, vector<8x256xf32>
    %c0_13 = arith.constant 0 : index
    %c112 = arith.constant 112 : index
    %11 = vector.load %arg5[%c0_13, %c112] : memref<8x384xf32, #tpu.memory_space<vmem>>, vector<8x256xf32>
    %c0_14 = arith.constant 0 : index
    %c128 = arith.constant 128 : index
    %12 = vector.load %arg5[%c0_14, %c128] : memref<8x384xf32, #tpu.memory_space<vmem>>, vector<8x256xf32>
    %13 = tpu.iota {dimensions = array<i32: 1>} : vector<8x256xi32>
    %c15_i32 = arith.constant 15 : i32
    %14 = vector.broadcast %c15_i32 : i32 to vector<8x256xi32>
    %15 = arith.andi %13, %14 : vector<8x256xi32>
    %cst_15 = arith.constant 0.000000e+00 : f32
    %16 = vector.broadcast %cst_15 : f32 to vector<8x256xf32>
    %cst_16 = arith.constant 0.000000e+00 : f32
    %17 = vector.broadcast %cst_16 : f32 to vector<8x256xf32>
    %cst_17 = arith.constant 0.000000e+00 : f32
    %18 = vector.broadcast %cst_17 : f32 to vector<8x256xf32>
    %cst_18 = arith.constant 0.000000e+00 : f32
    %19 = vector.broadcast %cst_18 : f32 to vector<8x256xf32>
    %c4_i32 = arith.constant 4 : i32
    %20 = tpu.dynamic_rotate %4 by %c4_i32 dim 1 : vector<8x256xf32>, i32 -> vector<8x256xf32>
    %c0_19 = arith.constant 0 : index
    %c0_20 = arith.constant 0 : index
    %21 = vector.load %arg2[%c0_19, %c0_20] : memref<8x162xf32, #tpu.memory_space<vmem>>, vector<8x1xf32>
    %c0_21 = arith.constant 0 : index
    %c81 = arith.constant 81 : index
    %22 = vector.load %arg2[%c0_21, %c81] : memref<8x162xf32, #tpu.memory_space<vmem>>, vector<8x1xf32>
    %23 = vector.broadcast %21 : vector<8x1xf32> to vector<8x256xf32>
    %24 = arith.mulf %23, %20 : vector<8x256xf32>
    %25 = arith.addf %18, %24 : vector<8x256xf32>
    %26 = vector.broadcast %22 : vector<8x1xf32> to vector<8x256xf32>
    %27 = arith.mulf %26, %20 : vector<8x256xf32>
    %28 = arith.addf %19, %27 : vector<8x256xf32>
    %c4_i32_22 = arith.constant 4 : i32
    %29 = tpu.dynamic_rotate %5 by %c4_i32_22 dim 1 : vector<8x256xf32>, i32 -> vector<8x256xf32>
    %c0_23 = arith.constant 0 : index
    %c9 = arith.constant 9 : index
    %30 = vector.load %arg2[%c0_23, %c9] : memref<8x162xf32, #tpu.memory_space<vmem>>, vector<8x1xf32>
    %c0_24 = arith.constant 0 : index
    %c90 = arith.constant 90 : index
    %31 = vector.load %arg2[%c0_24, %c90] : memref<8x162xf32, #tpu.memory_space<vmem>>, vector<8x1xf32>
    %32 = vector.broadcast %30 : vector<8x1xf32> to vector<8x256xf32>
    %33 = arith.mulf %32, %29 : vector<8x256xf32>
    %34 = arith.addf %25, %33 : vector<8x256xf32>
    %35 = vector.broadcast %31 : vector<8x1xf32> to vector<8x256xf32>
    %36 = arith.mulf %35, %29 : vector<8x256xf32>
    %37 = arith.addf %28, %36 : vector<8x256xf32>
    %c4_i32_25 = arith.constant 4 : i32
    %38 = tpu.dynamic_rotate %6 by %c4_i32_25 dim 1 : vector<8x256xf32>, i32 -> vector<8x256xf32>
    %c0_26 = arith.constant 0 : index
    %c18 = arith.constant 18 : index
    %39 = vector.load %arg2[%c0_26, %c18] : memref<8x162xf32, #tpu.memory_space<vmem>>, vector<8x1xf32>
    %c0_27 = arith.constant 0 : index
    %c99 = arith.constant 99 : index
    %40 = vector.load %arg2[%c0_27, %c99] : memref<8x162xf32, #tpu.memory_space<vmem>>, vector<8x1xf32>
    %41 = vector.broadcast %39 : vector<8x1xf32> to vector<8x256xf32>
    %42 = arith.mulf %41, %38 : vector<8x256xf32>
    %43 = arith.addf %34, %42 : vector<8x256xf32>
    %44 = vector.broadcast %40 : vector<8x1xf32> to vector<8x256xf32>
    %45 = arith.mulf %44, %38 : vector<8x256xf32>
    %46 = arith.addf %37, %45 : vector<8x256xf32>
    %c4_i32_28 = arith.constant 4 : i32
    %47 = tpu.dynamic_rotate %7 by %c4_i32_28 dim 1 : vector<8x256xf32>, i32 -> vector<8x256xf32>
    %c0_29 = arith.constant 0 : index
    %c27 = arith.constant 27 : index
    %48 = vector.load %arg2[%c0_29, %c27] : memref<8x162xf32, #tpu.memory_space<vmem>>, vector<8x1xf32>
    %c0_30 = arith.constant 0 : index
    %c108 = arith.constant 108 : index
    %49 = vector.load %arg2[%c0_30, %c108] : memref<8x162xf32, #tpu.memory_space<vmem>>, vector<8x1xf32>
    %50 = vector.broadcast %48 : vector<8x1xf32> to vector<8x256xf32>
    %51 = arith.mulf %50, %47 : vector<8x256xf32>
    %52 = arith.addf %43, %51 : vector<8x256xf32>
    %53 = vector.broadcast %49 : vector<8x1xf32> to vector<8x256xf32>
    %54 = arith.mulf %53, %47 : vector<8x256xf32>
    %55 = arith.addf %46, %54 : vector<8x256xf32>
    %c4_i32_31 = arith.constant 4 : i32
    %56 = tpu.dynamic_rotate %8 by %c4_i32_31 dim 1 : vector<8x256xf32>, i32 -> vector<8x256xf32>
    %c0_32 = arith.constant 0 : index
    %c36 = arith.constant 36 : index
    %57 = vector.load %arg2[%c0_32, %c36] : memref<8x162xf32, #tpu.memory_space<vmem>>, vector<8x1xf32>
    %c0_33 = arith.constant 0 : index
    %c117 = arith.constant 117 : index
    %58 = vector.load %arg2[%c0_33, %c117] : memref<8x162xf32, #tpu.memory_space<vmem>>, vector<8x1xf32>
    %59 = vector.broadcast %57 : vector<8x1xf32> to vector<8x256xf32>
    %60 = arith.mulf %59, %56 : vector<8x256xf32>
    %61 = arith.addf %52, %60 : vector<8x256xf32>
    %62 = vector.broadcast %58 : vector<8x1xf32> to vector<8x256xf32>
    %63 = arith.mulf %62, %56 : vector<8x256xf32>
    %64 = arith.addf %55, %63 : vector<8x256xf32>
    %c4_i32_34 = arith.constant 4 : i32
    %65 = tpu.dynamic_rotate %9 by %c4_i32_34 dim 1 : vector<8x256xf32>, i32 -> vector<8x256xf32>
    %c0_35 = arith.constant 0 : index
    %c45 = arith.constant 45 : index
    %66 = vector.load %arg2[%c0_35, %c45] : memref<8x162xf32, #tpu.memory_space<vmem>>, vector<8x1xf32>
    %c0_36 = arith.constant 0 : index
    %c126 = arith.constant 126 : index
    %67 = vector.load %arg2[%c0_36, %c126] : memref<8x162xf32, #tpu.memory_space<vmem>>, vector<8x1xf32>
    %68 = vector.broadcast %66 : vector<8x1xf32> to vector<8x256xf32>
    %69 = arith.mulf %68, %65 : vector<8x256xf32>
    %70 = arith.addf %61, %69 : vector<8x256xf32>
    %71 = vector.broadcast %67 : vector<8x1xf32> to vector<8x256xf32>
    %72 = arith.mulf %71, %65 : vector<8x256xf32>
    %73 = arith.addf %64, %72 : vector<8x256xf32>
    %c4_i32_37 = arith.constant 4 : i32
    %74 = tpu.dynamic_rotate %10 by %c4_i32_37 dim 1 : vector<8x256xf32>, i32 -> vector<8x256xf32>
    %c0_38 = arith.constant 0 : index
    %c54 = arith.constant 54 : index
    %75 = vector.load %arg2[%c0_38, %c54] : memref<8x162xf32, #tpu.memory_space<vmem>>, vector<8x1xf32>
    %c0_39 = arith.constant 0 : index
    %c135 = arith.constant 135 : index
    %76 = vector.load %arg2[%c0_39, %c135] : memref<8x162xf32, #tpu.memory_space<vmem>>, vector<8x1xf32>
    %77 = vector.broadcast %75 : vector<8x1xf32> to vector<8x256xf32>
    %78 = arith.mulf %77, %74 : vector<8x256xf32>
    %79 = arith.addf %70, %78 : vector<8x256xf32>
    %80 = vector.broadcast %76 : vector<8x1xf32> to vector<8x256xf32>
    %81 = arith.mulf %80, %74 : vector<8x256xf32>
    %82 = arith.addf %73, %81 : vector<8x256xf32>
    %c4_i32_40 = arith.constant 4 : i32
    %83 = tpu.dynamic_rotate %11 by %c4_i32_40 dim 1 : vector<8x256xf32>, i32 -> vector<8x256xf32>
    %c0_41 = arith.constant 0 : index
    %c63 = arith.constant 63 : index
    %84 = vector.load %arg2[%c0_41, %c63] : memref<8x162xf32, #tpu.memory_space<vmem>>, vector<8x1xf32>
    %c0_42 = arith.constant 0 : index
    %c144 = arith.constant 144 : index
    %85 = vector.load %arg2[%c0_42, %c144] : memref<8x162xf32, #tpu.memory_space<vmem>>, vector<8x1xf32>
    %86 = vector.broadcast %84 : vector<8x1xf32> to vector<8x256xf32>
    %87 = arith.mulf %86, %83 : vector<8x256xf32>
    %88 = arith.addf %79, %87 : vector<8x256xf32>
    %89 = vector.broadcast %85 : vector<8x1xf32> to vector<8x256xf32>
    %90 = arith.mulf %89, %83 : vector<8x256xf32>
    %91 = arith.addf %82, %90 : vector<8x256xf32>
    %c4_i32_43 = arith.constant 4 : i32
    %92 = tpu.dynamic_rotate %12 by %c4_i32_43 dim 1 : vector<8x256xf32>, i32 -> vector<8x256xf32>
    %c0_44 = arith.constant 0 : index
    %c72 = arith.constant 72 : index
    %93 = vector.load %arg2[%c0_44, %c72] : memref<8x162xf32, #tpu.memory_space<vmem>>, vector<8x1xf32>
    %c0_45 = arith.constant 0 : index
    %c153 = arith.constant 153 : index
    %94 = vector.load %arg2[%c0_45, %c153] : memref<8x162xf32, #tpu.memory_space<vmem>>, vector<8x1xf32>
    %95 = vector.broadcast %93 : vector<8x1xf32> to vector<8x256xf32>
    %96 = arith.mulf %95, %92 : vector<8x256xf32>
    %97 = arith.addf %88, %96 : vector<8x256xf32>
    %98 = vector.broadcast %94 : vector<8x1xf32> to vector<8x256xf32>
    %99 = arith.mulf %98, %92 : vector<8x256xf32>
    %100 = arith.addf %91, %99 : vector<8x256xf32>
    %c4_i32_46 = arith.constant 4 : i32
    %101 = vector.broadcast %c4_i32_46 : i32 to vector<8x256xi32>
    %102 = arith.cmpi sge, %15, %101 : vector<8x256xi32>
    %cst_47 = arith.constant 0.000000e+00 : f32
    %103 = vector.broadcast %cst_47 : f32 to vector<8x256xf32>
    %104 = arith.select %102, %97, %103 : vector<8x256xi1>, vector<8x256xf32>
    %105 = arith.addf %16, %104 : vector<8x256xf32>
    %cst_48 = arith.constant 0.000000e+00 : f32
    %106 = vector.broadcast %cst_48 : f32 to vector<8x256xf32>
    %107 = arith.select %102, %100, %106 : vector<8x256xi1>, vector<8x256xf32>
    %108 = arith.addf %17, %107 : vector<8x256xf32>
    %cst_49 = arith.constant 0.000000e+00 : f32
    %109 = vector.broadcast %cst_49 : f32 to vector<8x256xf32>
    %cst_50 = arith.constant 0.000000e+00 : f32
    %110 = vector.broadcast %cst_50 : f32 to vector<8x256xf32>
    %c3_i32 = arith.constant 3 : i32
    %111 = tpu.dynamic_rotate %4 by %c3_i32 dim 1 : vector<8x256xf32>, i32 -> vector<8x256xf32>
    %c0_51 = arith.constant 0 : index
    %c1 = arith.constant 1 : index
    %112 = vector.load %arg2[%c0_51, %c1] : memref<8x162xf32, #tpu.memory_space<vmem>>, vector<8x1xf32>
    %c0_52 = arith.constant 0 : index
    %c82 = arith.constant 82 : index
    %113 = vector.load %arg2[%c0_52, %c82] : memref<8x162xf32, #tpu.memory_space<vmem>>, vector<8x1xf32>
    %114 = vector.broadcast %112 : vector<8x1xf32> to vector<8x256xf32>
    %115 = arith.mulf %114, %111 : vector<8x256xf32>
    %116 = arith.addf %109, %115 : vector<8x256xf32>
    %117 = vector.broadcast %113 : vector<8x1xf32> to vector<8x256xf32>
    %118 = arith.mulf %117, %111 : vector<8x256xf32>
    %119 = arith.addf %110, %118 : vector<8x256xf32>
    %c3_i32_53 = arith.constant 3 : i32
    %120 = tpu.dynamic_rotate %5 by %c3_i32_53 dim 1 : vector<8x256xf32>, i32 -> vector<8x256xf32>
    %c0_54 = arith.constant 0 : index
    %c10 = arith.constant 10 : index
    %121 = vector.load %arg2[%c0_54, %c10] : memref<8x162xf32, #tpu.memory_space<vmem>>, vector<8x1xf32>
    %c0_55 = arith.constant 0 : index
    %c91 = arith.constant 91 : index
    %122 = vector.load %arg2[%c0_55, %c91] : memref<8x162xf32, #tpu.memory_space<vmem>>, vector<8x1xf32>
    %123 = vector.broadcast %121 : vector<8x1xf32> to vector<8x256xf32>
    %124 = arith.mulf %123, %120 : vector<8x256xf32>
    %125 = arith.addf %116, %124 : vector<8x256xf32>
    %126 = vector.broadcast %122 : vector<8x1xf32> to vector<8x256xf32>
    %127 = arith.mulf %126, %120 : vector<8x256xf32>
    %128 = arith.addf %119, %127 : vector<8x256xf32>
    %c3_i32_56 = arith.constant 3 : i32
    %129 = tpu.dynamic_rotate %6 by %c3_i32_56 dim 1 : vector<8x256xf32>, i32 -> vector<8x256xf32>
    %c0_57 = arith.constant 0 : index
    %c19 = arith.constant 19 : index
    %130 = vector.load %arg2[%c0_57, %c19] : memref<8x162xf32, #tpu.memory_space<vmem>>, vector<8x1xf32>
    %c0_58 = arith.constant 0 : index
    %c100 = arith.constant 100 : index
    %131 = vector.load %arg2[%c0_58, %c100] : memref<8x162xf32, #tpu.memory_space<vmem>>, vector<8x1xf32>
    %132 = vector.broadcast %130 : vector<8x1xf32> to vector<8x256xf32>
    %133 = arith.mulf %132, %129 : vector<8x256xf32>
    %134 = arith.addf %125, %133 : vector<8x256xf32>
    %135 = vector.broadcast %131 : vector<8x1xf32> to vector<8x256xf32>
    %136 = arith.mulf %135, %129 : vector<8x256xf32>
    %137 = arith.addf %128, %136 : vector<8x256xf32>
    %c3_i32_59 = arith.constant 3 : i32
    %138 = tpu.dynamic_rotate %7 by %c3_i32_59 dim 1 : vector<8x256xf32>, i32 -> vector<8x256xf32>
    %c0_60 = arith.constant 0 : index
    %c28 = arith.constant 28 : index
    %139 = vector.load %arg2[%c0_60, %c28] : memref<8x162xf32, #tpu.memory_space<vmem>>, vector<8x1xf32>
    %c0_61 = arith.constant 0 : index
    %c109 = arith.constant 109 : index
    %140 = vector.load %arg2[%c0_61, %c109] : memref<8x162xf32, #tpu.memory_space<vmem>>, vector<8x1xf32>
    %141 = vector.broadcast %139 : vector<8x1xf32> to vector<8x256xf32>
    %142 = arith.mulf %141, %138 : vector<8x256xf32>
    %143 = arith.addf %134, %142 : vector<8x256xf32>
    %144 = vector.broadcast %140 : vector<8x1xf32> to vector<8x256xf32>
    %145 = arith.mulf %144, %138 : vector<8x256xf32>
    %146 = arith.addf %137, %145 : vector<8x256xf32>
    %c3_i32_62 = arith.constant 3 : i32
    %147 = tpu.dynamic_rotate %8 by %c3_i32_62 dim 1 : vector<8x256xf32>, i32 -> vector<8x256xf32>
    %c0_63 = arith.constant 0 : index
    %c37 = arith.constant 37 : index
    %148 = vector.load %arg2[%c0_63, %c37] : memref<8x162xf32, #tpu.memory_space<vmem>>, vector<8x1xf32>
    %c0_64 = arith.constant 0 : index
    %c118 = arith.constant 118 : index
    %149 = vector.load %arg2[%c0_64, %c118] : memref<8x162xf32, #tpu.memory_space<vmem>>, vector<8x1xf32>
    %150 = vector.broadcast %148 : vector<8x1xf32> to vector<8x256xf32>
    %151 = arith.mulf %150, %147 : vector<8x256xf32>
    %152 = arith.addf %143, %151 : vector<8x256xf32>
    %153 = vector.broadcast %149 : vector<8x1xf32> to vector<8x256xf32>
    %154 = arith.mulf %153, %147 : vector<8x256xf32>
    %155 = arith.addf %146, %154 : vector<8x256xf32>
    %c3_i32_65 = arith.constant 3 : i32
    %156 = tpu.dynamic_rotate %9 by %c3_i32_65 dim 1 : vector<8x256xf32>, i32 -> vector<8x256xf32>
    %c0_66 = arith.constant 0 : index
    %c46 = arith.constant 46 : index
    %157 = vector.load %arg2[%c0_66, %c46] : memref<8x162xf32, #tpu.memory_space<vmem>>, vector<8x1xf32>
    %c0_67 = arith.constant 0 : index
    %c127 = arith.constant 127 : index
    %158 = vector.load %arg2[%c0_67, %c127] : memref<8x162xf32, #tpu.memory_space<vmem>>, vector<8x1xf32>
    %159 = vector.broadcast %157 : vector<8x1xf32> to vector<8x256xf32>
    %160 = arith.mulf %159, %156 : vector<8x256xf32>
    %161 = arith.addf %152, %160 : vector<8x256xf32>
    %162 = vector.broadcast %158 : vector<8x1xf32> to vector<8x256xf32>
    %163 = arith.mulf %162, %156 : vector<8x256xf32>
    %164 = arith.addf %155, %163 : vector<8x256xf32>
    %c3_i32_68 = arith.constant 3 : i32
    %165 = tpu.dynamic_rotate %10 by %c3_i32_68 dim 1 : vector<8x256xf32>, i32 -> vector<8x256xf32>
    %c0_69 = arith.constant 0 : index
    %c55 = arith.constant 55 : index
    %166 = vector.load %arg2[%c0_69, %c55] : memref<8x162xf32, #tpu.memory_space<vmem>>, vector<8x1xf32>
    %c0_70 = arith.constant 0 : index
    %c136 = arith.constant 136 : index
    %167 = vector.load %arg2[%c0_70, %c136] : memref<8x162xf32, #tpu.memory_space<vmem>>, vector<8x1xf32>
    %168 = vector.broadcast %166 : vector<8x1xf32> to vector<8x256xf32>
    %169 = arith.mulf %168, %165 : vector<8x256xf32>
    %170 = arith.addf %161, %169 : vector<8x256xf32>
    %171 = vector.broadcast %167 : vector<8x1xf32> to vector<8x256xf32>
    %172 = arith.mulf %171, %165 : vector<8x256xf32>
    %173 = arith.addf %164, %172 : vector<8x256xf32>
    %c3_i32_71 = arith.constant 3 : i32
    %174 = tpu.dynamic_rotate %11 by %c3_i32_71 dim 1 : vector<8x256xf32>, i32 -> vector<8x256xf32>
    %c0_72 = arith.constant 0 : index
    %c64_73 = arith.constant 64 : index
    %175 = vector.load %arg2[%c0_72, %c64_73] : memref<8x162xf32, #tpu.memory_space<vmem>>, vector<8x1xf32>
    %c0_74 = arith.constant 0 : index
    %c145 = arith.constant 145 : index
    %176 = vector.load %arg2[%c0_74, %c145] : memref<8x162xf32, #tpu.memory_space<vmem>>, vector<8x1xf32>
    %177 = vector.broadcast %175 : vector<8x1xf32> to vector<8x256xf32>
    %178 = arith.mulf %177, %174 : vector<8x256xf32>
    %179 = arith.addf %170, %178 : vector<8x256xf32>
    %180 = vector.broadcast %176 : vector<8x1xf32> to vector<8x256xf32>
    %181 = arith.mulf %180, %174 : vector<8x256xf32>
    %182 = arith.addf %173, %181 : vector<8x256xf32>
    %c3_i32_75 = arith.constant 3 : i32
    %183 = tpu.dynamic_rotate %12 by %c3_i32_75 dim 1 : vector<8x256xf32>, i32 -> vector<8x256xf32>
    %c0_76 = arith.constant 0 : index
    %c73 = arith.constant 73 : index
    %184 = vector.load %arg2[%c0_76, %c73] : memref<8x162xf32, #tpu.memory_space<vmem>>, vector<8x1xf32>
    %c0_77 = arith.constant 0 : index
    %c154 = arith.constant 154 : index
    %185 = vector.load %arg2[%c0_77, %c154] : memref<8x162xf32, #tpu.memory_space<vmem>>, vector<8x1xf32>
    %186 = vector.broadcast %184 : vector<8x1xf32> to vector<8x256xf32>
    %187 = arith.mulf %186, %183 : vector<8x256xf32>
    %188 = arith.addf %179, %187 : vector<8x256xf32>
    %189 = vector.broadcast %185 : vector<8x1xf32> to vector<8x256xf32>
    %190 = arith.mulf %189, %183 : vector<8x256xf32>
    %191 = arith.addf %182, %190 : vector<8x256xf32>
    %c3_i32_78 = arith.constant 3 : i32
    %192 = vector.broadcast %c3_i32_78 : i32 to vector<8x256xi32>
    %193 = arith.cmpi sge, %15, %192 : vector<8x256xi32>
    %cst_79 = arith.constant 0.000000e+00 : f32
    %194 = vector.broadcast %cst_79 : f32 to vector<8x256xf32>
    %195 = arith.select %193, %188, %194 : vector<8x256xi1>, vector<8x256xf32>
    %196 = arith.addf %105, %195 : vector<8x256xf32>
    %cst_80 = arith.constant 0.000000e+00 : f32
    %197 = vector.broadcast %cst_80 : f32 to vector<8x256xf32>
    %198 = arith.select %193, %191, %197 : vector<8x256xi1>, vector<8x256xf32>
    %199 = arith.addf %108, %198 : vector<8x256xf32>
    %cst_81 = arith.constant 0.000000e+00 : f32
    %200 = vector.broadcast %cst_81 : f32 to vector<8x256xf32>
    %cst_82 = arith.constant 0.000000e+00 : f32
    %201 = vector.broadcast %cst_82 : f32 to vector<8x256xf32>
    %c2_i32 = arith.constant 2 : i32
    %202 = tpu.dynamic_rotate %4 by %c2_i32 dim 1 : vector<8x256xf32>, i32 -> vector<8x256xf32>
    %c0_83 = arith.constant 0 : index
    %c2 = arith.constant 2 : index
    %203 = vector.load %arg2[%c0_83, %c2] : memref<8x162xf32, #tpu.memory_space<vmem>>, vector<8x1xf32>
    %c0_84 = arith.constant 0 : index
    %c83 = arith.constant 83 : index
    %204 = vector.load %arg2[%c0_84, %c83] : memref<8x162xf32, #tpu.memory_space<vmem>>, vector<8x1xf32>
    %205 = vector.broadcast %203 : vector<8x1xf32> to vector<8x256xf32>
    %206 = arith.mulf %205, %202 : vector<8x256xf32>
    %207 = arith.addf %200, %206 : vector<8x256xf32>
    %208 = vector.broadcast %204 : vector<8x1xf32> to vector<8x256xf32>
    %209 = arith.mulf %208, %202 : vector<8x256xf32>
    %210 = arith.addf %201, %209 : vector<8x256xf32>
    %c2_i32_85 = arith.constant 2 : i32
    %211 = tpu.dynamic_rotate %5 by %c2_i32_85 dim 1 : vector<8x256xf32>, i32 -> vector<8x256xf32>
    %c0_86 = arith.constant 0 : index
    %c11 = arith.constant 11 : index
    %212 = vector.load %arg2[%c0_86, %c11] : memref<8x162xf32, #tpu.memory_space<vmem>>, vector<8x1xf32>
    %c0_87 = arith.constant 0 : index
    %c92 = arith.constant 92 : index
    %213 = vector.load %arg2[%c0_87, %c92] : memref<8x162xf32, #tpu.memory_space<vmem>>, vector<8x1xf32>
    %214 = vector.broadcast %212 : vector<8x1xf32> to vector<8x256xf32>
    %215 = arith.mulf %214, %211 : vector<8x256xf32>
    %216 = arith.addf %207, %215 : vector<8x256xf32>
    %217 = vector.broadcast %213 : vector<8x1xf32> to vector<8x256xf32>
    %218 = arith.mulf %217, %211 : vector<8x256xf32>
    %219 = arith.addf %210, %218 : vector<8x256xf32>
    %c2_i32_88 = arith.constant 2 : i32
    %220 = tpu.dynamic_rotate %6 by %c2_i32_88 dim 1 : vector<8x256xf32>, i32 -> vector<8x256xf32>
    %c0_89 = arith.constant 0 : index
    %c20 = arith.constant 20 : index
    %221 = vector.load %arg2[%c0_89, %c20] : memref<8x162xf32, #tpu.memory_space<vmem>>, vector<8x1xf32>
    %c0_90 = arith.constant 0 : index
    %c101 = arith.constant 101 : index
    %222 = vector.load %arg2[%c0_90, %c101] : memref<8x162xf32, #tpu.memory_space<vmem>>, vector<8x1xf32>
    %223 = vector.broadcast %221 : vector<8x1xf32> to vector<8x256xf32>
    %224 = arith.mulf %223, %220 : vector<8x256xf32>
    %225 = arith.addf %216, %224 : vector<8x256xf32>
    %226 = vector.broadcast %222 : vector<8x1xf32> to vector<8x256xf32>
    %227 = arith.mulf %226, %220 : vector<8x256xf32>
    %228 = arith.addf %219, %227 : vector<8x256xf32>
    %c2_i32_91 = arith.constant 2 : i32
    %229 = tpu.dynamic_rotate %7 by %c2_i32_91 dim 1 : vector<8x256xf32>, i32 -> vector<8x256xf32>
    %c0_92 = arith.constant 0 : index
    %c29 = arith.constant 29 : index
    %230 = vector.load %arg2[%c0_92, %c29] : memref<8x162xf32, #tpu.memory_space<vmem>>, vector<8x1xf32>
    %c0_93 = arith.constant 0 : index
    %c110 = arith.constant 110 : index
    %231 = vector.load %arg2[%c0_93, %c110] : memref<8x162xf32, #tpu.memory_space<vmem>>, vector<8x1xf32>
    %232 = vector.broadcast %230 : vector<8x1xf32> to vector<8x256xf32>
    %233 = arith.mulf %232, %229 : vector<8x256xf32>
    %234 = arith.addf %225, %233 : vector<8x256xf32>
    %235 = vector.broadcast %231 : vector<8x1xf32> to vector<8x256xf32>
    %236 = arith.mulf %235, %229 : vector<8x256xf32>
    %237 = arith.addf %228, %236 : vector<8x256xf32>
    %c2_i32_94 = arith.constant 2 : i32
    %238 = tpu.dynamic_rotate %8 by %c2_i32_94 dim 1 : vector<8x256xf32>, i32 -> vector<8x256xf32>
    %c0_95 = arith.constant 0 : index
    %c38 = arith.constant 38 : index
    %239 = vector.load %arg2[%c0_95, %c38] : memref<8x162xf32, #tpu.memory_space<vmem>>, vector<8x1xf32>
    %c0_96 = arith.constant 0 : index
    %c119 = arith.constant 119 : index
    %240 = vector.load %arg2[%c0_96, %c119] : memref<8x162xf32, #tpu.memory_space<vmem>>, vector<8x1xf32>
    %241 = vector.broadcast %239 : vector<8x1xf32> to vector<8x256xf32>
    %242 = arith.mulf %241, %238 : vector<8x256xf32>
    %243 = arith.addf %234, %242 : vector<8x256xf32>
    %244 = vector.broadcast %240 : vector<8x1xf32> to vector<8x256xf32>
    %245 = arith.mulf %244, %238 : vector<8x256xf32>
    %246 = arith.addf %237, %245 : vector<8x256xf32>
    %c2_i32_97 = arith.constant 2 : i32
    %247 = tpu.dynamic_rotate %9 by %c2_i32_97 dim 1 : vector<8x256xf32>, i32 -> vector<8x256xf32>
    %c0_98 = arith.constant 0 : index
    %c47 = arith.constant 47 : index
    %248 = vector.load %arg2[%c0_98, %c47] : memref<8x162xf32, #tpu.memory_space<vmem>>, vector<8x1xf32>
    %c0_99 = arith.constant 0 : index
    %c128_100 = arith.constant 128 : index
    %249 = vector.load %arg2[%c0_99, %c128_100] : memref<8x162xf32, #tpu.memory_space<vmem>>, vector<8x1xf32>
    %250 = vector.broadcast %248 : vector<8x1xf32> to vector<8x256xf32>
    %251 = arith.mulf %250, %247 : vector<8x256xf32>
    %252 = arith.addf %243, %251 : vector<8x256xf32>
    %253 = vector.broadcast %249 : vector<8x1xf32> to vector<8x256xf32>
    %254 = arith.mulf %253, %247 : vector<8x256xf32>
    %255 = arith.addf %246, %254 : vector<8x256xf32>
    %c2_i32_101 = arith.constant 2 : i32
    %256 = tpu.dynamic_rotate %10 by %c2_i32_101 dim 1 : vector<8x256xf32>, i32 -> vector<8x256xf32>
    %c0_102 = arith.constant 0 : index
    %c56 = arith.constant 56 : index
    %257 = vector.load %arg2[%c0_102, %c56] : memref<8x162xf32, #tpu.memory_space<vmem>>, vector<8x1xf32>
    %c0_103 = arith.constant 0 : index
    %c137 = arith.constant 137 : index
    %258 = vector.load %arg2[%c0_103, %c137] : memref<8x162xf32, #tpu.memory_space<vmem>>, vector<8x1xf32>
    %259 = vector.broadcast %257 : vector<8x1xf32> to vector<8x256xf32>
    %260 = arith.mulf %259, %256 : vector<8x256xf32>
    %261 = arith.addf %252, %260 : vector<8x256xf32>
    %262 = vector.broadcast %258 : vector<8x1xf32> to vector<8x256xf32>
    %263 = arith.mulf %262, %256 : vector<8x256xf32>
    %264 = arith.addf %255, %263 : vector<8x256xf32>
    %c2_i32_104 = arith.constant 2 : i32
    %265 = tpu.dynamic_rotate %11 by %c2_i32_104 dim 1 : vector<8x256xf32>, i32 -> vector<8x256xf32>
    %c0_105 = arith.constant 0 : index
    %c65 = arith.constant 65 : index
    %266 = vector.load %arg2[%c0_105, %c65] : memref<8x162xf32, #tpu.memory_space<vmem>>, vector<8x1xf32>
    %c0_106 = arith.constant 0 : index
    %c146 = arith.constant 146 : index
    %267 = vector.load %arg2[%c0_106, %c146] : memref<8x162xf32, #tpu.memory_space<vmem>>, vector<8x1xf32>
    %268 = vector.broadcast %266 : vector<8x1xf32> to vector<8x256xf32>
    %269 = arith.mulf %268, %265 : vector<8x256xf32>
    %270 = arith.addf %261, %269 : vector<8x256xf32>
    %271 = vector.broadcast %267 : vector<8x1xf32> to vector<8x256xf32>
    %272 = arith.mulf %271, %265 : vector<8x256xf32>
    %273 = arith.addf %264, %272 : vector<8x256xf32>
    %c2_i32_107 = arith.constant 2 : i32
    %274 = tpu.dynamic_rotate %12 by %c2_i32_107 dim 1 : vector<8x256xf32>, i32 -> vector<8x256xf32>
    %c0_108 = arith.constant 0 : index
    %c74 = arith.constant 74 : index
    %275 = vector.load %arg2[%c0_108, %c74] : memref<8x162xf32, #tpu.memory_space<vmem>>, vector<8x1xf32>
    %c0_109 = arith.constant 0 : index
    %c155 = arith.constant 155 : index
    %276 = vector.load %arg2[%c0_109, %c155] : memref<8x162xf32, #tpu.memory_space<vmem>>, vector<8x1xf32>
    %277 = vector.broadcast %275 : vector<8x1xf32> to vector<8x256xf32>
    %278 = arith.mulf %277, %274 : vector<8x256xf32>
    %279 = arith.addf %270, %278 : vector<8x256xf32>
    %280 = vector.broadcast %276 : vector<8x1xf32> to vector<8x256xf32>
    %281 = arith.mulf %280, %274 : vector<8x256xf32>
    %282 = arith.addf %273, %281 : vector<8x256xf32>
    %c2_i32_110 = arith.constant 2 : i32
    %283 = vector.broadcast %c2_i32_110 : i32 to vector<8x256xi32>
    %284 = arith.cmpi sge, %15, %283 : vector<8x256xi32>
    %cst_111 = arith.constant 0.000000e+00 : f32
    %285 = vector.broadcast %cst_111 : f32 to vector<8x256xf32>
    %286 = arith.select %284, %279, %285 : vector<8x256xi1>, vector<8x256xf32>
    %287 = arith.addf %196, %286 : vector<8x256xf32>
    %cst_112 = arith.constant 0.000000e+00 : f32
    %288 = vector.broadcast %cst_112 : f32 to vector<8x256xf32>
    %289 = arith.select %284, %282, %288 : vector<8x256xi1>, vector<8x256xf32>
    %290 = arith.addf %199, %289 : vector<8x256xf32>
    %cst_113 = arith.constant 0.000000e+00 : f32
    %291 = vector.broadcast %cst_113 : f32 to vector<8x256xf32>
    %cst_114 = arith.constant 0.000000e+00 : f32
    %292 = vector.broadcast %cst_114 : f32 to vector<8x256xf32>
    %c1_i32 = arith.constant 1 : i32
    %293 = tpu.dynamic_rotate %4 by %c1_i32 dim 1 : vector<8x256xf32>, i32 -> vector<8x256xf32>
    %c0_115 = arith.constant 0 : index
    %c3 = arith.constant 3 : index
    %294 = vector.load %arg2[%c0_115, %c3] : memref<8x162xf32, #tpu.memory_space<vmem>>, vector<8x1xf32>
    %c0_116 = arith.constant 0 : index
    %c84 = arith.constant 84 : index
    %295 = vector.load %arg2[%c0_116, %c84] : memref<8x162xf32, #tpu.memory_space<vmem>>, vector<8x1xf32>
    %296 = vector.broadcast %294 : vector<8x1xf32> to vector<8x256xf32>
    %297 = arith.mulf %296, %293 : vector<8x256xf32>
    %298 = arith.addf %291, %297 : vector<8x256xf32>
    %299 = vector.broadcast %295 : vector<8x1xf32> to vector<8x256xf32>
    %300 = arith.mulf %299, %293 : vector<8x256xf32>
    %301 = arith.addf %292, %300 : vector<8x256xf32>
    %c1_i32_117 = arith.constant 1 : i32
    %302 = tpu.dynamic_rotate %5 by %c1_i32_117 dim 1 : vector<8x256xf32>, i32 -> vector<8x256xf32>
    %c0_118 = arith.constant 0 : index
    %c12 = arith.constant 12 : index
    %303 = vector.load %arg2[%c0_118, %c12] : memref<8x162xf32, #tpu.memory_space<vmem>>, vector<8x1xf32>
    %c0_119 = arith.constant 0 : index
    %c93 = arith.constant 93 : index
    %304 = vector.load %arg2[%c0_119, %c93] : memref<8x162xf32, #tpu.memory_space<vmem>>, vector<8x1xf32>
    %305 = vector.broadcast %303 : vector<8x1xf32> to vector<8x256xf32>
    %306 = arith.mulf %305, %302 : vector<8x256xf32>
    %307 = arith.addf %298, %306 : vector<8x256xf32>
    %308 = vector.broadcast %304 : vector<8x1xf32> to vector<8x256xf32>
    %309 = arith.mulf %308, %302 : vector<8x256xf32>
    %310 = arith.addf %301, %309 : vector<8x256xf32>
    %c1_i32_120 = arith.constant 1 : i32
    %311 = tpu.dynamic_rotate %6 by %c1_i32_120 dim 1 : vector<8x256xf32>, i32 -> vector<8x256xf32>
    %c0_121 = arith.constant 0 : index
    %c21 = arith.constant 21 : index
    %312 = vector.load %arg2[%c0_121, %c21] : memref<8x162xf32, #tpu.memory_space<vmem>>, vector<8x1xf32>
    %c0_122 = arith.constant 0 : index
    %c102 = arith.constant 102 : index
    %313 = vector.load %arg2[%c0_122, %c102] : memref<8x162xf32, #tpu.memory_space<vmem>>, vector<8x1xf32>
    %314 = vector.broadcast %312 : vector<8x1xf32> to vector<8x256xf32>
    %315 = arith.mulf %314, %311 : vector<8x256xf32>
    %316 = arith.addf %307, %315 : vector<8x256xf32>
    %317 = vector.broadcast %313 : vector<8x1xf32> to vector<8x256xf32>
    %318 = arith.mulf %317, %311 : vector<8x256xf32>
    %319 = arith.addf %310, %318 : vector<8x256xf32>
    %c1_i32_123 = arith.constant 1 : i32
    %320 = tpu.dynamic_rotate %7 by %c1_i32_123 dim 1 : vector<8x256xf32>, i32 -> vector<8x256xf32>
    %c0_124 = arith.constant 0 : index
    %c30 = arith.constant 30 : index
    %321 = vector.load %arg2[%c0_124, %c30] : memref<8x162xf32, #tpu.memory_space<vmem>>, vector<8x1xf32>
    %c0_125 = arith.constant 0 : index
    %c111 = arith.constant 111 : index
    %322 = vector.load %arg2[%c0_125, %c111] : memref<8x162xf32, #tpu.memory_space<vmem>>, vector<8x1xf32>
    %323 = vector.broadcast %321 : vector<8x1xf32> to vector<8x256xf32>
    %324 = arith.mulf %323, %320 : vector<8x256xf32>
    %325 = arith.addf %316, %324 : vector<8x256xf32>
    %326 = vector.broadcast %322 : vector<8x1xf32> to vector<8x256xf32>
    %327 = arith.mulf %326, %320 : vector<8x256xf32>
    %328 = arith.addf %319, %327 : vector<8x256xf32>
    %c1_i32_126 = arith.constant 1 : i32
    %329 = tpu.dynamic_rotate %8 by %c1_i32_126 dim 1 : vector<8x256xf32>, i32 -> vector<8x256xf32>
    %c0_127 = arith.constant 0 : index
    %c39 = arith.constant 39 : index
    %330 = vector.load %arg2[%c0_127, %c39] : memref<8x162xf32, #tpu.memory_space<vmem>>, vector<8x1xf32>
    %c0_128 = arith.constant 0 : index
    %c120 = arith.constant 120 : index
    %331 = vector.load %arg2[%c0_128, %c120] : memref<8x162xf32, #tpu.memory_space<vmem>>, vector<8x1xf32>
    %332 = vector.broadcast %330 : vector<8x1xf32> to vector<8x256xf32>
    %333 = arith.mulf %332, %329 : vector<8x256xf32>
    %334 = arith.addf %325, %333 : vector<8x256xf32>
    %335 = vector.broadcast %331 : vector<8x1xf32> to vector<8x256xf32>
    %336 = arith.mulf %335, %329 : vector<8x256xf32>
    %337 = arith.addf %328, %336 : vector<8x256xf32>
    %c1_i32_129 = arith.constant 1 : i32
    %338 = tpu.dynamic_rotate %9 by %c1_i32_129 dim 1 : vector<8x256xf32>, i32 -> vector<8x256xf32>
    %c0_130 = arith.constant 0 : index
    %c48_131 = arith.constant 48 : index
    %339 = vector.load %arg2[%c0_130, %c48_131] : memref<8x162xf32, #tpu.memory_space<vmem>>, vector<8x1xf32>
    %c0_132 = arith.constant 0 : index
    %c129 = arith.constant 129 : index
    %340 = vector.load %arg2[%c0_132, %c129] : memref<8x162xf32, #tpu.memory_space<vmem>>, vector<8x1xf32>
    %341 = vector.broadcast %339 : vector<8x1xf32> to vector<8x256xf32>
    %342 = arith.mulf %341, %338 : vector<8x256xf32>
    %343 = arith.addf %334, %342 : vector<8x256xf32>
    %344 = vector.broadcast %340 : vector<8x1xf32> to vector<8x256xf32>
    %345 = arith.mulf %344, %338 : vector<8x256xf32>
    %346 = arith.addf %337, %345 : vector<8x256xf32>
    %c1_i32_133 = arith.constant 1 : i32
    %347 = tpu.dynamic_rotate %10 by %c1_i32_133 dim 1 : vector<8x256xf32>, i32 -> vector<8x256xf32>
    %c0_134 = arith.constant 0 : index
    %c57 = arith.constant 57 : index
    %348 = vector.load %arg2[%c0_134, %c57] : memref<8x162xf32, #tpu.memory_space<vmem>>, vector<8x1xf32>
    %c0_135 = arith.constant 0 : index
    %c138 = arith.constant 138 : index
    %349 = vector.load %arg2[%c0_135, %c138] : memref<8x162xf32, #tpu.memory_space<vmem>>, vector<8x1xf32>
    %350 = vector.broadcast %348 : vector<8x1xf32> to vector<8x256xf32>
    %351 = arith.mulf %350, %347 : vector<8x256xf32>
    %352 = arith.addf %343, %351 : vector<8x256xf32>
    %353 = vector.broadcast %349 : vector<8x1xf32> to vector<8x256xf32>
    %354 = arith.mulf %353, %347 : vector<8x256xf32>
    %355 = arith.addf %346, %354 : vector<8x256xf32>
    %c1_i32_136 = arith.constant 1 : i32
    %356 = tpu.dynamic_rotate %11 by %c1_i32_136 dim 1 : vector<8x256xf32>, i32 -> vector<8x256xf32>
    %c0_137 = arith.constant 0 : index
    %c66 = arith.constant 66 : index
    %357 = vector.load %arg2[%c0_137, %c66] : memref<8x162xf32, #tpu.memory_space<vmem>>, vector<8x1xf32>
    %c0_138 = arith.constant 0 : index
    %c147 = arith.constant 147 : index
    %358 = vector.load %arg2[%c0_138, %c147] : memref<8x162xf32, #tpu.memory_space<vmem>>, vector<8x1xf32>
    %359 = vector.broadcast %357 : vector<8x1xf32> to vector<8x256xf32>
    %360 = arith.mulf %359, %356 : vector<8x256xf32>
    %361 = arith.addf %352, %360 : vector<8x256xf32>
    %362 = vector.broadcast %358 : vector<8x1xf32> to vector<8x256xf32>
    %363 = arith.mulf %362, %356 : vector<8x256xf32>
    %364 = arith.addf %355, %363 : vector<8x256xf32>
    %c1_i32_139 = arith.constant 1 : i32
    %365 = tpu.dynamic_rotate %12 by %c1_i32_139 dim 1 : vector<8x256xf32>, i32 -> vector<8x256xf32>
    %c0_140 = arith.constant 0 : index
    %c75 = arith.constant 75 : index
    %366 = vector.load %arg2[%c0_140, %c75] : memref<8x162xf32, #tpu.memory_space<vmem>>, vector<8x1xf32>
    %c0_141 = arith.constant 0 : index
    %c156 = arith.constant 156 : index
    %367 = vector.load %arg2[%c0_141, %c156] : memref<8x162xf32, #tpu.memory_space<vmem>>, vector<8x1xf32>
    %368 = vector.broadcast %366 : vector<8x1xf32> to vector<8x256xf32>
    %369 = arith.mulf %368, %365 : vector<8x256xf32>
    %370 = arith.addf %361, %369 : vector<8x256xf32>
    %371 = vector.broadcast %367 : vector<8x1xf32> to vector<8x256xf32>
    %372 = arith.mulf %371, %365 : vector<8x256xf32>
    %373 = arith.addf %364, %372 : vector<8x256xf32>
    %c1_i32_142 = arith.constant 1 : i32
    %374 = vector.broadcast %c1_i32_142 : i32 to vector<8x256xi32>
    %375 = arith.cmpi sge, %15, %374 : vector<8x256xi32>
    %cst_143 = arith.constant 0.000000e+00 : f32
    %376 = vector.broadcast %cst_143 : f32 to vector<8x256xf32>
    %377 = arith.select %375, %370, %376 : vector<8x256xi1>, vector<8x256xf32>
    %378 = arith.addf %287, %377 : vector<8x256xf32>
    %cst_144 = arith.constant 0.000000e+00 : f32
    %379 = vector.broadcast %cst_144 : f32 to vector<8x256xf32>
    %380 = arith.select %375, %373, %379 : vector<8x256xi1>, vector<8x256xf32>
    %381 = arith.addf %290, %380 : vector<8x256xf32>
    %cst_145 = arith.constant 0.000000e+00 : f32
    %382 = vector.broadcast %cst_145 : f32 to vector<8x256xf32>
    %cst_146 = arith.constant 0.000000e+00 : f32
    %383 = vector.broadcast %cst_146 : f32 to vector<8x256xf32>
    %c0_147 = arith.constant 0 : index
    %c4 = arith.constant 4 : index
    %384 = vector.load %arg2[%c0_147, %c4] : memref<8x162xf32, #tpu.memory_space<vmem>>, vector<8x1xf32>
    %c0_148 = arith.constant 0 : index
    %c85 = arith.constant 85 : index
    %385 = vector.load %arg2[%c0_148, %c85] : memref<8x162xf32, #tpu.memory_space<vmem>>, vector<8x1xf32>
    %386 = vector.broadcast %384 : vector<8x1xf32> to vector<8x256xf32>
    %387 = arith.mulf %386, %4 : vector<8x256xf32>
    %388 = arith.addf %382, %387 : vector<8x256xf32>
    %389 = vector.broadcast %385 : vector<8x1xf32> to vector<8x256xf32>
    %390 = arith.mulf %389, %4 : vector<8x256xf32>
    %391 = arith.addf %383, %390 : vector<8x256xf32>
    %c0_149 = arith.constant 0 : index
    %c13 = arith.constant 13 : index
    %392 = vector.load %arg2[%c0_149, %c13] : memref<8x162xf32, #tpu.memory_space<vmem>>, vector<8x1xf32>
    %c0_150 = arith.constant 0 : index
    %c94 = arith.constant 94 : index
    %393 = vector.load %arg2[%c0_150, %c94] : memref<8x162xf32, #tpu.memory_space<vmem>>, vector<8x1xf32>
    %394 = vector.broadcast %392 : vector<8x1xf32> to vector<8x256xf32>
    %395 = arith.mulf %394, %5 : vector<8x256xf32>
    %396 = arith.addf %388, %395 : vector<8x256xf32>
    %397 = vector.broadcast %393 : vector<8x1xf32> to vector<8x256xf32>
    %398 = arith.mulf %397, %5 : vector<8x256xf32>
    %399 = arith.addf %391, %398 : vector<8x256xf32>
    %c0_151 = arith.constant 0 : index
    %c22 = arith.constant 22 : index
    %400 = vector.load %arg2[%c0_151, %c22] : memref<8x162xf32, #tpu.memory_space<vmem>>, vector<8x1xf32>
    %c0_152 = arith.constant 0 : index
    %c103 = arith.constant 103 : index
    %401 = vector.load %arg2[%c0_152, %c103] : memref<8x162xf32, #tpu.memory_space<vmem>>, vector<8x1xf32>
    %402 = vector.broadcast %400 : vector<8x1xf32> to vector<8x256xf32>
    %403 = arith.mulf %402, %6 : vector<8x256xf32>
    %404 = arith.addf %396, %403 : vector<8x256xf32>
    %405 = vector.broadcast %401 : vector<8x1xf32> to vector<8x256xf32>
    %406 = arith.mulf %405, %6 : vector<8x256xf32>
    %407 = arith.addf %399, %406 : vector<8x256xf32>
    %c0_153 = arith.constant 0 : index
    %c31 = arith.constant 31 : index
    %408 = vector.load %arg2[%c0_153, %c31] : memref<8x162xf32, #tpu.memory_space<vmem>>, vector<8x1xf32>
    %c0_154 = arith.constant 0 : index
    %c112_155 = arith.constant 112 : index
    %409 = vector.load %arg2[%c0_154, %c112_155] : memref<8x162xf32, #tpu.memory_space<vmem>>, vector<8x1xf32>
    %410 = vector.broadcast %408 : vector<8x1xf32> to vector<8x256xf32>
    %411 = arith.mulf %410, %7 : vector<8x256xf32>
    %412 = arith.addf %404, %411 : vector<8x256xf32>
    %413 = vector.broadcast %409 : vector<8x1xf32> to vector<8x256xf32>
    %414 = arith.mulf %413, %7 : vector<8x256xf32>
    %415 = arith.addf %407, %414 : vector<8x256xf32>
    %c0_156 = arith.constant 0 : index
    %c40 = arith.constant 40 : index
    %416 = vector.load %arg2[%c0_156, %c40] : memref<8x162xf32, #tpu.memory_space<vmem>>, vector<8x1xf32>
    %c0_157 = arith.constant 0 : index
    %c121 = arith.constant 121 : index
    %417 = vector.load %arg2[%c0_157, %c121] : memref<8x162xf32, #tpu.memory_space<vmem>>, vector<8x1xf32>
    %418 = vector.broadcast %416 : vector<8x1xf32> to vector<8x256xf32>
    %419 = arith.mulf %418, %8 : vector<8x256xf32>
    %420 = arith.addf %412, %419 : vector<8x256xf32>
    %421 = vector.broadcast %417 : vector<8x1xf32> to vector<8x256xf32>
    %422 = arith.mulf %421, %8 : vector<8x256xf32>
    %423 = arith.addf %415, %422 : vector<8x256xf32>
    %c0_158 = arith.constant 0 : index
    %c49 = arith.constant 49 : index
    %424 = vector.load %arg2[%c0_158, %c49] : memref<8x162xf32, #tpu.memory_space<vmem>>, vector<8x1xf32>
    %c0_159 = arith.constant 0 : index
    %c130 = arith.constant 130 : index
    %425 = vector.load %arg2[%c0_159, %c130] : memref<8x162xf32, #tpu.memory_space<vmem>>, vector<8x1xf32>
    %426 = vector.broadcast %424 : vector<8x1xf32> to vector<8x256xf32>
    %427 = arith.mulf %426, %9 : vector<8x256xf32>
    %428 = arith.addf %420, %427 : vector<8x256xf32>
    %429 = vector.broadcast %425 : vector<8x1xf32> to vector<8x256xf32>
    %430 = arith.mulf %429, %9 : vector<8x256xf32>
    %431 = arith.addf %423, %430 : vector<8x256xf32>
    %c0_160 = arith.constant 0 : index
    %c58 = arith.constant 58 : index
    %432 = vector.load %arg2[%c0_160, %c58] : memref<8x162xf32, #tpu.memory_space<vmem>>, vector<8x1xf32>
    %c0_161 = arith.constant 0 : index
    %c139 = arith.constant 139 : index
    %433 = vector.load %arg2[%c0_161, %c139] : memref<8x162xf32, #tpu.memory_space<vmem>>, vector<8x1xf32>
    %434 = vector.broadcast %432 : vector<8x1xf32> to vector<8x256xf32>
    %435 = arith.mulf %434, %10 : vector<8x256xf32>
    %436 = arith.addf %428, %435 : vector<8x256xf32>
    %437 = vector.broadcast %433 : vector<8x1xf32> to vector<8x256xf32>
    %438 = arith.mulf %437, %10 : vector<8x256xf32>
    %439 = arith.addf %431, %438 : vector<8x256xf32>
    %c0_162 = arith.constant 0 : index
    %c67 = arith.constant 67 : index
    %440 = vector.load %arg2[%c0_162, %c67] : memref<8x162xf32, #tpu.memory_space<vmem>>, vector<8x1xf32>
    %c0_163 = arith.constant 0 : index
    %c148 = arith.constant 148 : index
    %441 = vector.load %arg2[%c0_163, %c148] : memref<8x162xf32, #tpu.memory_space<vmem>>, vector<8x1xf32>
    %442 = vector.broadcast %440 : vector<8x1xf32> to vector<8x256xf32>
    %443 = arith.mulf %442, %11 : vector<8x256xf32>
    %444 = arith.addf %436, %443 : vector<8x256xf32>
    %445 = vector.broadcast %441 : vector<8x1xf32> to vector<8x256xf32>
    %446 = arith.mulf %445, %11 : vector<8x256xf32>
    %447 = arith.addf %439, %446 : vector<8x256xf32>
    %c0_164 = arith.constant 0 : index
    %c76 = arith.constant 76 : index
    %448 = vector.load %arg2[%c0_164, %c76] : memref<8x162xf32, #tpu.memory_space<vmem>>, vector<8x1xf32>
    %c0_165 = arith.constant 0 : index
    %c157 = arith.constant 157 : index
    %449 = vector.load %arg2[%c0_165, %c157] : memref<8x162xf32, #tpu.memory_space<vmem>>, vector<8x1xf32>
    %450 = vector.broadcast %448 : vector<8x1xf32> to vector<8x256xf32>
    %451 = arith.mulf %450, %12 : vector<8x256xf32>
    %452 = arith.addf %444, %451 : vector<8x256xf32>
    %453 = vector.broadcast %449 : vector<8x1xf32> to vector<8x256xf32>
    %454 = arith.mulf %453, %12 : vector<8x256xf32>
    %455 = arith.addf %447, %454 : vector<8x256xf32>
    %456 = arith.addf %378, %452 : vector<8x256xf32>
    %457 = arith.addf %381, %455 : vector<8x256xf32>
    %cst_166 = arith.constant 0.000000e+00 : f32
    %458 = vector.broadcast %cst_166 : f32 to vector<8x256xf32>
    %cst_167 = arith.constant 0.000000e+00 : f32
    %459 = vector.broadcast %cst_167 : f32 to vector<8x256xf32>
    %c255_i32 = arith.constant 255 : i32
    %460 = tpu.dynamic_rotate %4 by %c255_i32 dim 1 : vector<8x256xf32>, i32 -> vector<8x256xf32>
    %c0_168 = arith.constant 0 : index
    %c5 = arith.constant 5 : index
    %461 = vector.load %arg2[%c0_168, %c5] : memref<8x162xf32, #tpu.memory_space<vmem>>, vector<8x1xf32>
    %c0_169 = arith.constant 0 : index
    %c86 = arith.constant 86 : index
    %462 = vector.load %arg2[%c0_169, %c86] : memref<8x162xf32, #tpu.memory_space<vmem>>, vector<8x1xf32>
    %463 = vector.broadcast %461 : vector<8x1xf32> to vector<8x256xf32>
    %464 = arith.mulf %463, %460 : vector<8x256xf32>
    %465 = arith.addf %458, %464 : vector<8x256xf32>
    %466 = vector.broadcast %462 : vector<8x1xf32> to vector<8x256xf32>
    %467 = arith.mulf %466, %460 : vector<8x256xf32>
    %468 = arith.addf %459, %467 : vector<8x256xf32>
    %c255_i32_170 = arith.constant 255 : i32
    %469 = tpu.dynamic_rotate %5 by %c255_i32_170 dim 1 : vector<8x256xf32>, i32 -> vector<8x256xf32>
    %c0_171 = arith.constant 0 : index
    %c14 = arith.constant 14 : index
    %470 = vector.load %arg2[%c0_171, %c14] : memref<8x162xf32, #tpu.memory_space<vmem>>, vector<8x1xf32>
    %c0_172 = arith.constant 0 : index
    %c95 = arith.constant 95 : index
    %471 = vector.load %arg2[%c0_172, %c95] : memref<8x162xf32, #tpu.memory_space<vmem>>, vector<8x1xf32>
    %472 = vector.broadcast %470 : vector<8x1xf32> to vector<8x256xf32>
    %473 = arith.mulf %472, %469 : vector<8x256xf32>
    %474 = arith.addf %465, %473 : vector<8x256xf32>
    %475 = vector.broadcast %471 : vector<8x1xf32> to vector<8x256xf32>
    %476 = arith.mulf %475, %469 : vector<8x256xf32>
    %477 = arith.addf %468, %476 : vector<8x256xf32>
    %c255_i32_173 = arith.constant 255 : i32
    %478 = tpu.dynamic_rotate %6 by %c255_i32_173 dim 1 : vector<8x256xf32>, i32 -> vector<8x256xf32>
    %c0_174 = arith.constant 0 : index
    %c23 = arith.constant 23 : index
    %479 = vector.load %arg2[%c0_174, %c23] : memref<8x162xf32, #tpu.memory_space<vmem>>, vector<8x1xf32>
    %c0_175 = arith.constant 0 : index
    %c104 = arith.constant 104 : index
    %480 = vector.load %arg2[%c0_175, %c104] : memref<8x162xf32, #tpu.memory_space<vmem>>, vector<8x1xf32>
    %481 = vector.broadcast %479 : vector<8x1xf32> to vector<8x256xf32>
    %482 = arith.mulf %481, %478 : vector<8x256xf32>
    %483 = arith.addf %474, %482 : vector<8x256xf32>
    %484 = vector.broadcast %480 : vector<8x1xf32> to vector<8x256xf32>
    %485 = arith.mulf %484, %478 : vector<8x256xf32>
    %486 = arith.addf %477, %485 : vector<8x256xf32>
    %c255_i32_176 = arith.constant 255 : i32
    %487 = tpu.dynamic_rotate %7 by %c255_i32_176 dim 1 : vector<8x256xf32>, i32 -> vector<8x256xf32>
    %c0_177 = arith.constant 0 : index
    %c32_178 = arith.constant 32 : index
    %488 = vector.load %arg2[%c0_177, %c32_178] : memref<8x162xf32, #tpu.memory_space<vmem>>, vector<8x1xf32>
    %c0_179 = arith.constant 0 : index
    %c113 = arith.constant 113 : index
    %489 = vector.load %arg2[%c0_179, %c113] : memref<8x162xf32, #tpu.memory_space<vmem>>, vector<8x1xf32>
    %490 = vector.broadcast %488 : vector<8x1xf32> to vector<8x256xf32>
    %491 = arith.mulf %490, %487 : vector<8x256xf32>
    %492 = arith.addf %483, %491 : vector<8x256xf32>
    %493 = vector.broadcast %489 : vector<8x1xf32> to vector<8x256xf32>
    %494 = arith.mulf %493, %487 : vector<8x256xf32>
    %495 = arith.addf %486, %494 : vector<8x256xf32>
    %c255_i32_180 = arith.constant 255 : i32
    %496 = tpu.dynamic_rotate %8 by %c255_i32_180 dim 1 : vector<8x256xf32>, i32 -> vector<8x256xf32>
    %c0_181 = arith.constant 0 : index
    %c41 = arith.constant 41 : index
    %497 = vector.load %arg2[%c0_181, %c41] : memref<8x162xf32, #tpu.memory_space<vmem>>, vector<8x1xf32>
    %c0_182 = arith.constant 0 : index
    %c122 = arith.constant 122 : index
    %498 = vector.load %arg2[%c0_182, %c122] : memref<8x162xf32, #tpu.memory_space<vmem>>, vector<8x1xf32>
    %499 = vector.broadcast %497 : vector<8x1xf32> to vector<8x256xf32>
    %500 = arith.mulf %499, %496 : vector<8x256xf32>
    %501 = arith.addf %492, %500 : vector<8x256xf32>
    %502 = vector.broadcast %498 : vector<8x1xf32> to vector<8x256xf32>
    %503 = arith.mulf %502, %496 : vector<8x256xf32>
    %504 = arith.addf %495, %503 : vector<8x256xf32>
    %c255_i32_183 = arith.constant 255 : i32
    %505 = tpu.dynamic_rotate %9 by %c255_i32_183 dim 1 : vector<8x256xf32>, i32 -> vector<8x256xf32>
    %c0_184 = arith.constant 0 : index
    %c50 = arith.constant 50 : index
    %506 = vector.load %arg2[%c0_184, %c50] : memref<8x162xf32, #tpu.memory_space<vmem>>, vector<8x1xf32>
    %c0_185 = arith.constant 0 : index
    %c131 = arith.constant 131 : index
    %507 = vector.load %arg2[%c0_185, %c131] : memref<8x162xf32, #tpu.memory_space<vmem>>, vector<8x1xf32>
    %508 = vector.broadcast %506 : vector<8x1xf32> to vector<8x256xf32>
    %509 = arith.mulf %508, %505 : vector<8x256xf32>
    %510 = arith.addf %501, %509 : vector<8x256xf32>
    %511 = vector.broadcast %507 : vector<8x1xf32> to vector<8x256xf32>
    %512 = arith.mulf %511, %505 : vector<8x256xf32>
    %513 = arith.addf %504, %512 : vector<8x256xf32>
    %c255_i32_186 = arith.constant 255 : i32
    %514 = tpu.dynamic_rotate %10 by %c255_i32_186 dim 1 : vector<8x256xf32>, i32 -> vector<8x256xf32>
    %c0_187 = arith.constant 0 : index
    %c59 = arith.constant 59 : index
    %515 = vector.load %arg2[%c0_187, %c59] : memref<8x162xf32, #tpu.memory_space<vmem>>, vector<8x1xf32>
    %c0_188 = arith.constant 0 : index
    %c140 = arith.constant 140 : index
    %516 = vector.load %arg2[%c0_188, %c140] : memref<8x162xf32, #tpu.memory_space<vmem>>, vector<8x1xf32>
    %517 = vector.broadcast %515 : vector<8x1xf32> to vector<8x256xf32>
    %518 = arith.mulf %517, %514 : vector<8x256xf32>
    %519 = arith.addf %510, %518 : vector<8x256xf32>
    %520 = vector.broadcast %516 : vector<8x1xf32> to vector<8x256xf32>
    %521 = arith.mulf %520, %514 : vector<8x256xf32>
    %522 = arith.addf %513, %521 : vector<8x256xf32>
    %c255_i32_189 = arith.constant 255 : i32
    %523 = tpu.dynamic_rotate %11 by %c255_i32_189 dim 1 : vector<8x256xf32>, i32 -> vector<8x256xf32>
    %c0_190 = arith.constant 0 : index
    %c68 = arith.constant 68 : index
    %524 = vector.load %arg2[%c0_190, %c68] : memref<8x162xf32, #tpu.memory_space<vmem>>, vector<8x1xf32>
    %c0_191 = arith.constant 0 : index
    %c149 = arith.constant 149 : index
    %525 = vector.load %arg2[%c0_191, %c149] : memref<8x162xf32, #tpu.memory_space<vmem>>, vector<8x1xf32>
    %526 = vector.broadcast %524 : vector<8x1xf32> to vector<8x256xf32>
    %527 = arith.mulf %526, %523 : vector<8x256xf32>
    %528 = arith.addf %519, %527 : vector<8x256xf32>
    %529 = vector.broadcast %525 : vector<8x1xf32> to vector<8x256xf32>
    %530 = arith.mulf %529, %523 : vector<8x256xf32>
    %531 = arith.addf %522, %530 : vector<8x256xf32>
    %c255_i32_192 = arith.constant 255 : i32
    %532 = tpu.dynamic_rotate %12 by %c255_i32_192 dim 1 : vector<8x256xf32>, i32 -> vector<8x256xf32>
    %c0_193 = arith.constant 0 : index
    %c77 = arith.constant 77 : index
    %533 = vector.load %arg2[%c0_193, %c77] : memref<8x162xf32, #tpu.memory_space<vmem>>, vector<8x1xf32>
    %c0_194 = arith.constant 0 : index
    %c158 = arith.constant 158 : index
    %534 = vector.load %arg2[%c0_194, %c158] : memref<8x162xf32, #tpu.memory_space<vmem>>, vector<8x1xf32>
    %535 = vector.broadcast %533 : vector<8x1xf32> to vector<8x256xf32>
    %536 = arith.mulf %535, %532 : vector<8x256xf32>
    %537 = arith.addf %528, %536 : vector<8x256xf32>
    %538 = vector.broadcast %534 : vector<8x1xf32> to vector<8x256xf32>
    %539 = arith.mulf %538, %532 : vector<8x256xf32>
    %540 = arith.addf %531, %539 : vector<8x256xf32>
    %c15_i32_195 = arith.constant 15 : i32
    %541 = vector.broadcast %c15_i32_195 : i32 to vector<8x256xi32>
    %542 = arith.cmpi slt, %15, %541 : vector<8x256xi32>
    %cst_196 = arith.constant 0.000000e+00 : f32
    %543 = vector.broadcast %cst_196 : f32 to vector<8x256xf32>
    %544 = arith.select %542, %537, %543 : vector<8x256xi1>, vector<8x256xf32>
    %545 = arith.addf %456, %544 : vector<8x256xf32>
    %cst_197 = arith.constant 0.000000e+00 : f32
    %546 = vector.broadcast %cst_197 : f32 to vector<8x256xf32>
    %547 = arith.select %542, %540, %546 : vector<8x256xi1>, vector<8x256xf32>
    %548 = arith.addf %457, %547 : vector<8x256xf32>
    %cst_198 = arith.constant 0.000000e+00 : f32
    %549 = vector.broadcast %cst_198 : f32 to vector<8x256xf32>
    %cst_199 = arith.constant 0.000000e+00 : f32
    %550 = vector.broadcast %cst_199 : f32 to vector<8x256xf32>
    %c254_i32 = arith.constant 254 : i32
    %551 = tpu.dynamic_rotate %4 by %c254_i32 dim 1 : vector<8x256xf32>, i32 -> vector<8x256xf32>
    %c0_200 = arith.constant 0 : index
    %c6 = arith.constant 6 : index
    %552 = vector.load %arg2[%c0_200, %c6] : memref<8x162xf32, #tpu.memory_space<vmem>>, vector<8x1xf32>
    %c0_201 = arith.constant 0 : index
    %c87 = arith.constant 87 : index
    %553 = vector.load %arg2[%c0_201, %c87] : memref<8x162xf32, #tpu.memory_space<vmem>>, vector<8x1xf32>
    %554 = vector.broadcast %552 : vector<8x1xf32> to vector<8x256xf32>
    %555 = arith.mulf %554, %551 : vector<8x256xf32>
    %556 = arith.addf %549, %555 : vector<8x256xf32>
    %557 = vector.broadcast %553 : vector<8x1xf32> to vector<8x256xf32>
    %558 = arith.mulf %557, %551 : vector<8x256xf32>
    %559 = arith.addf %550, %558 : vector<8x256xf32>
    %c254_i32_202 = arith.constant 254 : i32
    %560 = tpu.dynamic_rotate %5 by %c254_i32_202 dim 1 : vector<8x256xf32>, i32 -> vector<8x256xf32>
    %c0_203 = arith.constant 0 : index
    %c15 = arith.constant 15 : index
    %561 = vector.load %arg2[%c0_203, %c15] : memref<8x162xf32, #tpu.memory_space<vmem>>, vector<8x1xf32>
    %c0_204 = arith.constant 0 : index
    %c96_205 = arith.constant 96 : index
    %562 = vector.load %arg2[%c0_204, %c96_205] : memref<8x162xf32, #tpu.memory_space<vmem>>, vector<8x1xf32>
    %563 = vector.broadcast %561 : vector<8x1xf32> to vector<8x256xf32>
    %564 = arith.mulf %563, %560 : vector<8x256xf32>
    %565 = arith.addf %556, %564 : vector<8x256xf32>
    %566 = vector.broadcast %562 : vector<8x1xf32> to vector<8x256xf32>
    %567 = arith.mulf %566, %560 : vector<8x256xf32>
    %568 = arith.addf %559, %567 : vector<8x256xf32>
    %c254_i32_206 = arith.constant 254 : i32
    %569 = tpu.dynamic_rotate %6 by %c254_i32_206 dim 1 : vector<8x256xf32>, i32 -> vector<8x256xf32>
    %c0_207 = arith.constant 0 : index
    %c24 = arith.constant 24 : index
    %570 = vector.load %arg2[%c0_207, %c24] : memref<8x162xf32, #tpu.memory_space<vmem>>, vector<8x1xf32>
    %c0_208 = arith.constant 0 : index
    %c105 = arith.constant 105 : index
    %571 = vector.load %arg2[%c0_208, %c105] : memref<8x162xf32, #tpu.memory_space<vmem>>, vector<8x1xf32>
    %572 = vector.broadcast %570 : vector<8x1xf32> to vector<8x256xf32>
    %573 = arith.mulf %572, %569 : vector<8x256xf32>
    %574 = arith.addf %565, %573 : vector<8x256xf32>
    %575 = vector.broadcast %571 : vector<8x1xf32> to vector<8x256xf32>
    %576 = arith.mulf %575, %569 : vector<8x256xf32>
    %577 = arith.addf %568, %576 : vector<8x256xf32>
    %c254_i32_209 = arith.constant 254 : i32
    %578 = tpu.dynamic_rotate %7 by %c254_i32_209 dim 1 : vector<8x256xf32>, i32 -> vector<8x256xf32>
    %c0_210 = arith.constant 0 : index
    %c33 = arith.constant 33 : index
    %579 = vector.load %arg2[%c0_210, %c33] : memref<8x162xf32, #tpu.memory_space<vmem>>, vector<8x1xf32>
    %c0_211 = arith.constant 0 : index
    %c114 = arith.constant 114 : index
    %580 = vector.load %arg2[%c0_211, %c114] : memref<8x162xf32, #tpu.memory_space<vmem>>, vector<8x1xf32>
    %581 = vector.broadcast %579 : vector<8x1xf32> to vector<8x256xf32>
    %582 = arith.mulf %581, %578 : vector<8x256xf32>
    %583 = arith.addf %574, %582 : vector<8x256xf32>
    %584 = vector.broadcast %580 : vector<8x1xf32> to vector<8x256xf32>
    %585 = arith.mulf %584, %578 : vector<8x256xf32>
    %586 = arith.addf %577, %585 : vector<8x256xf32>
    %c254_i32_212 = arith.constant 254 : i32
    %587 = tpu.dynamic_rotate %8 by %c254_i32_212 dim 1 : vector<8x256xf32>, i32 -> vector<8x256xf32>
    %c0_213 = arith.constant 0 : index
    %c42 = arith.constant 42 : index
    %588 = vector.load %arg2[%c0_213, %c42] : memref<8x162xf32, #tpu.memory_space<vmem>>, vector<8x1xf32>
    %c0_214 = arith.constant 0 : index
    %c123 = arith.constant 123 : index
    %589 = vector.load %arg2[%c0_214, %c123] : memref<8x162xf32, #tpu.memory_space<vmem>>, vector<8x1xf32>
    %590 = vector.broadcast %588 : vector<8x1xf32> to vector<8x256xf32>
    %591 = arith.mulf %590, %587 : vector<8x256xf32>
    %592 = arith.addf %583, %591 : vector<8x256xf32>
    %593 = vector.broadcast %589 : vector<8x1xf32> to vector<8x256xf32>
    %594 = arith.mulf %593, %587 : vector<8x256xf32>
    %595 = arith.addf %586, %594 : vector<8x256xf32>
    %c254_i32_215 = arith.constant 254 : i32
    %596 = tpu.dynamic_rotate %9 by %c254_i32_215 dim 1 : vector<8x256xf32>, i32 -> vector<8x256xf32>
    %c0_216 = arith.constant 0 : index
    %c51 = arith.constant 51 : index
    %597 = vector.load %arg2[%c0_216, %c51] : memref<8x162xf32, #tpu.memory_space<vmem>>, vector<8x1xf32>
    %c0_217 = arith.constant 0 : index
    %c132 = arith.constant 132 : index
    %598 = vector.load %arg2[%c0_217, %c132] : memref<8x162xf32, #tpu.memory_space<vmem>>, vector<8x1xf32>
    %599 = vector.broadcast %597 : vector<8x1xf32> to vector<8x256xf32>
    %600 = arith.mulf %599, %596 : vector<8x256xf32>
    %601 = arith.addf %592, %600 : vector<8x256xf32>
    %602 = vector.broadcast %598 : vector<8x1xf32> to vector<8x256xf32>
    %603 = arith.mulf %602, %596 : vector<8x256xf32>
    %604 = arith.addf %595, %603 : vector<8x256xf32>
    %c254_i32_218 = arith.constant 254 : i32
    %605 = tpu.dynamic_rotate %10 by %c254_i32_218 dim 1 : vector<8x256xf32>, i32 -> vector<8x256xf32>
    %c0_219 = arith.constant 0 : index
    %c60 = arith.constant 60 : index
    %606 = vector.load %arg2[%c0_219, %c60] : memref<8x162xf32, #tpu.memory_space<vmem>>, vector<8x1xf32>
    %c0_220 = arith.constant 0 : index
    %c141 = arith.constant 141 : index
    %607 = vector.load %arg2[%c0_220, %c141] : memref<8x162xf32, #tpu.memory_space<vmem>>, vector<8x1xf32>
    %608 = vector.broadcast %606 : vector<8x1xf32> to vector<8x256xf32>
    %609 = arith.mulf %608, %605 : vector<8x256xf32>
    %610 = arith.addf %601, %609 : vector<8x256xf32>
    %611 = vector.broadcast %607 : vector<8x1xf32> to vector<8x256xf32>
    %612 = arith.mulf %611, %605 : vector<8x256xf32>
    %613 = arith.addf %604, %612 : vector<8x256xf32>
    %c254_i32_221 = arith.constant 254 : i32
    %614 = tpu.dynamic_rotate %11 by %c254_i32_221 dim 1 : vector<8x256xf32>, i32 -> vector<8x256xf32>
    %c0_222 = arith.constant 0 : index
    %c69 = arith.constant 69 : index
    %615 = vector.load %arg2[%c0_222, %c69] : memref<8x162xf32, #tpu.memory_space<vmem>>, vector<8x1xf32>
    %c0_223 = arith.constant 0 : index
    %c150 = arith.constant 150 : index
    %616 = vector.load %arg2[%c0_223, %c150] : memref<8x162xf32, #tpu.memory_space<vmem>>, vector<8x1xf32>
    %617 = vector.broadcast %615 : vector<8x1xf32> to vector<8x256xf32>
    %618 = arith.mulf %617, %614 : vector<8x256xf32>
    %619 = arith.addf %610, %618 : vector<8x256xf32>
    %620 = vector.broadcast %616 : vector<8x1xf32> to vector<8x256xf32>
    %621 = arith.mulf %620, %614 : vector<8x256xf32>
    %622 = arith.addf %613, %621 : vector<8x256xf32>
    %c254_i32_224 = arith.constant 254 : i32
    %623 = tpu.dynamic_rotate %12 by %c254_i32_224 dim 1 : vector<8x256xf32>, i32 -> vector<8x256xf32>
    %c0_225 = arith.constant 0 : index
    %c78 = arith.constant 78 : index
    %624 = vector.load %arg2[%c0_225, %c78] : memref<8x162xf32, #tpu.memory_space<vmem>>, vector<8x1xf32>
    %c0_226 = arith.constant 0 : index
    %c159 = arith.constant 159 : index
    %625 = vector.load %arg2[%c0_226, %c159] : memref<8x162xf32, #tpu.memory_space<vmem>>, vector<8x1xf32>
    %626 = vector.broadcast %624 : vector<8x1xf32> to vector<8x256xf32>
    %627 = arith.mulf %626, %623 : vector<8x256xf32>
    %628 = arith.addf %619, %627 : vector<8x256xf32>
    %629 = vector.broadcast %625 : vector<8x1xf32> to vector<8x256xf32>
    %630 = arith.mulf %629, %623 : vector<8x256xf32>
    %631 = arith.addf %622, %630 : vector<8x256xf32>
    %c14_i32 = arith.constant 14 : i32
    %632 = vector.broadcast %c14_i32 : i32 to vector<8x256xi32>
    %633 = arith.cmpi slt, %15, %632 : vector<8x256xi32>
    %cst_227 = arith.constant 0.000000e+00 : f32
    %634 = vector.broadcast %cst_227 : f32 to vector<8x256xf32>
    %635 = arith.select %633, %628, %634 : vector<8x256xi1>, vector<8x256xf32>
    %636 = arith.addf %545, %635 : vector<8x256xf32>
    %cst_228 = arith.constant 0.000000e+00 : f32
    %637 = vector.broadcast %cst_228 : f32 to vector<8x256xf32>
    %638 = arith.select %633, %631, %637 : vector<8x256xi1>, vector<8x256xf32>
    %639 = arith.addf %548, %638 : vector<8x256xf32>
    %cst_229 = arith.constant 0.000000e+00 : f32
    %640 = vector.broadcast %cst_229 : f32 to vector<8x256xf32>
    %cst_230 = arith.constant 0.000000e+00 : f32
    %641 = vector.broadcast %cst_230 : f32 to vector<8x256xf32>
    %c253_i32 = arith.constant 253 : i32
    %642 = tpu.dynamic_rotate %4 by %c253_i32 dim 1 : vector<8x256xf32>, i32 -> vector<8x256xf32>
    %c0_231 = arith.constant 0 : index
    %c7 = arith.constant 7 : index
    %643 = vector.load %arg2[%c0_231, %c7] : memref<8x162xf32, #tpu.memory_space<vmem>>, vector<8x1xf32>
    %c0_232 = arith.constant 0 : index
    %c88 = arith.constant 88 : index
    %644 = vector.load %arg2[%c0_232, %c88] : memref<8x162xf32, #tpu.memory_space<vmem>>, vector<8x1xf32>
    %645 = vector.broadcast %643 : vector<8x1xf32> to vector<8x256xf32>
    %646 = arith.mulf %645, %642 : vector<8x256xf32>
    %647 = arith.addf %640, %646 : vector<8x256xf32>
    %648 = vector.broadcast %644 : vector<8x1xf32> to vector<8x256xf32>
    %649 = arith.mulf %648, %642 : vector<8x256xf32>
    %650 = arith.addf %641, %649 : vector<8x256xf32>
    %c253_i32_233 = arith.constant 253 : i32
    %651 = tpu.dynamic_rotate %5 by %c253_i32_233 dim 1 : vector<8x256xf32>, i32 -> vector<8x256xf32>
    %c0_234 = arith.constant 0 : index
    %c16_235 = arith.constant 16 : index
    %652 = vector.load %arg2[%c0_234, %c16_235] : memref<8x162xf32, #tpu.memory_space<vmem>>, vector<8x1xf32>
    %c0_236 = arith.constant 0 : index
    %c97 = arith.constant 97 : index
    %653 = vector.load %arg2[%c0_236, %c97] : memref<8x162xf32, #tpu.memory_space<vmem>>, vector<8x1xf32>
    %654 = vector.broadcast %652 : vector<8x1xf32> to vector<8x256xf32>
    %655 = arith.mulf %654, %651 : vector<8x256xf32>
    %656 = arith.addf %647, %655 : vector<8x256xf32>
    %657 = vector.broadcast %653 : vector<8x1xf32> to vector<8x256xf32>
    %658 = arith.mulf %657, %651 : vector<8x256xf32>
    %659 = arith.addf %650, %658 : vector<8x256xf32>
    %c253_i32_237 = arith.constant 253 : i32
    %660 = tpu.dynamic_rotate %6 by %c253_i32_237 dim 1 : vector<8x256xf32>, i32 -> vector<8x256xf32>
    %c0_238 = arith.constant 0 : index
    %c25 = arith.constant 25 : index
    %661 = vector.load %arg2[%c0_238, %c25] : memref<8x162xf32, #tpu.memory_space<vmem>>, vector<8x1xf32>
    %c0_239 = arith.constant 0 : index
    %c106 = arith.constant 106 : index
    %662 = vector.load %arg2[%c0_239, %c106] : memref<8x162xf32, #tpu.memory_space<vmem>>, vector<8x1xf32>
    %663 = vector.broadcast %661 : vector<8x1xf32> to vector<8x256xf32>
    %664 = arith.mulf %663, %660 : vector<8x256xf32>
    %665 = arith.addf %656, %664 : vector<8x256xf32>
    %666 = vector.broadcast %662 : vector<8x1xf32> to vector<8x256xf32>
    %667 = arith.mulf %666, %660 : vector<8x256xf32>
    %668 = arith.addf %659, %667 : vector<8x256xf32>
    %c253_i32_240 = arith.constant 253 : i32
    %669 = tpu.dynamic_rotate %7 by %c253_i32_240 dim 1 : vector<8x256xf32>, i32 -> vector<8x256xf32>
    %c0_241 = arith.constant 0 : index
    %c34 = arith.constant 34 : index
    %670 = vector.load %arg2[%c0_241, %c34] : memref<8x162xf32, #tpu.memory_space<vmem>>, vector<8x1xf32>
    %c0_242 = arith.constant 0 : index
    %c115 = arith.constant 115 : index
    %671 = vector.load %arg2[%c0_242, %c115] : memref<8x162xf32, #tpu.memory_space<vmem>>, vector<8x1xf32>
    %672 = vector.broadcast %670 : vector<8x1xf32> to vector<8x256xf32>
    %673 = arith.mulf %672, %669 : vector<8x256xf32>
    %674 = arith.addf %665, %673 : vector<8x256xf32>
    %675 = vector.broadcast %671 : vector<8x1xf32> to vector<8x256xf32>
    %676 = arith.mulf %675, %669 : vector<8x256xf32>
    %677 = arith.addf %668, %676 : vector<8x256xf32>
    %c253_i32_243 = arith.constant 253 : i32
    %678 = tpu.dynamic_rotate %8 by %c253_i32_243 dim 1 : vector<8x256xf32>, i32 -> vector<8x256xf32>
    %c0_244 = arith.constant 0 : index
    %c43 = arith.constant 43 : index
    %679 = vector.load %arg2[%c0_244, %c43] : memref<8x162xf32, #tpu.memory_space<vmem>>, vector<8x1xf32>
    %c0_245 = arith.constant 0 : index
    %c124 = arith.constant 124 : index
    %680 = vector.load %arg2[%c0_245, %c124] : memref<8x162xf32, #tpu.memory_space<vmem>>, vector<8x1xf32>
    %681 = vector.broadcast %679 : vector<8x1xf32> to vector<8x256xf32>
    %682 = arith.mulf %681, %678 : vector<8x256xf32>
    %683 = arith.addf %674, %682 : vector<8x256xf32>
    %684 = vector.broadcast %680 : vector<8x1xf32> to vector<8x256xf32>
    %685 = arith.mulf %684, %678 : vector<8x256xf32>
    %686 = arith.addf %677, %685 : vector<8x256xf32>
    %c253_i32_246 = arith.constant 253 : i32
    %687 = tpu.dynamic_rotate %9 by %c253_i32_246 dim 1 : vector<8x256xf32>, i32 -> vector<8x256xf32>
    %c0_247 = arith.constant 0 : index
    %c52 = arith.constant 52 : index
    %688 = vector.load %arg2[%c0_247, %c52] : memref<8x162xf32, #tpu.memory_space<vmem>>, vector<8x1xf32>
    %c0_248 = arith.constant 0 : index
    %c133 = arith.constant 133 : index
    %689 = vector.load %arg2[%c0_248, %c133] : memref<8x162xf32, #tpu.memory_space<vmem>>, vector<8x1xf32>
    %690 = vector.broadcast %688 : vector<8x1xf32> to vector<8x256xf32>
    %691 = arith.mulf %690, %687 : vector<8x256xf32>
    %692 = arith.addf %683, %691 : vector<8x256xf32>
    %693 = vector.broadcast %689 : vector<8x1xf32> to vector<8x256xf32>
    %694 = arith.mulf %693, %687 : vector<8x256xf32>
    %695 = arith.addf %686, %694 : vector<8x256xf32>
    %c253_i32_249 = arith.constant 253 : i32
    %696 = tpu.dynamic_rotate %10 by %c253_i32_249 dim 1 : vector<8x256xf32>, i32 -> vector<8x256xf32>
    %c0_250 = arith.constant 0 : index
    %c61 = arith.constant 61 : index
    %697 = vector.load %arg2[%c0_250, %c61] : memref<8x162xf32, #tpu.memory_space<vmem>>, vector<8x1xf32>
    %c0_251 = arith.constant 0 : index
    %c142 = arith.constant 142 : index
    %698 = vector.load %arg2[%c0_251, %c142] : memref<8x162xf32, #tpu.memory_space<vmem>>, vector<8x1xf32>
    %699 = vector.broadcast %697 : vector<8x1xf32> to vector<8x256xf32>
    %700 = arith.mulf %699, %696 : vector<8x256xf32>
    %701 = arith.addf %692, %700 : vector<8x256xf32>
    %702 = vector.broadcast %698 : vector<8x1xf32> to vector<8x256xf32>
    %703 = arith.mulf %702, %696 : vector<8x256xf32>
    %704 = arith.addf %695, %703 : vector<8x256xf32>
    %c253_i32_252 = arith.constant 253 : i32
    %705 = tpu.dynamic_rotate %11 by %c253_i32_252 dim 1 : vector<8x256xf32>, i32 -> vector<8x256xf32>
    %c0_253 = arith.constant 0 : index
    %c70 = arith.constant 70 : index
    %706 = vector.load %arg2[%c0_253, %c70] : memref<8x162xf32, #tpu.memory_space<vmem>>, vector<8x1xf32>
    %c0_254 = arith.constant 0 : index
    %c151 = arith.constant 151 : index
    %707 = vector.load %arg2[%c0_254, %c151] : memref<8x162xf32, #tpu.memory_space<vmem>>, vector<8x1xf32>
    %708 = vector.broadcast %706 : vector<8x1xf32> to vector<8x256xf32>
    %709 = arith.mulf %708, %705 : vector<8x256xf32>
    %710 = arith.addf %701, %709 : vector<8x256xf32>
    %711 = vector.broadcast %707 : vector<8x1xf32> to vector<8x256xf32>
    %712 = arith.mulf %711, %705 : vector<8x256xf32>
    %713 = arith.addf %704, %712 : vector<8x256xf32>
    %c253_i32_255 = arith.constant 253 : i32
    %714 = tpu.dynamic_rotate %12 by %c253_i32_255 dim 1 : vector<8x256xf32>, i32 -> vector<8x256xf32>
    %c0_256 = arith.constant 0 : index
    %c79 = arith.constant 79 : index
    %715 = vector.load %arg2[%c0_256, %c79] : memref<8x162xf32, #tpu.memory_space<vmem>>, vector<8x1xf32>
    %c0_257 = arith.constant 0 : index
    %c160 = arith.constant 160 : index
    %716 = vector.load %arg2[%c0_257, %c160] : memref<8x162xf32, #tpu.memory_space<vmem>>, vector<8x1xf32>
    %717 = vector.broadcast %715 : vector<8x1xf32> to vector<8x256xf32>
    %718 = arith.mulf %717, %714 : vector<8x256xf32>
    %719 = arith.addf %710, %718 : vector<8x256xf32>
    %720 = vector.broadcast %716 : vector<8x1xf32> to vector<8x256xf32>
    %721 = arith.mulf %720, %714 : vector<8x256xf32>
    %722 = arith.addf %713, %721 : vector<8x256xf32>
    %c13_i32 = arith.constant 13 : i32
    %723 = vector.broadcast %c13_i32 : i32 to vector<8x256xi32>
    %724 = arith.cmpi slt, %15, %723 : vector<8x256xi32>
    %cst_258 = arith.constant 0.000000e+00 : f32
    %725 = vector.broadcast %cst_258 : f32 to vector<8x256xf32>
    %726 = arith.select %724, %719, %725 : vector<8x256xi1>, vector<8x256xf32>
    %727 = arith.addf %636, %726 : vector<8x256xf32>
    %cst_259 = arith.constant 0.000000e+00 : f32
    %728 = vector.broadcast %cst_259 : f32 to vector<8x256xf32>
    %729 = arith.select %724, %722, %728 : vector<8x256xi1>, vector<8x256xf32>
    %730 = arith.addf %639, %729 : vector<8x256xf32>
    %cst_260 = arith.constant 0.000000e+00 : f32
    %731 = vector.broadcast %cst_260 : f32 to vector<8x256xf32>
    %cst_261 = arith.constant 0.000000e+00 : f32
    %732 = vector.broadcast %cst_261 : f32 to vector<8x256xf32>
    %c252_i32 = arith.constant 252 : i32
    %733 = tpu.dynamic_rotate %4 by %c252_i32 dim 1 : vector<8x256xf32>, i32 -> vector<8x256xf32>
    %c0_262 = arith.constant 0 : index
    %c8 = arith.constant 8 : index
    %734 = vector.load %arg2[%c0_262, %c8] : memref<8x162xf32, #tpu.memory_space<vmem>>, vector<8x1xf32>
    %c0_263 = arith.constant 0 : index
    %c89 = arith.constant 89 : index
    %735 = vector.load %arg2[%c0_263, %c89] : memref<8x162xf32, #tpu.memory_space<vmem>>, vector<8x1xf32>
    %736 = vector.broadcast %734 : vector<8x1xf32> to vector<8x256xf32>
    %737 = arith.mulf %736, %733 : vector<8x256xf32>
    %738 = arith.addf %731, %737 : vector<8x256xf32>
    %739 = vector.broadcast %735 : vector<8x1xf32> to vector<8x256xf32>
    %740 = arith.mulf %739, %733 : vector<8x256xf32>
    %741 = arith.addf %732, %740 : vector<8x256xf32>
    %c252_i32_264 = arith.constant 252 : i32
    %742 = tpu.dynamic_rotate %5 by %c252_i32_264 dim 1 : vector<8x256xf32>, i32 -> vector<8x256xf32>
    %c0_265 = arith.constant 0 : index
    %c17 = arith.constant 17 : index
    %743 = vector.load %arg2[%c0_265, %c17] : memref<8x162xf32, #tpu.memory_space<vmem>>, vector<8x1xf32>
    %c0_266 = arith.constant 0 : index
    %c98 = arith.constant 98 : index
    %744 = vector.load %arg2[%c0_266, %c98] : memref<8x162xf32, #tpu.memory_space<vmem>>, vector<8x1xf32>
    %745 = vector.broadcast %743 : vector<8x1xf32> to vector<8x256xf32>
    %746 = arith.mulf %745, %742 : vector<8x256xf32>
    %747 = arith.addf %738, %746 : vector<8x256xf32>
    %748 = vector.broadcast %744 : vector<8x1xf32> to vector<8x256xf32>
    %749 = arith.mulf %748, %742 : vector<8x256xf32>
    %750 = arith.addf %741, %749 : vector<8x256xf32>
    %c252_i32_267 = arith.constant 252 : i32
    %751 = tpu.dynamic_rotate %6 by %c252_i32_267 dim 1 : vector<8x256xf32>, i32 -> vector<8x256xf32>
    %c0_268 = arith.constant 0 : index
    %c26 = arith.constant 26 : index
    %752 = vector.load %arg2[%c0_268, %c26] : memref<8x162xf32, #tpu.memory_space<vmem>>, vector<8x1xf32>
    %c0_269 = arith.constant 0 : index
    %c107 = arith.constant 107 : index
    %753 = vector.load %arg2[%c0_269, %c107] : memref<8x162xf32, #tpu.memory_space<vmem>>, vector<8x1xf32>
    %754 = vector.broadcast %752 : vector<8x1xf32> to vector<8x256xf32>
    %755 = arith.mulf %754, %751 : vector<8x256xf32>
    %756 = arith.addf %747, %755 : vector<8x256xf32>
    %757 = vector.broadcast %753 : vector<8x1xf32> to vector<8x256xf32>
    %758 = arith.mulf %757, %751 : vector<8x256xf32>
    %759 = arith.addf %750, %758 : vector<8x256xf32>
    %c252_i32_270 = arith.constant 252 : i32
    %760 = tpu.dynamic_rotate %7 by %c252_i32_270 dim 1 : vector<8x256xf32>, i32 -> vector<8x256xf32>
    %c0_271 = arith.constant 0 : index
    %c35 = arith.constant 35 : index
    %761 = vector.load %arg2[%c0_271, %c35] : memref<8x162xf32, #tpu.memory_space<vmem>>, vector<8x1xf32>
    %c0_272 = arith.constant 0 : index
    %c116 = arith.constant 116 : index
    %762 = vector.load %arg2[%c0_272, %c116] : memref<8x162xf32, #tpu.memory_space<vmem>>, vector<8x1xf32>
    %763 = vector.broadcast %761 : vector<8x1xf32> to vector<8x256xf32>
    %764 = arith.mulf %763, %760 : vector<8x256xf32>
    %765 = arith.addf %756, %764 : vector<8x256xf32>
    %766 = vector.broadcast %762 : vector<8x1xf32> to vector<8x256xf32>
    %767 = arith.mulf %766, %760 : vector<8x256xf32>
    %768 = arith.addf %759, %767 : vector<8x256xf32>
    %c252_i32_273 = arith.constant 252 : i32
    %769 = tpu.dynamic_rotate %8 by %c252_i32_273 dim 1 : vector<8x256xf32>, i32 -> vector<8x256xf32>
    %c0_274 = arith.constant 0 : index
    %c44 = arith.constant 44 : index
    %770 = vector.load %arg2[%c0_274, %c44] : memref<8x162xf32, #tpu.memory_space<vmem>>, vector<8x1xf32>
    %c0_275 = arith.constant 0 : index
    %c125 = arith.constant 125 : index
    %771 = vector.load %arg2[%c0_275, %c125] : memref<8x162xf32, #tpu.memory_space<vmem>>, vector<8x1xf32>
    %772 = vector.broadcast %770 : vector<8x1xf32> to vector<8x256xf32>
    %773 = arith.mulf %772, %769 : vector<8x256xf32>
    %774 = arith.addf %765, %773 : vector<8x256xf32>
    %775 = vector.broadcast %771 : vector<8x1xf32> to vector<8x256xf32>
    %776 = arith.mulf %775, %769 : vector<8x256xf32>
    %777 = arith.addf %768, %776 : vector<8x256xf32>
    %c252_i32_276 = arith.constant 252 : i32
    %778 = tpu.dynamic_rotate %9 by %c252_i32_276 dim 1 : vector<8x256xf32>, i32 -> vector<8x256xf32>
    %c0_277 = arith.constant 0 : index
    %c53 = arith.constant 53 : index
    %779 = vector.load %arg2[%c0_277, %c53] : memref<8x162xf32, #tpu.memory_space<vmem>>, vector<8x1xf32>
    %c0_278 = arith.constant 0 : index
    %c134 = arith.constant 134 : index
    %780 = vector.load %arg2[%c0_278, %c134] : memref<8x162xf32, #tpu.memory_space<vmem>>, vector<8x1xf32>
    %781 = vector.broadcast %779 : vector<8x1xf32> to vector<8x256xf32>
    %782 = arith.mulf %781, %778 : vector<8x256xf32>
    %783 = arith.addf %774, %782 : vector<8x256xf32>
    %784 = vector.broadcast %780 : vector<8x1xf32> to vector<8x256xf32>
    %785 = arith.mulf %784, %778 : vector<8x256xf32>
    %786 = arith.addf %777, %785 : vector<8x256xf32>
    %c252_i32_279 = arith.constant 252 : i32
    %787 = tpu.dynamic_rotate %10 by %c252_i32_279 dim 1 : vector<8x256xf32>, i32 -> vector<8x256xf32>
    %c0_280 = arith.constant 0 : index
    %c62 = arith.constant 62 : index
    %788 = vector.load %arg2[%c0_280, %c62] : memref<8x162xf32, #tpu.memory_space<vmem>>, vector<8x1xf32>
    %c0_281 = arith.constant 0 : index
    %c143 = arith.constant 143 : index
    %789 = vector.load %arg2[%c0_281, %c143] : memref<8x162xf32, #tpu.memory_space<vmem>>, vector<8x1xf32>
    %790 = vector.broadcast %788 : vector<8x1xf32> to vector<8x256xf32>
    %791 = arith.mulf %790, %787 : vector<8x256xf32>
    %792 = arith.addf %783, %791 : vector<8x256xf32>
    %793 = vector.broadcast %789 : vector<8x1xf32> to vector<8x256xf32>
    %794 = arith.mulf %793, %787 : vector<8x256xf32>
    %795 = arith.addf %786, %794 : vector<8x256xf32>
    %c252_i32_282 = arith.constant 252 : i32
    %796 = tpu.dynamic_rotate %11 by %c252_i32_282 dim 1 : vector<8x256xf32>, i32 -> vector<8x256xf32>
    %c0_283 = arith.constant 0 : index
    %c71 = arith.constant 71 : index
    %797 = vector.load %arg2[%c0_283, %c71] : memref<8x162xf32, #tpu.memory_space<vmem>>, vector<8x1xf32>
    %c0_284 = arith.constant 0 : index
    %c152 = arith.constant 152 : index
    %798 = vector.load %arg2[%c0_284, %c152] : memref<8x162xf32, #tpu.memory_space<vmem>>, vector<8x1xf32>
    %799 = vector.broadcast %797 : vector<8x1xf32> to vector<8x256xf32>
    %800 = arith.mulf %799, %796 : vector<8x256xf32>
    %801 = arith.addf %792, %800 : vector<8x256xf32>
    %802 = vector.broadcast %798 : vector<8x1xf32> to vector<8x256xf32>
    %803 = arith.mulf %802, %796 : vector<8x256xf32>
    %804 = arith.addf %795, %803 : vector<8x256xf32>
    %c252_i32_285 = arith.constant 252 : i32
    %805 = tpu.dynamic_rotate %12 by %c252_i32_285 dim 1 : vector<8x256xf32>, i32 -> vector<8x256xf32>
    %c0_286 = arith.constant 0 : index
    %c80_287 = arith.constant 80 : index
    %806 = vector.load %arg2[%c0_286, %c80_287] : memref<8x162xf32, #tpu.memory_space<vmem>>, vector<8x1xf32>
    %c0_288 = arith.constant 0 : index
    %c161 = arith.constant 161 : index
    %807 = vector.load %arg2[%c0_288, %c161] : memref<8x162xf32, #tpu.memory_space<vmem>>, vector<8x1xf32>
    %808 = vector.broadcast %806 : vector<8x1xf32> to vector<8x256xf32>
    %809 = arith.mulf %808, %805 : vector<8x256xf32>
    %810 = arith.addf %801, %809 : vector<8x256xf32>
    %811 = vector.broadcast %807 : vector<8x1xf32> to vector<8x256xf32>
    %812 = arith.mulf %811, %805 : vector<8x256xf32>
    %813 = arith.addf %804, %812 : vector<8x256xf32>
    %c12_i32 = arith.constant 12 : i32
    %814 = vector.broadcast %c12_i32 : i32 to vector<8x256xi32>
    %815 = arith.cmpi slt, %15, %814 : vector<8x256xi32>
    %cst_289 = arith.constant 0.000000e+00 : f32
    %816 = vector.broadcast %cst_289 : f32 to vector<8x256xf32>
    %817 = arith.select %815, %810, %816 : vector<8x256xi1>, vector<8x256xf32>
    %818 = arith.addf %727, %817 : vector<8x256xf32>
    %cst_290 = arith.constant 0.000000e+00 : f32
    %819 = vector.broadcast %cst_290 : f32 to vector<8x256xf32>
    %820 = arith.select %815, %813, %819 : vector<8x256xi1>, vector<8x256xf32>
    %821 = arith.addf %730, %820 : vector<8x256xf32>
    %822 = vector.extract_strided_slice %818 {offsets = [0, 0], sizes = [4, 256], strides = [1, 1]} : vector<8x256xf32> to vector<4x256xf32>
    %cst_291 = arith.constant dense<0.000000e+00> : vector<256xf32>
    %823 = vector.multi_reduction <add>, %822, %cst_291 [0] : vector<4x256xf32> to vector<256xf32>
    %824 = vector.shape_cast %823 : vector<256xf32> to vector<1x256xf32>
    %825 = vector.extract_strided_slice %821 {offsets = [0, 0], sizes = [4, 256], strides = [1, 1]} : vector<8x256xf32> to vector<4x256xf32>
    %cst_292 = arith.constant dense<0.000000e+00> : vector<256xf32>
    %826 = vector.multi_reduction <add>, %825, %cst_292 [0] : vector<4x256xf32> to vector<256xf32>
    %827 = vector.shape_cast %826 : vector<256xf32> to vector<1x256xf32>
    %c0_293 = arith.constant 0 : index
    %828 = memref.load %arg3[%c0_293] : memref<2xf32, #tpu.memory_space<smem>>
    %829 = vector.broadcast %828 : f32 to vector<1x256xf32>
    %830 = arith.addf %824, %829 : vector<1x256xf32>
    %831 = arith.negf %830 : vector<1x256xf32>
    %832 = math.exp %831 : vector<1x256xf32>
    %cst_294 = arith.constant 1.000000e+00 : f32
    %833 = vector.broadcast %cst_294 : f32 to vector<1x256xf32>
    %834 = arith.addf %833, %832 : vector<1x256xf32>
    %835 = arith.divf %833, %834 : vector<1x256xf32>
    %c1_295 = arith.constant 1 : index
    %836 = memref.load %arg3[%c1_295] : memref<2xf32, #tpu.memory_space<smem>>
    %837 = vector.broadcast %836 : f32 to vector<1x256xf32>
    %838 = arith.addf %827, %837 : vector<1x256xf32>
    %839 = arith.negf %838 : vector<1x256xf32>
    %840 = math.exp %839 : vector<1x256xf32>
    %cst_296 = arith.constant 1.000000e+00 : f32
    %841 = vector.broadcast %cst_296 : f32 to vector<1x256xf32>
    %842 = arith.addf %841, %840 : vector<1x256xf32>
    %843 = arith.divf %841, %842 : vector<1x256xf32>
    %844 = arith.mulf %835, %843 : vector<1x256xf32>
    %c0_297 = arith.constant 0 : index
    %c0_298 = arith.constant 0 : index
    %845 = vector.load %arg4[%c0_297, %c0_298] : memref<2x256xf32, #tpu.memory_space<vmem>>, vector<1x256xf32>
    tpu.vector_store %arg4[%c0_297, %c0_298], %844 {strides = array<i32>} : memref<2x256xf32, #tpu.memory_space<vmem>>, vector<1x256xf32>,
    %846 = vector.extract_strided_slice %818 {offsets = [4, 0], sizes = [4, 256], strides = [1, 1]} : vector<8x256xf32> to vector<4x256xf32>
    %cst_299 = arith.constant dense<0.000000e+00> : vector<256xf32>
    %847 = vector.multi_reduction <add>, %846, %cst_299 [0] : vector<4x256xf32> to vector<256xf32>
    %848 = vector.shape_cast %847 : vector<256xf32> to vector<1x256xf32>
    %849 = vector.extract_strided_slice %821 {offsets = [4, 0], sizes = [4, 256], strides = [1, 1]} : vector<8x256xf32> to vector<4x256xf32>
    %cst_300 = arith.constant dense<0.000000e+00> : vector<256xf32>
    %850 = vector.multi_reduction <add>, %849, %cst_300 [0] : vector<4x256xf32> to vector<256xf32>
    %851 = vector.shape_cast %850 : vector<256xf32> to vector<1x256xf32>
    %c0_301 = arith.constant 0 : index
    %852 = memref.load %arg3[%c0_301] : memref<2xf32, #tpu.memory_space<smem>>
    %853 = vector.broadcast %852 : f32 to vector<1x256xf32>
    %854 = arith.addf %848, %853 : vector<1x256xf32>
    %855 = arith.negf %854 : vector<1x256xf32>
    %856 = math.exp %855 : vector<1x256xf32>
    %cst_302 = arith.constant 1.000000e+00 : f32
    %857 = vector.broadcast %cst_302 : f32 to vector<1x256xf32>
    %858 = arith.addf %857, %856 : vector<1x256xf32>
    %859 = arith.divf %857, %858 : vector<1x256xf32>
    %c1_303 = arith.constant 1 : index
    %860 = memref.load %arg3[%c1_303] : memref<2xf32, #tpu.memory_space<smem>>
    %861 = vector.broadcast %860 : f32 to vector<1x256xf32>
    %862 = arith.addf %851, %861 : vector<1x256xf32>
    %863 = arith.negf %862 : vector<1x256xf32>
    %864 = math.exp %863 : vector<1x256xf32>
    %cst_304 = arith.constant 1.000000e+00 : f32
    %865 = vector.broadcast %cst_304 : f32 to vector<1x256xf32>
    %866 = arith.addf %865, %864 : vector<1x256xf32>
    %867 = arith.divf %865, %866 : vector<1x256xf32>
    %868 = arith.mulf %859, %867 : vector<1x256xf32>
    %c1_305 = arith.constant 1 : index
    %c0_306 = arith.constant 0 : index
    %869 = vector.load %arg4[%c1_305, %c0_306] : memref<2x256xf32, #tpu.memory_space<vmem>>, vector<1x256xf32>
    tpu.vector_store %arg4[%c1_305, %c0_306], %868 {strides = array<i32>} : memref<2x256xf32, #tpu.memory_space<vmem>>, vector<1x256xf32>,
    return
  }
  func.func @transform_0(%arg0: i32) -> (i32, i32) {
    %c0_i32 = arith.constant 0 : i32
    %c0_i32_0 = arith.constant 0 : i32
    %c0_i32_1 = arith.constant 0 : i32
    return %c0_i32, %c0_i32_0 : i32, i32
  }
  func.func @transform_1(%arg0: i32) -> (i32, i32) {
    %c0_i32 = arith.constant 0 : i32
    %c0_i32_0 = arith.constant 0 : i32
    %c0_i32_1 = arith.constant 0 : i32
    return %c0_i32, %c0_i32_0 : i32, i32
  }
  func.func @transform_2(%arg0: i32) -> i32 {
    %c0_i32 = arith.constant 0 : i32
    %c0_i32_0 = arith.constant 0 : i32
    return %c0_i32 : i32
  }
  func.func @transform_3(%arg0: i32) -> (i32, i32) {
    %c0_i32 = arith.constant 0 : i32
    %c0_i32_0 = arith.constant 0 : i32
    %c0_i32_1 = arith.constant 0 : i32
    return %c0_i32, %c0_i32_0 : i32, i32
  }
}

</mosaic_0001>

<bundles_post_ra>
// kernel: tpu_custom_call.1
= control target key start
LH: loop header
LB: loop body
LE: loop exit
PB: predicated region body
PF: predicated region fallthrough
CT: control target
= control target key end

     0   :  { %8 = vsyncpa [#allocation4], 0  ;;  %s5751_s0 = inlined_call_operand.hbm [shape: f32[8,256], index: 0, kind: input, shape index: {}]   ;;  %s5752_s1 = inlined_call_operand.hbm [shape: f32[8,162], index: 1, kind: input, shape index: {}]   ;;  %s5753_s2 = inlined_call_operand.vmem [shape: f32[2], index: 2, kind: input, shape index: {}]   ;;  %s5754_s3 = inlined_call_operand.hbm [shape: f32[2,256], index: 3, kind: output, shape index: {}]  }
   0x1   :  { %9 = vsyncpa [#allocation8], 0 }
   0x2   :  { %10 = vsyncpa [#allocation6], 0 }
   0x3   :  { %11 = vsyncpa [#allocation5], 0  ;;  %s2816_s12 = smov [#allocation3]   ;;  %s2817_s14 = smov [#allocation7]  }
   0x4   :  { %s18_s13 = sshll.u32 %s2816_s12, 4  ;;  %s28_s15 = sshll.u32 %s2817_s14, 4  ;;  %s19_s13 = int_to_ptr.vmem [resolvable:$true] %s18_s13  ;;  %s29_s15 = int_to_ptr.vmem [resolvable:$true] %s28_s15 }
   0x5   :  { %s2730_s18 = scalar_lea.hbm %s5751_s0, 256 }
   0x6   :  { %p2731_p0 = scmp.ne.s32.totalorder %s5751_s0, %s2730_s18  ;;  %p2734_p1 = scmp.lt.u32.totalorder %s2730_s18, %s5751_s0 }
   0x8   :  { %p2736_p2 = pnand %p2734_p1, %p2731_p0 }
   0xa   :  { %2739 = shalt.err (!%p2736_p2)
}
   0xb   :  { %s2740_s23 = scalar_lea.vmem %s19_s13, 256  ;;  %p2745_p4 = scmp.lt.s32.totalorder %s19_s13, %s19_s13 }
   0xc   :  { %p2741_p3 = scmp.ne.s32.totalorder %s19_s13, %s2740_s23  ;;  %p2746_p5 = scmp.lt.s32.totalorder %s2740_s23, %s2740_s23 }
   0xe   :  { %p2747_p6 = por %p2746_p5, %p2745_p4 }
  0x10   :  { %p2748_p7 = pnand %p2747_p6, %p2741_p3 }
  0x12   :  { %2751 = shalt.err (!%p2748_p7)
}
  0x13   :  { %21 = dma.hbm_to_vmem [thread:$0]  %s5751_s0, 256, %s19_s13, [#allocation4]  }
  0x14   :  { %s2752_s28 = scalar_lea.hbm %s5752_s1, 256 }
  0x15   :  { %p2753_p8 = scmp.ne.s32.totalorder %s5752_s1, %s2752_s28  ;;  %p2756_p9 = scmp.lt.u32.totalorder %s2752_s28, %s5752_s1 }
  0x17   :  { %p2758_p10 = pnand %p2756_p9, %p2753_p8 }
  0x19   :  { %2761 = shalt.err (!%p2758_p10)
}
  0x1a   :  { %s2762_s6 = scalar_lea.vmem %s29_s15, 256  ;;  %p2767_p12 = scmp.lt.s32.totalorder %s29_s15, %s29_s15 }
  0x1b   :  { %p2763_p11 = scmp.ne.s32.totalorder %s29_s15, %s2762_s6  ;;  %p2768_p13 = scmp.lt.s32.totalorder %s2762_s6, %s2762_s6 }
  0x1d   :  { %p2769_p0 = por %p2768_p13, %p2767_p12 }
  0x1f   :  { %p2770_p1 = pnand %p2769_p0, %p2763_p11 }
  0x21   :  { %2773 = shalt.err (!%p2770_p1)
}
  0x22   :  { %31 = dma.hbm_to_vmem [thread:$0]  %s5752_s1, 256, %s29_s15, [#allocation8]  }
  0x23   :  { %s38_s10 = sshll.u32 %s5753_s2, 4  ;;  %s39_s10 = int_to_ptr.vmem [resolvable:$true] %s38_s10 }
  0x24   :  { %s2774_s11 = scalar_lea.vmem %s39_s10, 16  ;;  %p2779_p3 = scmp.lt.s32.totalorder %s39_s10, %s39_s10 }
  0x25   :  { %p2775_p2 = scmp.ne.s32.totalorder %s39_s10, %s2774_s11  ;;  %p2780_p4 = scmp.lt.s32.totalorder %s2774_s11, %s2774_s11 }
  0x27   :  { %p2781_p5 = por %p2780_p4, %p2779_p3 }
  0x29   :  { %p2782_p6 = pnand %p2781_p5, %p2775_p2 }
  0x2b   :  { %2785 = shalt.err (!%p2782_p6)
}
  0x2c   :  { %s2818_s12 = smov [#allocation9]  }
  0x2d   :  { %41 = dma.vmem_to_smem %s39_s10, 16, %s2818_s12, [#allocation6]  }
  0x2e   :  { %2808 = dma.done.wait [#allocation4], 256  }
  0x2f   :  { %2809 = vsyncadd [#allocation4], 4294967040 }
  0x30   :  { %2810 = dma.done.wait [#allocation8], 256  }
  0x31   :  { %2811 = vsyncadd [#allocation8], 4294967040 }
  0x32   :  { %2812 = dma.done.wait [#allocation6], 16  }
  0x33   :  { %2813 = vsyncadd [#allocation6], 4294967280 }
  0x34   :  { %51 = sfence }
  0x35   :  { %v55_v0 = vld [vmem:[#allocation3] sm:$0xff]  ;;  %v3012_v1 = vld [vmem:[#allocation7] sm:$0xff]  ;;  %s2819_s1 = smov 64   ;;  %v2820_v2 = vmov 81   ;;  %v56_v3 = vld [vmem:[#allocation3 + $0x8] sm:$0xff]  ;;  %v2821_v4 = vmov 0  }
  0x36   :  { %59 = vrot.lane.b32.xlu0 %v55_v0, %s2819_s1  ;;  %2538 = vset.pattern.permute.xlu1 %v2820_v2  ;;  %v2822_v5 = vmov 90   ;;  %v2823_v6 = vmov 0.0   ;;  %v2824_v7 = vmov 99   ;;  %v2825_v8 = vmov 18   ;;  %v3028_v15 = vld [vmem:[#allocation7 + $0x8] sm:$0xff]  ;;  %s2845_s2 = smov 4  }
  0x37   :  { %100 = vperm.xlu1 %2538, %v3012_v1   ;;  %2537 = vset.pattern.permute.xlu0 %v2821_v4  ;;  %52 = vst [vmem:[#allocation2] sm:$0xff] %v2823_v6  ;;  %54 = vst [vmem:[#allocation2 + $0x10] sm:$0xff] %v2823_v6  ;;  %v2826_v9 = vmov 108   ;;  %v2827_v10 = vmov 36   ;;  %v2828_v11 = vmov 117   ;;  %v2829_v12 = vmov 45  }
  0x38   :  { %v2830_v13 = vmov 126   ;;  %v2831_v14 = vmov 54   ;;  %v5758_v16 = vmov 7   ;;  %v2833_v17 = vmov 63   ;;  %s2846_s13 = smov 112   ;;  %s2847_s14 = smov 96  }
  0x39   :  { %v5757_v18 = vmov 16   ;;  %v2835_v19 = vmov 91   ;;  %v2836_v20 = vmov 72   ;;  %v2837_v21 = vmov 109   ;;  %s2848_s15 = smov 80   ;;  %s2849_s16 = smov 48  }
  0x3a   :  { %61 = vrot.lane.b32.xlu0 %v56_v3, %s2819_s1  ;;  %v2838_v22 = vmov 82   ;;  %v2839_v23 = vmov 37   ;;  %v5763_v24 = vmov 10   ;;  %v2841_v25 = vmov 127   ;;  %s2850_s17 = smov 32   ;;  %s2851_s18 = smov 16  }
  0x3b   :  { %2539 = vset.pattern.permute.xlu1 %v2822_v5  ;;  %v2842_v26 = vmov 100   ;;  %v5762_v27 = vmov 28   ;;  %v2844_v28 = vmov 118   ;;  %vm68_vm0 = vcmask 1048064   ;;  %s2854_s19 = smov 2   ;;  %s2857_s20 = smov 3  }
  0x3c   :  { %136 = vperm.xlu1 %2539, %v3012_v1   ;;  %vm63_vm1 = vcmask 523264   ;;  %v2852_v35 = vmov 55   ;;  %v2853_v37 = vmov 73   ;;  %v2855_v39 = vmov 83   ;;  %s2872_s21 = smov 1   ;;  %s2905_s22 = smov 127  }
  0x3d   :  { %v5760_v41 = vmov 11   ;;  %v2858_v43 = vmov 101   ;;  %v2859_v50 = vmov 46   ;;  %v5756_v53 = vmov 8   ;;  %s2919_s23 = smov 126   ;;  %s2930_s24 = smov 125  }
  0x3e   :  { %92 = vperm.xlu0 %2537, %v3012_v1   ;;  %v2861_v55 = vmov 64   ;;  %v5755_v59 = vmov 26   ;;  %v5761_v0 = vmov 2   ;;  %v2864_v5 = vmov 92   ;;  %s2944_s25 = smov 124   ;;  %s2210_s26 = sld [smem:[#allocation9]] }
  0x3f   :  { %vm116_vm2 = vcmask 916480   ;;  %vm149_vm3 = vcmask 785408   ;;  %vm182_vm4 = vcmask 654336   ;;  %vm247_vm5 = vcmask 392192   ;;  %s2380_s27 = sld [smem:[#allocation9 + $0x1]]  ;;  %s2964_s28 = smov [#allocation10]  }
  0x40   :  { %2541 = vset.pattern.permute.xlu1 %v2824_v7  ;;  %vm280_vm6 = vcmask 261120   ;;  %vm315_vm7 = vcmask 130048   ;;  %s2367_s29 = sshll.u32 %s2964_s28, 4  ;;  %s2368_s29 = int_to_ptr.vmem [resolvable:$true] %s2367_s29 }
  0x41   :  { %169 = vperm.xlu1 %2541, %v3012_v1   ;;  %s2786_s30 = scalar_lea.vmem %s2368_s29, 64  ;;  %p2791_p8 = scmp.lt.s32.totalorder %s2368_s29, %s2368_s29 }
  0x42   :  { %2540 = vset.pattern.permute.xlu0 %v2825_v8  ;;  %p2787_p7 = scmp.ne.s32.totalorder %s2368_s29, %s2786_s30  ;;  %p2792_p9 = scmp.lt.s32.totalorder %s2786_s30, %s2786_s30 }
  0x43   :  { %161 = vperm.xlu0 %2540, %v3012_v1  }
  0x44   :  { %p2793_p10 = por %p2792_p9, %p2791_p8 }
  0x45   :  { %2542 = vset.pattern.permute.xlu1 %v2826_v9  ;;  %v5759_v9 = vmov 20  }
  0x46   :  { %202 = vperm.xlu1 %2542, %v3012_v1   ;;  %p2794_p11 = pnand %p2793_p10, %p2787_p7 }
  0x47   :  { %2543 = vset.pattern.permute.xlu0 %v2827_v10 }
  0x48   :  { %226 = vperm.xlu0 %2543, %v3012_v1  }
  0x4a   :  { %2544 = vset.pattern.permute.xlu1 %v2828_v11 }
  0x4b   :  { %234 = vperm.xlu1 %2544, %v3012_v1  }
  0x4c   :  { %2545 = vset.pattern.permute.xlu0 %v2829_v12 }
  0x4d   :  { %259 = vperm.xlu0 %2545, %v3012_v1  }
  0x4f   :  { %2546 = vset.pattern.permute.xlu1 %v2830_v13 }
  0x50   :  { %267 = vperm.xlu1 %2546, %v3012_v1  }
  0x51   :  { %2547 = vset.pattern.permute.xlu0 %v2831_v14 }
  0x52   :  { %293 = vperm.xlu0 %2547, %v3012_v1  }
  0x54   :  { %2548 = vset.pattern.permute.xlu1 %v5758_v16  ;;  %v2873_v16 = vmov 93  }
  0x55   :  { %302 = vperm.xlu1 %2548, %v3028_v15  }
  0x56   :  { %2549 = vset.pattern.permute.xlu0 %v2833_v17 }
  0x57   :  { %327 = vperm.xlu0 %2549, %v3012_v1  }
  0x59   :  { %2550 = vset.pattern.permute.xlu1 %v5757_v18  ;;  %v2871_v18 = vmov 110  }
  0x5a   :  { %335 = vperm.xlu1 %2550, %v3028_v15  }
  0x5b   :  { %2554 = vset.pattern.permute.xlu0 %v2835_v19 }
  0x5c   :  { %412 = vperm.xlu0 %2554, %v3012_v1  }
  0x5e   :  { %2551 = vset.pattern.permute.xlu1 %v2836_v20 }
  0x5f   :  { %349 = vperm.xlu1 %2551, %v3012_v1  }
  0x60   :  { %2557 = vset.pattern.permute.xlu0 %v2837_v21 }
  0x61   :  { %456 = vperm.xlu0 %2557, %v3012_v1  }
  0x63   :  { %2552 = vset.pattern.permute.xlu1 %v2838_v22 }
  0x64   :  { %390 = vperm.xlu1 %2552, %v3012_v1  }
  0x65   :  { %2558 = vset.pattern.permute.xlu0 %v2839_v23 }
  0x66   :  { %470 = vperm.xlu0 %2558, %v3012_v1  }
  0x68   :  { %2553 = vset.pattern.permute.xlu1 %v5763_v24 }
  0x69   :  { %404 = vperm.xlu1 %2553, %v3012_v1  }
  0x6a   :  { %2561 = vset.pattern.permute.xlu0 %v2841_v25 }
  0x6d   :  { %2555 = vset.pattern.permute.xlu1 %v2842_v26 }
  0x6e   :  { %434 = vperm.xlu1 %2555, %v3012_v1  }
  0x72   :  { %2556 = vset.pattern.permute.xlu1 %v5762_v27 }
  0x73   :  { %448 = vperm.xlu1 %2556, %v3012_v1  }
  0x77   :  { %2559 = vset.pattern.permute.xlu1 %v2844_v28 }
  0xa8   :  { %v60_v29 = vpop.permute.xlu0 %59 }
  0xa9   :  { %69 = vst.msk [vmem:[#allocation2] sm:$0xff] %vm68_vm0, %v60_v29 }
  0xac   :  { %v62_v30 = vpop.permute.xlu0 %61 }
  0xad   :  { %v3047_v31 = vsel %vm63_vm1, %v60_v29, %v62_v30  ;;  %71 = vst.msk [vmem:[#allocation2 + $0x10] sm:$0xff] %vm63_vm1, %v62_v30 }
  0xae   :  { %70 = vst [vmem:[#allocation2 + $0x8] sm:$0xff] %v3047_v31 }
  0xb0   :  { %v3051_v32 = vld [vmem:[#allocation2] sm:$0xff] }
  0xb1   :  { %82 = vrot.lane.b32.xlu1 %v3051_v32, %s2845_s2 }
  0xb4   :  { %v3055_v33 = vld [vmem:[#allocation2 + $0x10] sm:$0xff] }
  0xb5   :  { %344 = vrot.lane.b32.xlu0 %v3055_v33, %s2845_s2  ;;  %110 = vrot.lane.b32.xlu1 %v3051_v32, %s2846_s13 }
  0xb6   :  { %v3092_v34 = vpop.permute.xlu1 %100 }
  0xb9   :  { %112 = vrot.lane.b32.xlu0 %v3047_v31, %s2846_s13  ;;  %114 = vrot.lane.b32.xlu1 %v3055_v33, %s2846_s13 }
  0xbb   :  { %v3097_v36 = vpop.permute.xlu1 %136 }
  0xbd   :  { %145 = vrot.lane.b32.xlu0 %v3047_v31, %s2847_s14  ;;  %143 = vrot.lane.b32.xlu1 %v3051_v32, %s2847_s14  ;;  %v3123_v44 = vpop.permute.xlu0 %92 }
  0xc0   :  { %v3104_v38 = vpop.permute.xlu1 %169 }
  0xc1   :  { %178 = vrot.lane.b32.xlu0 %v3047_v31, %s2848_s15  ;;  %147 = vrot.lane.b32.xlu1 %v3055_v33, %s2847_s14 }
  0xc2   :  { %v3129_v46 = vpop.permute.xlu0 %161 }
  0xc3   :  { %5997 = vst [vmem:[#allocation15_spill] sm:$0xff] %v3129_v46 }
  0xc5   :  { %211 = vrot.lane.b32.xlu0 %v3047_v31, %s2819_s1  ;;  %176 = vrot.lane.b32.xlu1 %v3051_v32, %s2848_s15  ;;  %v3110_v40 = vpop.permute.xlu1 %202 }
  0xc7   :  { %v3136_v48 = vpop.permute.xlu0 %226 }
  0xc8   :  { %5999 = vst [vmem:[#allocation17_spill] sm:$0xff] %v3136_v48 }
  0xc9   :  { %243 = vrot.lane.b32.xlu0 %v3047_v31, %s2849_s16  ;;  %180 = vrot.lane.b32.xlu1 %v3055_v33, %s2848_s15 }
  0xca   :  { %v3119_v42 = vpop.permute.xlu1 %234 }
  0xcc   :  { %v3141_v51 = vpop.permute.xlu0 %259 }
  0xcd   :  { %276 = vrot.lane.b32.xlu0 %v3047_v31, %s2850_s17  ;;  %209 = vrot.lane.b32.xlu1 %v3051_v32, %s2819_s1  ;;  %6001 = vst [vmem:[#allocation19_spill] sm:$0xff] %v3141_v51 }
  0xcf   :  { %v3125_v45 = vpop.permute.xlu1 %267 }
  0xd1   :  { %311 = vrot.lane.b32.xlu0 %v3047_v31, %s2851_s18  ;;  %213 = vrot.lane.b32.xlu1 %v3055_v33, %s2819_s1  ;;  %v3147_v54 = vpop.permute.xlu0 %293 }
  0xd2   :  { %6002 = vst [vmem:[#allocation20_spill] sm:$0xff] %v3147_v54 }
  0xd4   :  { %v3133_v47 = vpop.permute.xlu1 %302 }
  0xd5   :  { %500 = vperm.xlu0 %2561, %v3012_v1   ;;  %241 = vrot.lane.b32.xlu1 %v3051_v32, %s2849_s16  ;;  %5998 = vst [vmem:[#allocation16_spill] sm:$0xff] %v3133_v47 }
  0xd6   :  { %v3152_v57 = vpop.permute.xlu0 %327 }
  0xd7   :  { %6003 = vst [vmem:[#allocation21_spill] sm:$0xff] %v3152_v57 }
  0xd9   :  { %2562 = vset.pattern.permute.xlu0 %v2852_v35  ;;  %245 = vrot.lane.b32.xlu1 %v3055_v33, %s2849_s16  ;;  %v3138_v49 = vpop.permute.xlu1 %335 }
  0xda   :  { %514 = vperm.xlu0 %2562, %v3012_v1   ;;  %6000 = vst [vmem:[#allocation18_spill] sm:$0xff] %v3138_v49 }
  0xdb   :  { %v3161_v60 = vpop.permute.xlu0 %412 }
  0xdc   :  { %6005 = vst [vmem:[#allocation23_spill] sm:$0xff] %v3161_v60 }
  0xdd   :  { %274 = vrot.lane.b32.xlu1 %v3051_v32, %s2850_s17 }
  0xde   :  { %2565 = vset.pattern.permute.xlu0 %v2853_v37  ;;  %v3143_v52 = vpop.permute.xlu1 %349 }
  0xdf   :  { %558 = vperm.xlu0 %2565, %v3012_v1  }
  0xe0   :  { %v3166_v62 = vpop.permute.xlu0 %456 }
  0xe1   :  { %278 = vrot.lane.b32.xlu1 %v3055_v33, %s2850_s17  ;;  %6007 = vst [vmem:[#allocation25_spill] sm:$0xff] %v3166_v62  ;;  %v2886_v62 = vmov 102  }
  0xe3   :  { %585 = vrot.lane.b32.xlu0 %v3047_v31, %s2854_s19  ;;  %v3149_v56 = vpop.permute.xlu1 %390 }
  0xe4   :  { %2568 = vset.pattern.permute.xlu0 %v2855_v39 }
  0xe5   :  { %309 = vrot.lane.b32.xlu1 %v3051_v32, %s2851_s18  ;;  %v3174_v2 = vpop.permute.xlu0 %470 }
  0xe6   :  { %6009 = vst [vmem:[#allocation27_spill] sm:$0xff] %v3174_v2 }
  0xe7   :  { %599 = vperm.xlu0 %2568, %v3012_v1  }
  0xe8   :  { %v3156_v58 = vpop.permute.xlu1 %404 }
  0xe9   :  { %313 = vrot.lane.b32.xlu1 %v3055_v33, %s2851_s18  ;;  %6004 = vst [vmem:[#allocation22_spill] sm:$0xff] %v3156_v58 }
  0xeb   :  { %2569 = vset.pattern.permute.xlu0 %v5760_v41  ;;  %v2875_v41 = vmov 111  }
  0xec   :  { %613 = vperm.xlu0 %2569, %v3012_v1  }
  0xed   :  { %374 = vrot.lane.b32.xlu1 %v3051_v32, %s2857_s20  ;;  %v3163_v61 = vpop.permute.xlu1 %434 }
  0xee   :  { %6006 = vst [vmem:[#allocation24_spill] sm:$0xff] %v3163_v61  ;;  %v5798_v61 = vmov 13  }
  0xf0   :  { %2572 = vset.pattern.permute.xlu0 %v2858_v43 }
  0xf1   :  { %84 = vrot.lane.b32.xlu1 %v3047_v31, %s2845_s2 }
  0xf2   :  { %v3170_v63 = vpop.permute.xlu1 %448 }
  0xf3   :  { %6008 = vst [vmem:[#allocation26_spill] sm:$0xff] %v3170_v63  ;;  %v5774_v63 = vmov 12  }
  0xf5   :  { %342 = vrot.lane.b32.xlu1 %v3047_v31, %s2845_s2 }
  0xf9   :  { %376 = vrot.lane.b32.xlu1 %v3047_v31, %s2857_s20 }
  0xfd   :  { %478 = vperm.xlu1 %2559, %v3012_v1  }
 0x101   :  { %2560 = vset.pattern.permute.xlu1 %v2859_v50 }
 0x102   :  { %492 = vperm.xlu1 %2560, %v3012_v1  }
 0x106   :  { %2563 = vset.pattern.permute.xlu1 %v5756_v53 }
 0x107   :  { %522 = vperm.xlu1 %2563, %v3028_v15  }
 0x10b   :  { %2564 = vset.pattern.permute.xlu1 %v2861_v55 }
 0x10c   :  { %536 = vperm.xlu1 %2564, %v3012_v1  }
 0x110   :  { %551 = vrot.lane.b32.xlu1 %v3047_v31, %s2857_s20 }
 0x111   :  { %2566 = vset.pattern.permute.xlu1 %v5755_v59  ;;  %v2870_v59 = vmov 27  }
 0x114   :  { %553 = vrot.lane.b32.xlu1 %v3055_v33, %s2857_s20 }
 0x118   :  { %566 = vperm.xlu1 %2566, %v3028_v15  }
 0x11c   :  { %583 = vrot.lane.b32.xlu1 %v3051_v32, %s2854_s19 }
 0x11d   :  { %2567 = vset.pattern.permute.xlu1 %v5761_v0  ;;  %v2876_v0 = vmov 39  }
 0x120   :  { %591 = vperm.xlu1 %2567, %v3012_v1  }
 0x123   :  { %v3176_v3 = vpop.permute.xlu1 %82 }
 0x124   :  { %2570 = vset.pattern.permute.xlu1 %v2864_v5 }
 0x125   :  { %621 = vperm.xlu1 %2570, %v3012_v1  }
 0x127   :  { %v3179_v6 = vpop.permute.xlu0 %344  ;;  %v111_v7 = vpop.permute.xlu1 %110 }
 0x129   :  { %2571 = vset.pattern.permute.xlu1 %v5759_v9  ;;  %v2874_v9 = vmov 38  }
 0x12b   :  { %v113_v10 = vpop.permute.xlu0 %112  ;;  %v115_v11 = vpop.permute.xlu1 %114 }
 0x12c   :  { %v3183_v12 = vsel %vm116_vm2, %v111_v7, %v113_v10  ;;  %v3186_v13 = vsel %vm116_vm2, %v113_v10, %v115_v11 }
 0x12d   :  { %6010 = vst [vmem:[#allocation28_spill] sm:$0xff] %v3186_v13  ;;  %121 = vrot.lane.b32.xlu0 %v3183_v12, %s2845_s2  ;;  %123 = vrot.lane.b32.xlu1 %v3186_v13, %s2845_s2 }
 0x12f   :  { %v146_v14 = vpop.permute.xlu0 %145  ;;  %v144_v17 = vpop.permute.xlu1 %143 }
 0x130   :  { %v3193_v19 = vsel %vm149_vm3, %v144_v17, %v146_v14 }
 0x131   :  { %154 = vrot.lane.b32.xlu0 %v3193_v19, %s2845_s2 }
 0x133   :  { %v148_v20 = vpop.permute.xlu1 %147  ;;  %v179_v22 = vpop.permute.xlu0 %178 }
 0x134   :  { %v3198_v21 = vsel %vm149_vm3, %v146_v14, %v148_v20 }
 0x135   :  { %6011 = vst [vmem:[#allocation29_spill] sm:$0xff] %v3198_v21  ;;  %156 = vrot.lane.b32.xlu1 %v3198_v21, %s2845_s2 }
 0x137   :  { %v177_v23 = vpop.permute.xlu1 %176  ;;  %v212_v29 = vpop.permute.xlu0 %211 }
 0x138   :  { %v3203_v25 = vsel %vm182_vm4, %v177_v23, %v179_v22 }
 0x139   :  { %6012 = vst [vmem:[#allocation30_spill] sm:$0xff] %v3203_v25  ;;  %187 = vrot.lane.b32.xlu0 %v3203_v25, %s2845_s2 }
 0x13b   :  { %v181_v26 = vpop.permute.xlu1 %180  ;;  %v244_v43 = vpop.permute.xlu0 %243 }
 0x13c   :  { %v3208_v28 = vsel %vm182_vm4, %v179_v22, %v181_v26 }
 0x13d   :  { %6013 = vst [vmem:[#allocation31_spill] sm:$0xff] %v3208_v28  ;;  %189 = vrot.lane.b32.xlu1 %v3208_v28, %s2845_s2 }
 0x13f   :  { %v210_v30 = vpop.permute.xlu1 %209  ;;  %v277_v10 = vpop.permute.xlu0 %276 }
 0x140   :  { %v3213_v35 = vsel %vm63_vm1, %v210_v30, %v212_v29 }
 0x141   :  { %6014 = vst [vmem:[#allocation32_spill] sm:$0xff] %v3213_v35  ;;  %219 = vrot.lane.b32.xlu0 %v3213_v35, %s2845_s2 }
 0x143   :  { %v214_v37 = vpop.permute.xlu1 %213  ;;  %v312_v22 = vpop.permute.xlu0 %311 }
 0x144   :  { %v3218_v39 = vsel %vm63_vm1, %v212_v29, %v214_v37 }
 0x145   :  { %6015 = vst [vmem:[#allocation33_spill] sm:$0xff] %v3218_v39  ;;  %221 = vrot.lane.b32.xlu1 %v3218_v39, %s2845_s2 }
 0x147   :  { %v242_v50 = vpop.permute.xlu1 %241 }
 0x148   :  { %v3223_v55 = vsel %vm247_vm5, %v242_v50, %v244_v43 }
 0x149   :  { %6016 = vst [vmem:[#allocation34_spill] sm:$0xff] %v3223_v55  ;;  %252 = vrot.lane.b32.xlu0 %v3223_v55, %s2845_s2 }
 0x14b   :  { %v246_v5 = vpop.permute.xlu1 %245 }
 0x14c   :  { %v3228_v7 = vsel %vm247_vm5, %v244_v43, %v246_v5  ;;  %v2866_v5 = vmov 119  }
 0x14d   :  { %254 = vrot.lane.b32.xlu1 %v3228_v7, %s2845_s2 }
 0x14f   :  { %v275_v11 = vpop.permute.xlu1 %274 }
 0x150   :  { %v3233_v14 = vsel %vm280_vm6, %v275_v11, %v277_v10  ;;  %v2867_v11 = vmov 47  }
 0x151   :  { %285 = vrot.lane.b32.xlu0 %v3233_v14, %s2845_s2 }
 0x153   :  { %v279_v17 = vpop.permute.xlu1 %278 }
 0x154   :  { %v3238_v20 = vsel %vm280_vm6, %v277_v10, %v279_v17 }
 0x155   :  { %6017 = vst [vmem:[#allocation35_spill] sm:$0xff] %v3238_v20  ;;  %287 = vrot.lane.b32.xlu1 %v3238_v20, %s2845_s2 }
 0x157   :  { %v310_v23 = vpop.permute.xlu1 %309 }
 0x158   :  { %v3243_v26 = vsel %vm315_vm7, %v310_v23, %v312_v22 }
 0x159   :  { %6018 = vst [vmem:[#allocation36_spill] sm:$0xff] %v3243_v26  ;;  %320 = vrot.lane.b32.xlu0 %v3243_v26, %s2845_s2 }
 0x15b   :  { %v314_v29 = vpop.permute.xlu1 %313 }
 0x15c   :  { %v3248_v30 = vsel %vm315_vm7, %v312_v22, %v314_v29  ;;  %v2868_v22 = vmov 9  }
 0x15d   :  { %6019 = vst [vmem:[#allocation37_spill] sm:$0xff] %v3248_v30  ;;  %399 = vrot.lane.b32.xlu0 %v3186_v13, %s2857_s20  ;;  %322 = vrot.lane.b32.xlu1 %v3248_v30, %s2845_s2 }
 0x15f   :  { %v3260_v37 = vpop.permute.xlu1 %374 }
 0x161   :  { %443 = vrot.lane.b32.xlu0 %v3208_v28, %s2857_s20  ;;  %397 = vrot.lane.b32.xlu1 %v3183_v12, %s2857_s20 }
 0x163   :  { %v3268_v43 = vpop.permute.xlu1 %84 }
 0x165   :  { %487 = vrot.lane.b32.xlu0 %v3228_v7, %s2857_s20  ;;  %419 = vrot.lane.b32.xlu1 %v3193_v19, %s2857_s20 }
 0x167   :  { %v3275_v50 = vpop.permute.xlu1 %342 }
 0x169   :  { %531 = vrot.lane.b32.xlu0 %v3248_v30, %s2857_s20  ;;  %421 = vrot.lane.b32.xlu1 %v3198_v21, %s2857_s20 }
 0x16b   :  { %v3282_v10 = vpop.permute.xlu1 %376 }
 0x16d   :  { %643 = vperm.xlu0 %2572, %v3012_v1   ;;  %441 = vrot.lane.b32.xlu1 %v3203_v25, %s2857_s20 }
 0x171   :  { %630 = vrot.lane.b32.xlu0 %v3198_v21, %s2854_s19  ;;  %463 = vrot.lane.b32.xlu1 %v3213_v35, %s2857_s20 }
 0x172   :  { %2575 = vset.pattern.permute.xlu0 %v2866_v5 }
 0x175   :  { %687 = vperm.xlu0 %2575, %v3012_v1   ;;  %465 = vrot.lane.b32.xlu1 %v3218_v39, %s2857_s20 }
 0x179   :  { %674 = vrot.lane.b32.xlu0 %v3218_v39, %s2854_s19  ;;  %485 = vrot.lane.b32.xlu1 %v3223_v55, %s2857_s20 }
 0x17a   :  { %2576 = vset.pattern.permute.xlu0 %v2867_v11  ;;  %v2869_v11 = vmov 65  }
 0x17c   :  { %v3288_v17 = vpop.permute.xlu1 %478 }
 0x17d   :  { %6020 = vst [vmem:[#allocation38_spill] sm:$0xff] %v3288_v17  ;;  %701 = vperm.xlu0 %2576, %v3012_v1   ;;  %507 = vrot.lane.b32.xlu1 %v3233_v14, %s2857_s20  ;;  %v2884_v17 = vmov 85  }
 0x181   :  { %2577 = vset.pattern.permute.xlu0 %v2868_v22  ;;  %v3293_v23 = vpop.permute.xlu1 %492  ;;  %509 = vrot.lane.b32.xlu1 %v3238_v20, %s2857_s20 }
 0x182   :  { %6021 = vst [vmem:[#allocation39_spill] sm:$0xff] %v3293_v23  ;;  %128 = vperm.xlu0 %2577, %v3012_v1   ;;  %v2882_v23 = vmov 75  }
 0x185   :  { %529 = vrot.lane.b32.xlu1 %v3243_v26, %s2857_s20 }
 0x186   :  { %718 = vrot.lane.b32.xlu0 %v3238_v20, %s2854_s19  ;;  %v3302_v29 = vpop.permute.xlu1 %522 }
 0x187   :  { %6022 = vst [vmem:[#allocation40_spill] sm:$0xff] %v3302_v29  ;;  %v2883_v29 = vmov 84  }
 0x189   :  { %606 = vrot.lane.b32.xlu1 %v3183_v12, %s2854_s19 }
 0x18a   :  { %731 = vperm.xlu0 %2577, %v3028_v15  }
 0x18b   :  { %v3307_v5 = vpop.permute.xlu1 %536 }
 0x18c   :  { %6023 = vst [vmem:[#allocation41_spill] sm:$0xff] %v3307_v5  ;;  %v2880_v5 = vmov 19  }
 0x18d   :  { %608 = vrot.lane.b32.xlu1 %v3186_v13, %s2854_s19 }
 0x18e   :  { %2580 = vset.pattern.permute.xlu0 %v2869_v11 }
 0x18f   :  { %745 = vperm.xlu0 %2580, %v3012_v1   ;;  %v3312_v22 = vpop.permute.xlu1 %551 }
 0x191   :  { %628 = vrot.lane.b32.xlu1 %v3193_v19, %s2854_s19 }
 0x193   :  { %2581 = vset.pattern.permute.xlu0 %v2870_v59  ;;  %v3317_v53 = vpop.permute.xlu1 %553 }
 0x194   :  { %194 = vperm.xlu0 %2581, %v3012_v1  }
 0x195   :  { %635 = vperm.xlu1 %2571, %v3012_v1  }
 0x197   :  { %v3324_v11 = vpop.permute.xlu1 %566 }
 0x198   :  { %762 = vrot.lane.b32.xlu0 %v3055_v33, %s2854_s19 }
 0x199   :  { %650 = vrot.lane.b32.xlu1 %v3203_v25, %s2854_s19 }
 0x19a   :  { %2573 = vset.pattern.permute.xlu1 %v2871_v18 }
 0x19b   :  { %v3331_v59 = vpop.permute.xlu1 %583 }
 0x19c   :  { %775 = vperm.xlu0 %2581, %v3028_v15  }
 0x19d   :  { %652 = vrot.lane.b32.xlu1 %v3208_v28, %s2854_s19 }
 0x19f   :  { %v3337_v18 = vpop.permute.xlu1 %591 }
 0x1a0   :  { %817 = vrot.lane.b32.xlu0 %v3186_v13, %s2872_s21 }
 0x1a1   :  { %2586 = vset.pattern.permute.xlu0 %v2873_v16  ;;  %665 = vperm.xlu1 %2573, %v3012_v1  }
 0x1a4   :  { %830 = vperm.xlu0 %2586, %v3012_v1   ;;  %v3343_v16 = vpop.permute.xlu1 %621 }
 0x1a5   :  { %672 = vrot.lane.b32.xlu1 %v3213_v35, %s2854_s19  ;;  %6024 = vst [vmem:[#allocation42_spill] sm:$0xff] %v3343_v16 }
 0x1a6   :  { %2574 = vset.pattern.permute.xlu1 %v2874_v9 }
 0x1a8   :  { %861 = vrot.lane.b32.xlu0 %v3208_v28, %s2872_s21  ;;  %v3351_v9 = vpop.permute.xlu1 %123 }
 0x1a9   :  { %2589 = vset.pattern.permute.xlu0 %v2875_v41  ;;  %679 = vperm.xlu1 %2574, %v3012_v1   ;;  %v2877_v41 = vmov 1  }
 0x1ac   :  { %874 = vperm.xlu0 %2589, %v3012_v1   ;;  %v3355_v27 = vpop.permute.xlu1 %156 }
 0x1ad   :  { %694 = vrot.lane.b32.xlu1 %v3223_v55, %s2854_s19 }
 0x1ae   :  { %2578 = vset.pattern.permute.xlu1 %v2821_v4  ;;  %v2878_v4 = vmov 56  }
 0x1b0   :  { %2590 = vset.pattern.permute.xlu0 %v2876_v0  ;;  %v3363_v0 = vpop.permute.xlu1 %189 }
 0x1b1   :  { %888 = vperm.xlu0 %2590, %v3012_v1   ;;  %696 = vrot.lane.b32.xlu1 %v3228_v7, %s2854_s19 }
 0x1b5   :  { %2591 = vset.pattern.permute.xlu0 %v2877_v41  ;;  %709 = vperm.xlu1 %2578, %v3028_v15   ;;  %v2879_v41 = vmov 57  }
 0x1b6   :  { %382 = vperm.xlu0 %2591, %v3012_v1  }
 0x1b7   :  { %v3367_v24 = vpop.permute.xlu1 %221 }
 0x1b9   :  { %716 = vrot.lane.b32.xlu1 %v3233_v14, %s2854_s19 }
 0x1ba   :  { %905 = vrot.lane.b32.xlu0 %v3228_v7, %s2872_s21  ;;  %2579 = vset.pattern.permute.xlu1 %v2878_v4 }
 0x1bd   :  { %723 = vperm.xlu1 %2579, %v3012_v1  }
 0x1be   :  { %918 = vperm.xlu0 %2591, %v3028_v15  }
 0x1bf   :  { %v3373_v4 = vpop.permute.xlu1 %254 }
 0x1c1   :  { %738 = vrot.lane.b32.xlu1 %v3243_v26, %s2854_s19 }
 0x1c2   :  { %2594 = vset.pattern.permute.xlu0 %v2879_v41  ;;  %2582 = vset.pattern.permute.xlu1 %v2825_v8  ;;  %v2881_v41 = vmov 74  }
 0x1c3   :  { %932 = vperm.xlu0 %2594, %v3012_v1  }
 0x1c5   :  { %740 = vrot.lane.b32.xlu1 %v3248_v30, %s2854_s19 }
 0x1c7   :  { %2595 = vset.pattern.permute.xlu0 %v2880_v5  ;;  %v3377_v16 = vpop.permute.xlu1 %287 }
 0x1c8   :  { %426 = vperm.xlu0 %2595, %v3012_v1  }
 0x1c9   :  { %753 = vperm.xlu1 %2582, %v3028_v15  }
 0x1cc   :  { %949 = vrot.lane.b32.xlu0 %v3248_v30, %s2872_s21 }
 0x1cd   :  { %760 = vrot.lane.b32.xlu1 %v3047_v31, %s2854_s19 }
 0x1ce   :  { %2583 = vset.pattern.permute.xlu1 %v2881_v41 }
 0x1cf   :  { %v3383_v8 = vpop.permute.xlu1 %322 }
 0x1d0   :  { %6025 = vst [vmem:[#allocation43_spill] sm:$0xff] %v3383_v8  ;;  %962 = vperm.xlu0 %2595, %v3028_v15  }
 0x1d1   :  { %767 = vperm.xlu1 %2583, %v3012_v1  }
 0x1d3   :  { %v3387_v5 = vpop.permute.xlu1 %397 }
 0x1d4   :  { %6026 = vst [vmem:[#allocation44_spill] sm:$0xff] %v3387_v5  ;;  %2598 = vset.pattern.permute.xlu0 %v2882_v23 }
 0x1d5   :  { %976 = vperm.xlu0 %2598, %v3012_v1   ;;  %792 = vrot.lane.b32.xlu1 %v3051_v32, %s2872_s21 }
 0x1d6   :  { %2584 = vset.pattern.permute.xlu1 %v2883_v29 }
 0x1d7   :  { %v3392_v2 = vpop.permute.xlu1 %419 }
 0x1d8   :  { %6027 = vst [vmem:[#allocation45_spill] sm:$0xff] %v3392_v2 }
 0x1d9   :  { %2601 = vset.pattern.permute.xlu0 %v2884_v17  ;;  %794 = vrot.lane.b32.xlu1 %v3047_v31, %s2872_s21 }
 0x1da   :  { %1010 = vperm.xlu0 %2601, %v3012_v1  }
 0x1db   :  { %v3397_v41 = vpop.permute.xlu1 %421 }
 0x1dc   :  { %6028 = vst [vmem:[#allocation46_spill] sm:$0xff] %v3397_v41 }
 0x1dd   :  { %808 = vperm.xlu1 %2584, %v3012_v1  }
 0x1df   :  { %v3400_v23 = vpop.permute.xlu1 %441 }
 0x1e0   :  { %6029 = vst [vmem:[#allocation47_spill] sm:$0xff] %v3400_v23 }
 0x1e1   :  { %815 = vrot.lane.b32.xlu1 %v3183_v12, %s2872_s21 }
 0x1e2   :  { %2585 = vset.pattern.permute.xlu1 %v5774_v63  ;;  %v5778_v63 = vmov 30  }
 0x1e3   :  { %v3405_v29 = vpop.permute.xlu1 %463 }
 0x1e4   :  { %6030 = vst [vmem:[#allocation48_spill] sm:$0xff] %v3405_v29 }
 0x1e5   :  { %822 = vperm.xlu1 %2585, %v3012_v1  }
 0x1e7   :  { %v3408_v17 = vpop.permute.xlu1 %465 }
 0x1e8   :  { %6031 = vst [vmem:[#allocation49_spill] sm:$0xff] %v3408_v17 }
 0x1e9   :  { %837 = vrot.lane.b32.xlu1 %v3193_v19, %s2872_s21 }
 0x1ea   :  { %2587 = vset.pattern.permute.xlu1 %v2886_v62 }
 0x1eb   :  { %v3412_v58 = vpop.permute.xlu1 %485 }
 0x1ec   :  { %6032 = vst [vmem:[#allocation50_spill] sm:$0xff] %v3412_v58  ;;  %v2888_v58 = vmov 120  }
 0x1ed   :  { %839 = vrot.lane.b32.xlu1 %v3198_v21, %s2872_s21 }
 0x1ef   :  { %v3417_v23 = vpop.permute.xlu1 %507 }
 0x1f0   :  { %6033 = vst [vmem:[#allocation51_spill] sm:$0xff] %v3417_v23 }
 0x1f1   :  { %852 = vperm.xlu1 %2587, %v3012_v1  }
 0x1f3   :  { %v3422_v17 = vpop.permute.xlu1 %509 }
 0x1f4   :  { %6034 = vst [vmem:[#allocation52_spill] sm:$0xff] %v3422_v17  ;;  %v2889_v17 = vmov 48  }
 0x1f5   :  { %859 = vrot.lane.b32.xlu1 %v3203_v25, %s2872_s21 }
 0x1f6   :  { %2588 = vset.pattern.permute.xlu1 %v5778_v63 }
 0x1f7   :  { %v3427_v62 = vpop.permute.xlu1 %529 }
 0x1f8   :  { %6035 = vst [vmem:[#allocation53_spill] sm:$0xff] %v3427_v62 }
 0x1f9   :  { %866 = vperm.xlu1 %2588, %v3012_v1  }
 0x1fb   :  { %v3431_v23 = vpop.permute.xlu1 %606 }
 0x1fc   :  { %6036 = vst [vmem:[#allocation54_spill] sm:$0xff] %v3431_v23 }
 0x1fd   :  { %881 = vrot.lane.b32.xlu1 %v3213_v35, %s2872_s21 }
 0x1fe   :  { %2592 = vset.pattern.permute.xlu1 %v2888_v58  ;;  %v6039_v58 = vmov 10  }
 0x1ff   :  { %v3436_v63 = vpop.permute.xlu1 %608 }
 0x200   :  { %6037 = vst [vmem:[#allocation55_spill] sm:$0xff] %v3436_v63 }
 0x201   :  { %883 = vrot.lane.b32.xlu1 %v3218_v39, %s2872_s21 }
 0x203   :  { %v3439_v29 = vpop.permute.xlu1 %628 }
 0x204   :  { %6038 = vst [vmem:[#allocation56_spill] sm:$0xff] %v3439_v29 }
 0x205   :  { %896 = vperm.xlu1 %2592, %v3012_v1  }
 0x209   :  { %903 = vrot.lane.b32.xlu1 %v3223_v55, %s2872_s21 }
 0x20a   :  { %2593 = vset.pattern.permute.xlu1 %v2889_v17  ;;  %v2890_v17 = vmov 66  }
 0x20d   :  { %910 = vperm.xlu1 %2593, %v3012_v1  }
 0x211   :  { %925 = vrot.lane.b32.xlu1 %v3233_v14, %s2872_s21 }
 0x212   :  { %2596 = vset.pattern.permute.xlu1 %v6039_v58 }
 0x214   :  { %v3444_v62 = vpop.permute.xlu1 %635 }
 0x215   :  { %6040 = vst [vmem:[#allocation57_spill] sm:$0xff] %v3444_v62  ;;  %927 = vrot.lane.b32.xlu1 %v3238_v20, %s2872_s21  ;;  %v6045_v62 = vmov 28  }
 0x218   :  { %v3448_v23 = vpop.permute.xlu1 %650 }
 0x219   :  { %6041 = vst [vmem:[#allocation58_spill] sm:$0xff] %v3448_v23  ;;  %940 = vperm.xlu1 %2596, %v3028_v15  }
 0x21c   :  { %v3451_v63 = vpop.permute.xlu1 %652 }
 0x21d   :  { %6042 = vst [vmem:[#allocation59_spill] sm:$0xff] %v3451_v63  ;;  %947 = vrot.lane.b32.xlu1 %v3243_v26, %s2872_s21 }
 0x21e   :  { %2597 = vset.pattern.permute.xlu1 %v2890_v17 }
 0x220   :  { %v3455_v29 = vpop.permute.xlu1 %665 }
 0x221   :  { %6043 = vst [vmem:[#allocation60_spill] sm:$0xff] %v3455_v29  ;;  %954 = vperm.xlu1 %2597, %v3012_v1   ;;  %v5794_v29 = vmov 4  }
 0x224   :  { %v3458_v58 = vpop.permute.xlu1 %672 }
 0x225   :  { %6044 = vst [vmem:[#allocation61_spill] sm:$0xff] %v3458_v58  ;;  %969 = vrot.lane.b32.xlu1 %v3047_v31, %s2872_s21 }
 0x226   :  { %2599 = vset.pattern.permute.xlu1 %v6045_v62 }
 0x228   :  { %v3463_v23 = vpop.permute.xlu1 %679 }
 0x229   :  { %6046 = vst [vmem:[#allocation62_spill] sm:$0xff] %v3463_v23  ;;  %971 = vrot.lane.b32.xlu1 %v3055_v33, %s2872_s21  ;;  %v2893_v23 = vmov 94  }
 0x22a   :  { %2603 = vset.pattern.permute.xlu0 %v2893_v23 }
 0x22c   :  { %v3467_v63 = vpop.permute.xlu1 %694 }
 0x22d   :  { %6047 = vst [vmem:[#allocation63_spill] sm:$0xff] %v3467_v63  ;;  %984 = vperm.xlu1 %2599, %v3028_v15  }
 0x230   :  { %v3470_v17 = vpop.permute.xlu1 %696 }
 0x231   :  { %6048 = vst [vmem:[#allocation64_spill] sm:$0xff] %v3470_v17  ;;  %2600 = vset.pattern.permute.xlu1 %v5794_v29 }
 0x232   :  { %1002 = vperm.xlu1 %2600, %v3012_v1  }
 0x234   :  { %v3474_v58 = vpop.permute.xlu1 %709 }
 0x235   :  { %6049 = vst [vmem:[#allocation65_spill] sm:$0xff] %v3474_v58  ;;  %v3490_v58 = vpop.permute.xlu0 %500 }
 0x236   :  { %2602 = vset.pattern.permute.xlu1 %v5798_v61  ;;  %6056 = vst [vmem:[#allocation72_spill] sm:$0xff] %v3490_v58 }
 0x237   :  { %1018 = vperm.xlu1 %2602, %v3012_v1  }
 0x238   :  { %v3478_v62 = vpop.permute.xlu1 %716 }
 0x239   :  { %6050 = vst [vmem:[#allocation66_spill] sm:$0xff] %v3478_v62  ;;  %v3494_v61 = vpop.permute.xlu0 %514 }
 0x23a   :  { %6058 = vst [vmem:[#allocation74_spill] sm:$0xff] %v3494_v61 }
 0x23c   :  { %v3480_v63 = vpop.permute.xlu1 %723 }
 0x23d   :  { %6051 = vst [vmem:[#allocation67_spill] sm:$0xff] %v3480_v63  ;;  %v3500_v23 = vpop.permute.xlu0 %558 }
 0x240   :  { %v3482_v15 = vpop.permute.xlu1 %738 }
 0x241   :  { %6052 = vst [vmem:[#allocation68_spill] sm:$0xff] %v3482_v15  ;;  %v3504_v15 = vpop.permute.xlu0 %585 }
 0x244   :  { %v3484_v17 = vpop.permute.xlu1 %740 }
 0x245   :  { %6053 = vst [vmem:[#allocation69_spill] sm:$0xff] %v3484_v17 }
 0x248   :  { %v3486_v29 = vpop.permute.xlu1 %753 }
 0x249   :  { %6054 = vst [vmem:[#allocation70_spill] sm:$0xff] %v3486_v29  ;;  %v3508_v29 = vpop.permute.xlu0 %599 }
 0x24c   :  { %v3488_v57 = vpop.permute.xlu1 %760 }
 0x24d   :  { %6055 = vst [vmem:[#allocation71_spill] sm:$0xff] %v3488_v57 }
 0x250   :  { %v3492_v60 = vpop.permute.xlu1 %767 }
 0x251   :  { %6057 = vst [vmem:[#allocation73_spill] sm:$0xff] %v3492_v60  ;;  %v3514_v60 = vpop.permute.xlu0 %613 }
 0x252   :  { %6065 = vst [vmem:[#allocation81_spill] sm:$0xff] %v3514_v60 }
 0x254   :  { %v3496_v41 = vpop.permute.xlu1 %792 }
 0x255   :  { %6059 = vst [vmem:[#allocation75_spill] sm:$0xff] %v3496_v41  ;;  %v3518_v41 = vpop.permute.xlu0 %121 }
 0x258   :  { %v3498_v62 = vpop.permute.xlu1 %794 }
 0x259   :  { %6060 = vst [vmem:[#allocation76_spill] sm:$0xff] %v3498_v62 }
 0x25c   :  { %v3502_v63 = vpop.permute.xlu1 %808 }
 0x25d   :  { %6061 = vst [vmem:[#allocation77_spill] sm:$0xff] %v3502_v63  ;;  %v3524_v63 = vpop.permute.xlu0 %154 }
 0x260   :  { %v3506_v17 = vpop.permute.xlu1 %815 }
 0x261   :  { %6062 = vst [vmem:[#allocation78_spill] sm:$0xff] %v3506_v17  ;;  %v3528_v17 = vpop.permute.xlu0 %187 }
 0x264   :  { %v3510_v57 = vpop.permute.xlu1 %822 }
 0x265   :  { %6063 = vst [vmem:[#allocation79_spill] sm:$0xff] %v3510_v57  ;;  %v3532_v57 = vpop.permute.xlu0 %219 }
 0x268   :  { %v3512_v58 = vpop.permute.xlu1 %837 }
 0x269   :  { %6064 = vst [vmem:[#allocation80_spill] sm:$0xff] %v3512_v58  ;;  %v3536_v60 = vpop.permute.xlu0 %252 }
 0x26c   :  { %v3516_v61 = vpop.permute.xlu1 %839 }
 0x26d   :  { %6066 = vst [vmem:[#allocation82_spill] sm:$0xff] %v3516_v61  ;;  %v3540_v54 = vpop.permute.xlu0 %285 }
 0x270   :  { %v3520_v62 = vpop.permute.xlu1 %852 }
 0x271   :  { %6067 = vst [vmem:[#allocation83_spill] sm:$0xff] %v3520_v62 }
 0x274   :  { %v3522_v2 = vpop.permute.xlu1 %859 }
 0x275   :  { %6068 = vst [vmem:[#allocation84_spill] sm:$0xff] %v3522_v2  ;;  %v3544_v2 = vpop.permute.xlu0 %320 }
 0x276   :  { %6074 = vst [vmem:[#allocation90_spill] sm:$0xff] %v3544_v2 }
 0x278   :  { %v3526_v49 = vpop.permute.xlu1 %866 }
 0x279   :  { %6069 = vst [vmem:[#allocation85_spill] sm:$0xff] %v3526_v49  ;;  %v3548_v49 = vpop.permute.xlu0 %399 }
 0x27a   :  { %6076 = vst [vmem:[#allocation92_spill] sm:$0xff] %v3548_v49 }
 0x27c   :  { %v3530_v5 = vpop.permute.xlu1 %881 }
 0x27d   :  { %6070 = vst [vmem:[#allocation86_spill] sm:$0xff] %v3530_v5  ;;  %v3554_v48 = vpop.permute.xlu0 %443 }
 0x27e   :  { %6079 = vst [vmem:[#allocation95_spill] sm:$0xff] %v3554_v48 }
 0x280   :  { %v3534_v58 = vpop.permute.xlu1 %883 }
 0x281   :  { %6071 = vst [vmem:[#allocation87_spill] sm:$0xff] %v3534_v58  ;;  %v3558_v47 = vpop.permute.xlu0 %487 }
 0x282   :  { %6081 = vst [vmem:[#allocation97_spill] sm:$0xff] %v3558_v47 }
 0x284   :  { %v3538_v61 = vpop.permute.xlu1 %896 }
 0x285   :  { %6072 = vst [vmem:[#allocation88_spill] sm:$0xff] %v3538_v61 }
 0x288   :  { %v3542_v62 = vpop.permute.xlu1 %903 }
 0x289   :  { %6073 = vst [vmem:[#allocation89_spill] sm:$0xff] %v3542_v62  ;;  %v3564_v62 = vpop.permute.xlu0 %531 }
 0x28a   :  { %6084 = vst [vmem:[#allocation100_spill] sm:$0xff] %v3564_v62 }
 0x28c   :  { %v3546_v8 = vpop.permute.xlu1 %910 }
 0x28d   :  { %6075 = vst [vmem:[#allocation91_spill] sm:$0xff] %v3546_v8  ;;  %v3568_v8 = vpop.permute.xlu0 %643 }
 0x28e   :  { %6086 = vst [vmem:[#allocation102_spill] sm:$0xff] %v3568_v8 }
 0x290   :  { %v3550_v51 = vpop.permute.xlu1 %925 }
 0x291   :  { %6077 = vst [vmem:[#allocation93_spill] sm:$0xff] %v3550_v51  ;;  %v3572_v51 = vpop.permute.xlu0 %630 }
 0x292   :  { %6088 = vst [vmem:[#allocation104_spill] sm:$0xff] %v3572_v51 }
 0x294   :  { %v3552_v5 = vpop.permute.xlu1 %927 }
 0x295   :  { %6078 = vst [vmem:[#allocation94_spill] sm:$0xff] %v3552_v5 }
 0x298   :  { %v3556_v58 = vpop.permute.xlu1 %940 }
 0x299   :  { %6080 = vst [vmem:[#allocation96_spill] sm:$0xff] %v3556_v58  ;;  %v3578_v58 = vpop.permute.xlu0 %687 }
 0x29a   :  { %6091 = vst [vmem:[#allocation107_spill] sm:$0xff] %v3578_v58  ;;  %v5853_v58 = vmov 22  }
 0x29b   :  { %2605 = vset.pattern.permute.xlu1 %v5853_v58 }
 0x29c   :  { %v3560_v61 = vpop.permute.xlu1 %947 }
 0x29d   :  { %6082 = vst [vmem:[#allocation98_spill] sm:$0xff] %v3560_v61  ;;  %v3582_v62 = vpop.permute.xlu0 %674 }
 0x29e   :  { %6092 = vst [vmem:[#allocation108_spill] sm:$0xff] %v3582_v62 }
 0x2a0   :  { %v3562_v46 = vpop.permute.xlu1 %954 }
 0x2a1   :  { %6083 = vst [vmem:[#allocation99_spill] sm:$0xff] %v3562_v46 }
 0x2a4   :  { %v3566_v2 = vpop.permute.xlu1 %969 }
 0x2a5   :  { %6085 = vst [vmem:[#allocation101_spill] sm:$0xff] %v3566_v2 }
 0x2a8   :  { %v3570_v49 = vpop.permute.xlu1 %971 }
 0x2a9   :  { %6087 = vst [vmem:[#allocation103_spill] sm:$0xff] %v3570_v49 }
 0x2ac   :  { %v3574_v5 = vpop.permute.xlu1 %984 }
 0x2ad   :  { %6089 = vst [vmem:[#allocation105_spill] sm:$0xff] %v3574_v5  ;;  %v2894_v5 = vmov 29  }
 0x2b1   :  { %v3576_v48 = vpop.permute.xlu1 %1002 }
 0x2b2   :  { %6090 = vst [vmem:[#allocation106_spill] sm:$0xff] %v3576_v48  ;;  %v3589_v48 = vpop.permute.xlu0 %701 }
 0x2b3   :  { %6093 = vst [vmem:[#allocation109_spill] sm:$0xff] %v3589_v48 }
 0x2b6   :  { %v1019_v47 = vpop.permute.xlu1 %1018  ;;  %v3592_v2 = vpop.permute.xlu0 %128 }
 0x2b7   :  { %v1021_v61 = vmul.f32 %v1019_v47, %v3051_v32  ;;  %v1022_v46 = vmul.f32 %v1019_v47, %v3047_v31  ;;  %v1023_v49 = vmul.f32 %v1019_v47, %v3055_v33 }
 0x2b9   :  { %1029 = vrot.lane.b32.xlu0 %v1022_v46, %s2846_s13  ;;  %1027 = vrot.lane.b32.xlu1 %v1021_v61, %s2846_s13 }
 0x2ba   :  { %v3595_v46 = vpop.permute.xlu0 %718 }
 0x2bb   :  { %6094 = vst [vmem:[#allocation110_spill] sm:$0xff] %v3595_v46 }
 0x2bd   :  { %1040 = vperm.xlu0 %2603, %v3012_v1   ;;  %1031 = vrot.lane.b32.xlu1 %v1023_v49, %s2846_s13 }
 0x2be   :  { %v3597_v61 = vpop.permute.xlu0 %731 }
 0x2bf   :  { %6095 = vst [vmem:[#allocation111_spill] sm:$0xff] %v3597_v61 }
 0x2c1   :  { %2604 = vset.pattern.permute.xlu0 %v2894_v5 }
 0x2c2   :  { %657 = vperm.xlu0 %2604, %v3012_v1   ;;  %v3599_v47 = vpop.permute.xlu0 %745 }
 0x2c3   :  { %6096 = vst [vmem:[#allocation112_spill] sm:$0xff] %v3599_v47 }
 0x2c6   :  { %v3601_v62 = vpop.permute.xlu0 %194 }
 0x2c7   :  { %6097 = vst [vmem:[#allocation113_spill] sm:$0xff] %v3601_v62 }
 0x2ca   :  { %v3603_v49 = vpop.permute.xlu0 %762 }
 0x2cb   :  { %6098 = vst [vmem:[#allocation114_spill] sm:$0xff] %v3603_v49 }
 0x2ce   :  { %v3605_v48 = vpop.permute.xlu0 %775 }
 0x2cf   :  { %6099 = vst [vmem:[#allocation115_spill] sm:$0xff] %v3605_v48 }
 0x2d2   :  { %v3607_v5 = vpop.permute.xlu0 %817 }
 0x2d3   :  { %6100 = vst [vmem:[#allocation116_spill] sm:$0xff] %v3607_v5 }
 0x2d6   :  { %v3609_v1 = vpop.permute.xlu0 %830 }
 0x2d7   :  { %6101 = vst [vmem:[#allocation117_spill] sm:$0xff] %v3609_v1 }
 0x2da   :  { %v3611_v8 = vpop.permute.xlu0 %861 }
 0x2db   :  { %6102 = vst [vmem:[#allocation118_spill] sm:$0xff] %v3611_v8 }
 0x2de   :  { %v3613_v51 = vpop.permute.xlu0 %874 }
 0x2df   :  { %6103 = vst [vmem:[#allocation119_spill] sm:$0xff] %v3613_v51 }
 0x2e2   :  { %v3615_v58 = vpop.permute.xlu0 %888 }
 0x2e3   :  { %6104 = vst [vmem:[#allocation120_spill] sm:$0xff] %v3615_v58 }
 0x2e6   :  { %v3617_v46 = vpop.permute.xlu0 %382 }
 0x2e7   :  { %6105 = vst [vmem:[#allocation121_spill] sm:$0xff] %v3617_v46 }
 0x2ea   :  { %v3619_v61 = vpop.permute.xlu0 %905 }
 0x2eb   :  { %6106 = vst [vmem:[#allocation122_spill] sm:$0xff] %v3619_v61 }
 0x2ee   :  { %v3621_v47 = vpop.permute.xlu0 %918 }
 0x2ef   :  { %6107 = vst [vmem:[#allocation123_spill] sm:$0xff] %v3621_v47 }
 0x2f2   :  { %v3623_v62 = vpop.permute.xlu0 %932 }
 0x2f3   :  { %6108 = vst [vmem:[#allocation124_spill] sm:$0xff] %v3623_v62 }
 0x2f6   :  { %v3625_v49 = vpop.permute.xlu0 %426 }
 0x2f7   :  { %6109 = vst [vmem:[#allocation125_spill] sm:$0xff] %v3625_v49 }
 0x2fa   :  { %v3627_v48 = vpop.permute.xlu0 %949 }
 0x2fb   :  { %6110 = vst [vmem:[#allocation126_spill] sm:$0xff] %v3627_v48 }
 0x2fe   :  { %v3629_v5 = vpop.permute.xlu0 %962 }
 0x2ff   :  { %6111 = vst [vmem:[#allocation127_spill] sm:$0xff] %v3629_v5  ;;  %v3643_v5 = vld [vmem:[#allocation7] sm:$0xff] }
 0x302   :  { %v3631_v1 = vpop.permute.xlu0 %976 }
 0x303   :  { %6112 = vst [vmem:[#allocation128_spill] sm:$0xff] %v3631_v1  ;;  %v2896_v1 = vmov 103  }
 0x306   :  { %v3633_v8 = vpop.permute.xlu0 %1010 }
 0x307   :  { %6113 = vst [vmem:[#allocation129_spill] sm:$0xff] %v3633_v8 }
 0x32b   :  { %v3635_v51 = vpop.permute.xlu0 %1029 }
 0x32c   :  { %6114 = vst [vmem:[#allocation130_spill] sm:$0xff] %v3635_v51  ;;  %v3646_v51 = vpop.permute.xlu1 %1027 }
 0x32d   :  { %6115 = vst [vmem:[#allocation131_spill] sm:$0xff] %v3646_v51 }
 0x330   :  { %v3648_v8 = vpop.permute.xlu1 %1031 }
 0x331   :  { %6116 = vst [vmem:[#allocation132_spill] sm:$0xff] %v3648_v8 }
 0x33c   :  { %v1041_v58 = vpop.permute.xlu0 %1040 }
 0x33d   :  { %v1043_v46 = vmul.f32 %v1041_v58, %v3051_v32  ;;  %v1045_v61 = vmul.f32 %v1041_v58, %v3055_v33  ;;  %v1044_v62 = vmul.f32 %v1041_v58, %v3047_v31 }
 0x33f   :  { %1053 = vrot.lane.b32.xlu0 %v1045_v61, %s2846_s13  ;;  %1049 = vrot.lane.b32.xlu1 %v1043_v46, %s2846_s13 }
 0x343   :  { %1051 = vrot.lane.b32.xlu1 %v1044_v62, %s2846_s13 }
 0x347   :  { %1062 = vperm.xlu1 %2605, %v3643_v5  }
 0x34b   :  { %2606 = vset.pattern.permute.xlu1 %v2896_v1  ;;  %v5875_v1 = vmov 31  }
 0x3b1   :  { %v3650_v48 = vpop.permute.xlu1 %1049 }
 0x3b2   :  { %6117 = vst [vmem:[#allocation133_spill] sm:$0xff] %v3650_v48 }
 0x3b5   :  { %v3652_v47 = vpop.permute.xlu1 %1051 }
 0x3b6   :  { %6118 = vst [vmem:[#allocation134_spill] sm:$0xff] %v3652_v47 }
 0x3c6   :  { %v1063_v61 = vpop.permute.xlu1 %1062 }
 0x3c7   :  { %v1065_v46 = vmul.f32 %v1063_v61, %v3051_v32  ;;  %v1066_v58 = vmul.f32 %v1063_v61, %v3047_v31  ;;  %v1067_v62 = vmul.f32 %v1063_v61, %v3055_v33 }
 0x3c9   :  { %1073 = vrot.lane.b32.xlu1 %v1066_v58, %s2847_s14  ;;  %1071 = vrot.lane.b32.xlu0 %v1065_v46, %s2847_s14  ;;  %v2898_v46 = vmov 112  }
 0x3cd   :  { %1084 = vperm.xlu1 %2606, %v3643_v5   ;;  %1075 = vrot.lane.b32.xlu0 %v1067_v62, %s2847_s14 }
 0x3d1   :  { %2607 = vset.pattern.permute.xlu1 %v5875_v1 }
 0x43b   :  { %v3662_v8 = vpop.permute.xlu1 %1073 }
 0x43c   :  { %6119 = vst [vmem:[#allocation135_spill] sm:$0xff] %v3662_v8 }
 0x44c   :  { %v1085_v51 = vpop.permute.xlu1 %1084 }
 0x44d   :  { %v1087_v48 = vmul.f32 %v1085_v51, %v3051_v32  ;;  %v1088_v47 = vmul.f32 %v1085_v51, %v3047_v31  ;;  %v1089_v61 = vmul.f32 %v1085_v51, %v3055_v33  ;;  %v2899_v51 = vmov 40  }
 0x44f   :  { %1095 = vrot.lane.b32.xlu1 %v1088_v47, %s2847_s14  ;;  %1093 = vrot.lane.b32.xlu0 %v1087_v48, %s2847_s14 }
 0x453   :  { %1106 = vperm.xlu1 %2607, %v3643_v5   ;;  %1097 = vrot.lane.b32.xlu0 %v1089_v61, %s2847_s14 }
 0x457   :  { %2608 = vset.pattern.permute.xlu1 %v2898_v46 }
 0x4c1   :  { %v3671_v58 = vpop.permute.xlu1 %1095 }
 0x4c2   :  { %6120 = vst [vmem:[#allocation136_spill] sm:$0xff] %v3671_v58 }
 0x4d2   :  { %v1107_v62 = vpop.permute.xlu1 %1106 }
 0x4d3   :  { %v1109_v1 = vmul.f32 %v1107_v62, %v3051_v32  ;;  %v1110_v8 = vmul.f32 %v1107_v62, %v3047_v31  ;;  %v1111_v48 = vmul.f32 %v1107_v62, %v3055_v33 }
 0x4d5   :  { %1117 = vrot.lane.b32.xlu1 %v1110_v8, %s2848_s15  ;;  %1115 = vrot.lane.b32.xlu0 %v1109_v1, %s2848_s15  ;;  %v2900_v1 = vmov 121  }
 0x4d9   :  { %1128 = vperm.xlu1 %2608, %v3643_v5   ;;  %1119 = vrot.lane.b32.xlu0 %v1111_v48, %s2848_s15 }
 0x4dd   :  { %2609 = vset.pattern.permute.xlu1 %v2899_v51 }
 0x547   :  { %v3680_v47 = vpop.permute.xlu1 %1117 }
 0x548   :  { %6121 = vst [vmem:[#allocation137_spill] sm:$0xff] %v3680_v47 }
 0x558   :  { %v1129_v61 = vpop.permute.xlu1 %1128 }
 0x559   :  { %v1131_v46 = vmul.f32 %v1129_v61, %v3051_v32  ;;  %v1132_v58 = vmul.f32 %v1129_v61, %v3047_v31  ;;  %v1133_v8 = vmul.f32 %v1129_v61, %v3055_v33  ;;  %v2901_v61 = vmov 49  }
 0x55b   :  { %1139 = vrot.lane.b32.xlu1 %v1132_v58, %s2848_s15  ;;  %1137 = vrot.lane.b32.xlu0 %v1131_v46, %s2848_s15 }
 0x55f   :  { %1150 = vperm.xlu1 %2609, %v3643_v5   ;;  %1141 = vrot.lane.b32.xlu0 %v1133_v8, %s2848_s15 }
 0x563   :  { %2610 = vset.pattern.permute.xlu1 %v2900_v1 }
 0x5cd   :  { %v3689_v62 = vpop.permute.xlu1 %1139 }
 0x5ce   :  { %6122 = vst [vmem:[#allocation138_spill] sm:$0xff] %v3689_v62 }
 0x5de   :  { %v1151_v48 = vpop.permute.xlu1 %1150 }
 0x5df   :  { %v1153_v51 = vmul.f32 %v1151_v48, %v3051_v32  ;;  %v1154_v47 = vmul.f32 %v1151_v48, %v3047_v31  ;;  %v1155_v58 = vmul.f32 %v1151_v48, %v3055_v33  ;;  %v6124_v48 = vmov 2  }
 0x5e1   :  { %1161 = vrot.lane.b32.xlu1 %v1154_v47, %s2819_s1  ;;  %1159 = vrot.lane.b32.xlu0 %v1153_v51, %s2819_s1 }
 0x5e5   :  { %1172 = vperm.xlu1 %2610, %v3643_v5   ;;  %1163 = vrot.lane.b32.xlu0 %v1155_v58, %s2819_s1 }
 0x5e9   :  { %2611 = vset.pattern.permute.xlu1 %v2901_v61 }
 0x653   :  { %v3698_v46 = vpop.permute.xlu1 %1161 }
 0x654   :  { %6123 = vst [vmem:[#allocation139_spill] sm:$0xff] %v3698_v46  ;;  %v3711_v46 = vld [vmem:[#allocation2 + $0x8] sm:$0xff] }
 0x664   :  { %v1173_v8 = vpop.permute.xlu1 %1172 }
 0x665   :  { %v1175_v1 = vmul.f32 %v1173_v8, %v3051_v32  ;;  %v1176_v62 = vmul.f32 %v1173_v8, %v3047_v31  ;;  %v1177_v47 = vmul.f32 %v1173_v8, %v3055_v33  ;;  %v3717_v8 = vld [vmem:[#allocation7 + $0x8] sm:$0xff] }
 0x667   :  { %1183 = vrot.lane.b32.xlu1 %v1176_v62, %s2819_s1  ;;  %1181 = vrot.lane.b32.xlu0 %v1175_v1, %s2819_s1  ;;  %v2902_v1 = vmov 58  }
 0x66b   :  { %1194 = vperm.xlu1 %2611, %v3643_v5   ;;  %1185 = vrot.lane.b32.xlu0 %v1177_v47, %s2819_s1 }
 0x66f   :  { %2612 = vset.pattern.permute.xlu1 %v6124_v48  ;;  %v3723_v48 = vld [vmem:[#allocation2] sm:$0xff] }
 0x6d9   :  { %v3708_v51 = vpop.permute.xlu1 %1183 }
 0x6da   :  { %6125 = vst [vmem:[#allocation140_spill] sm:$0xff] %v3708_v51 }
 0x6ea   :  { %v1195_v58 = vpop.permute.xlu1 %1194 }
 0x6eb   :  { %v1197_v61 = vmul.f32 %v1195_v58, %v3051_v32  ;;  %v1198_v31 = vmul.f32 %v3711_v46, %v1195_v58  ;;  %v1199_v62 = vmul.f32 %v1195_v58, %v3055_v33  ;;  %v3729_v33 = vld [vmem:[#allocation2 + $0x10] sm:$0xff] }
 0x6ed   :  { %1205 = vrot.lane.b32.xlu1 %v1198_v31, %s2849_s16  ;;  %1203 = vrot.lane.b32.xlu0 %v1197_v61, %s2849_s16  ;;  %v6127_v61 = vmov 11  }
 0x6f1   :  { %1216 = vperm.xlu1 %2612, %v3717_v8   ;;  %1207 = vrot.lane.b32.xlu0 %v1199_v62, %s2849_s16 }
 0x6f5   :  { %2613 = vset.pattern.permute.xlu1 %v2902_v1 }
 0x75f   :  { %v3721_v47 = vpop.permute.xlu1 %1205 }
 0x760   :  { %6126 = vst [vmem:[#allocation141_spill] sm:$0xff] %v3721_v47 }
 0x770   :  { %v1217_v32 = vpop.permute.xlu1 %1216 }
 0x771   :  { %v1219_v51 = vmul.f32 %v3723_v48, %v1217_v32  ;;  %v1220_v31 = vmul.f32 %v3711_v46, %v1217_v32  ;;  %v1221_v58 = vmul.f32 %v3729_v33, %v1217_v32  ;;  %v2903_v32 = vmov 67  }
 0x773   :  { %1227 = vrot.lane.b32.xlu1 %v1220_v31, %s2849_s16  ;;  %1225 = vrot.lane.b32.xlu0 %v1219_v51, %s2849_s16 }
 0x777   :  { %1238 = vperm.xlu1 %2613, %v3643_v5   ;;  %1229 = vrot.lane.b32.xlu0 %v1221_v58, %s2849_s16 }
 0x77b   :  { %2614 = vset.pattern.permute.xlu1 %v6127_v61 }
 0x7e5   :  { %v3735_v62 = vpop.permute.xlu1 %1227 }
 0x7e6   :  { %6128 = vst [vmem:[#allocation142_spill] sm:$0xff] %v3735_v62 }
 0x7f6   :  { %v1239_v1 = vpop.permute.xlu1 %1238 }
 0x7f7   :  { %v1241_v47 = vmul.f32 %v3723_v48, %v1239_v1  ;;  %v1242_v49 = vmul.f32 %v3711_v46, %v1239_v1  ;;  %v1243_v51 = vmul.f32 %v3729_v33, %v1239_v1 }
 0x7f9   :  { %1249 = vrot.lane.b32.xlu1 %v1242_v49, %s2850_s17  ;;  %1247 = vrot.lane.b32.xlu0 %v1241_v47, %s2850_s17  ;;  %v6130_v47 = vmov 20  }
 0x7fd   :  { %1260 = vperm.xlu1 %2614, %v3717_v8   ;;  %1251 = vrot.lane.b32.xlu0 %v1243_v51, %s2850_s17 }
 0x801   :  { %2615 = vset.pattern.permute.xlu1 %v2903_v32 }
 0x86b   :  { %v3744_v31 = vpop.permute.xlu1 %1249 }
 0x86c   :  { %6129 = vst [vmem:[#allocation143_spill] sm:$0xff] %v3744_v31 }
 0x87c   :  { %v1261_v58 = vpop.permute.xlu1 %1260 }
 0x87d   :  { %v1263_v61 = vmul.f32 %v3723_v48, %v1261_v58  ;;  %v1264_v62 = vmul.f32 %v3711_v46, %v1261_v58  ;;  %v1265_v49 = vmul.f32 %v3729_v33, %v1261_v58  ;;  %v2904_v58 = vmov 76  }
 0x87f   :  { %1271 = vrot.lane.b32.xlu1 %v1264_v62, %s2850_s17  ;;  %1269 = vrot.lane.b32.xlu0 %v1263_v61, %s2850_s17 }
 0x883   :  { %1282 = vperm.xlu1 %2615, %v3643_v5   ;;  %1273 = vrot.lane.b32.xlu0 %v1265_v49, %s2850_s17 }
 0x887   :  { %2616 = vset.pattern.permute.xlu1 %v6130_v47 }
 0x8f1   :  { %v3754_v1 = vpop.permute.xlu1 %1271 }
 0x8f2   :  { %6131 = vst [vmem:[#allocation144_spill] sm:$0xff] %v3754_v1 }
 0x902   :  { %v1283_v51 = vpop.permute.xlu1 %1282 }
 0x903   :  { %v1285_v32 = vmul.f32 %v3723_v48, %v1283_v51  ;;  %v1286_v31 = vmul.f32 %v3711_v46, %v1283_v51  ;;  %v1287_v62 = vmul.f32 %v3729_v33, %v1283_v51  ;;  %v3772_v51 = vpop.permute.xlu0 %657 }
 0x904   :  { %6133 = vst [vmem:[#allocation146_spill] sm:$0xff] %v3772_v51  ;;  %v6215_v51 = vld [vmem:[#allocation45_spill] sm:$0xff] }
 0x905   :  { %1293 = vrot.lane.b32.xlu1 %v1286_v31, %s2851_s18  ;;  %1291 = vrot.lane.b32.xlu0 %v1285_v32, %s2851_s18  ;;  %v2906_v32 = vmov 86  }
 0x909   :  { %1304 = vperm.xlu1 %2616, %v3717_v8   ;;  %1295 = vrot.lane.b32.xlu0 %v1287_v62, %s2851_s18  ;;  %v3777_v62 = vpop.permute.xlu0 %1053 }
 0x90a   :  { %6134 = vst [vmem:[#allocation147_spill] sm:$0xff] %v3777_v62 }
 0x90d   :  { %2617 = vset.pattern.permute.xlu1 %v2904_v58  ;;  %v3783_v58 = vpop.permute.xlu0 %1071 }
 0x90e   :  { %6135 = vst [vmem:[#allocation148_spill] sm:$0xff] %v3783_v58  ;;  %v2915_v58 = vmov 122  }
 0x977   :  { %v3763_v61 = vpop.permute.xlu1 %1293 }
 0x978   :  { %6132 = vst [vmem:[#allocation145_spill] sm:$0xff] %v3763_v61  ;;  %v2911_v61 = vmov 104  }
 0x988   :  { %v1305_v49 = vpop.permute.xlu1 %1304 }
 0x989   :  { %v1307_v47 = vmul.f32 %v3723_v48, %v1305_v49  ;;  %v1308_v1 = vmul.f32 %v3711_v46, %v1305_v49  ;;  %v1309_v31 = vmul.f32 %v3729_v33, %v1305_v49  ;;  %v3791_v49 = vpop.permute.xlu0 %1075 }
 0x98a   :  { %6136 = vst [vmem:[#allocation149_spill] sm:$0xff] %v3791_v49 }
 0x98b   :  { %1315 = vrot.lane.b32.xlu1 %v1308_v1, %s2851_s18  ;;  %1313 = vrot.lane.b32.xlu0 %v1307_v47, %s2851_s18  ;;  %v2907_v1 = vmov 95   ;;  %v5888_v47 = vmov 14  }
 0x98f   :  { %1326 = vperm.xlu1 %2617, %v3643_v5   ;;  %1317 = vrot.lane.b32.xlu0 %v1309_v31, %s2851_s18  ;;  %v2909_v31 = vmov 113  }
 0x993   :  { %1345 = vrot.lane.b32.xlu1 %v3723_v48, %s2905_s22  ;;  %1334 = vperm.xlu0 %2604, %v3717_v8  }
 0x994   :  { %2618 = vset.pattern.permute.xlu1 %v2906_v32  ;;  %v3796_v32 = vpop.permute.xlu0 %1093 }
 0x995   :  { %6137 = vst [vmem:[#allocation150_spill] sm:$0xff] %v3796_v32 }
 0x997   :  { %1347 = vrot.lane.b32.xlu1 %v3711_v46, %s2905_s22  ;;  %1370 = vrot.lane.b32.xlu0 %v3186_v13, %s2905_s22 }
 0x998   :  { %2620 = vset.pattern.permute.xlu0 %v2907_v1  ;;  %v2910_v1 = vmov 41   ;;  %v3801_v49 = vpop.permute.xlu0 %1097 }
 0x999   :  { %6138 = vst [vmem:[#allocation151_spill] sm:$0xff] %v3801_v49 }
 0x99b   :  { %1361 = vperm.xlu1 %2618, %v3643_v5   ;;  %1383 = vperm.xlu0 %2620, %v3643_v5  }
 0x99f   :  { %1368 = vrot.lane.b32.xlu1 %v3183_v12, %s2905_s22  ;;  %1414 = vrot.lane.b32.xlu0 %v3208_v28, %s2905_s22 }
 0x9a0   :  { %2619 = vset.pattern.permute.xlu1 %v5888_v47  ;;  %2623 = vset.pattern.permute.xlu0 %v2909_v31  ;;  %v2912_v31 = vmov 3   ;;  %v3806_v47 = vpop.permute.xlu0 %1115 }
 0x9a1   :  { %6139 = vst [vmem:[#allocation152_spill] sm:$0xff] %v3806_v47  ;;  %v2914_v47 = vmov 59  }
 0x9a3   :  { %1375 = vperm.xlu1 %2619, %v3643_v5   ;;  %1427 = vperm.xlu0 %2623, %v3643_v5  }
 0x9a7   :  { %1390 = vrot.lane.b32.xlu1 %v3193_v19, %s2905_s22  ;;  %2624 = vset.pattern.permute.xlu0 %v2910_v1  ;;  %v5889_v1 = vmov 32  }
 0x9a8   :  { %1441 = vperm.xlu0 %2624, %v3643_v5   ;;  %2621 = vset.pattern.permute.xlu1 %v2911_v61  ;;  %v3813_v61 = vpop.permute.xlu0 %1119 }
 0x9a9   :  { %6140 = vst [vmem:[#allocation153_spill] sm:$0xff] %v3813_v61  ;;  %v2916_v61 = vmov 21  }
 0x9ab   :  { %1392 = vrot.lane.b32.xlu1 %v3198_v21, %s2905_s22 }
 0x9ac   :  { %2625 = vset.pattern.permute.xlu0 %v2912_v31  ;;  %v3818_v31 = vpop.permute.xlu0 %1137 }
 0x9ad   :  { %800 = vperm.xlu0 %2625, %v3643_v5   ;;  %6141 = vst [vmem:[#allocation154_spill] sm:$0xff] %v3818_v31  ;;  %v2928_v31 = vmov 69  }
 0x9af   :  { %1405 = vperm.xlu1 %2621, %v3643_v5  }
 0x9b0   :  { %v3823_v49 = vpop.permute.xlu0 %1141 }
 0x9b1   :  { %1458 = vrot.lane.b32.xlu0 %v3228_v7, %s2905_s22  ;;  %6142 = vst [vmem:[#allocation155_spill] sm:$0xff] %v3823_v49 }
 0x9b3   :  { %1412 = vrot.lane.b32.xlu1 %v3203_v25, %s2905_s22 }
 0x9b4   :  { %2622 = vset.pattern.permute.xlu1 %v5889_v1  ;;  %v3828_v1 = vpop.permute.xlu0 %1159 }
 0x9b5   :  { %1471 = vperm.xlu0 %2625, %v3717_v8   ;;  %6143 = vst [vmem:[#allocation156_spill] sm:$0xff] %v3828_v1  ;;  %v6146_v1 = vmov 12  }
 0x9b7   :  { %1419 = vperm.xlu1 %2622, %v3643_v5  }
 0x9b9   :  { %2628 = vset.pattern.permute.xlu0 %v2914_v47  ;;  %v2917_v47 = vmov 50  }
 0x9ba   :  { %1485 = vperm.xlu0 %2628, %v3643_v5  }
 0x9bb   :  { %1434 = vrot.lane.b32.xlu1 %v3213_v35, %s2905_s22 }
 0x9bc   :  { %2626 = vset.pattern.permute.xlu1 %v2915_v58  ;;  %v3836_v58 = vpop.permute.xlu0 %1163 }
 0x9bd   :  { %6144 = vst [vmem:[#allocation157_spill] sm:$0xff] %v3836_v58  ;;  %v2920_v58 = vmov 87  }
 0x9be   :  { %2629 = vset.pattern.permute.xlu0 %v2916_v61  ;;  %v2918_v61 = vmov 77  }
 0x9bf   :  { %1436 = vrot.lane.b32.xlu1 %v3218_v39, %s2905_s22  ;;  %844 = vperm.xlu0 %2629, %v3643_v5  }
 0x9c0   :  { %v3839_v49 = vpop.permute.xlu0 %1181 }
 0x9c1   :  { %6145 = vst [vmem:[#allocation158_spill] sm:$0xff] %v3839_v49  ;;  %v5890_v49 = vmov 15  }
 0x9c3   :  { %1449 = vperm.xlu1 %2626, %v3643_v5   ;;  %1502 = vrot.lane.b32.xlu0 %v3248_v30, %s2905_s22 }
 0x9c7   :  { %1456 = vrot.lane.b32.xlu1 %v3223_v55, %s2905_s22  ;;  %1515 = vperm.xlu0 %2629, %v3717_v8  }
 0x9c8   :  { %2627 = vset.pattern.permute.xlu1 %v2917_v47  ;;  %v3847_v47 = vpop.permute.xlu0 %1185 }
 0x9c9   :  { %6147 = vst [vmem:[#allocation159_spill] sm:$0xff] %v3847_v47  ;;  %v2923_v47 = vmov 105  }
 0x9cb   :  { %1463 = vperm.xlu1 %2627, %v3643_v5   ;;  %2632 = vset.pattern.permute.xlu0 %v2918_v61 }
 0x9cc   :  { %1529 = vperm.xlu0 %2632, %v3643_v5   ;;  %v3852_v61 = vpop.permute.xlu0 %1203 }
 0x9cd   :  { %6148 = vst [vmem:[#allocation160_spill] sm:$0xff] %v3852_v61 }
 0x9cf   :  { %1478 = vrot.lane.b32.xlu1 %v3233_v14, %s2905_s22 }
 0x9d0   :  { %1556 = vrot.lane.b32.xlu0 %v3711_v46, %s2919_s23  ;;  %2630 = vset.pattern.permute.xlu1 %v6146_v1  ;;  %v3859_v1 = vpop.permute.xlu0 %1207 }
 0x9d1   :  { %2635 = vset.pattern.permute.xlu0 %v2920_v58  ;;  %6149 = vst [vmem:[#allocation161_spill] sm:$0xff] %v3859_v1  ;;  %v2922_v58 = vmov 68   ;;  %v2924_v1 = vmov 123  }
 0x9d3   :  { %1480 = vrot.lane.b32.xlu1 %v3238_v20, %s2905_s22 }
 0x9d4   :  { %1570 = vperm.xlu0 %2635, %v3643_v5   ;;  %v3864_v61 = vpop.permute.xlu0 %1225 }
 0x9d5   :  { %6150 = vst [vmem:[#allocation162_spill] sm:$0xff] %v3864_v61  ;;  %v2925_v61 = vmov 51  }
 0x9d7   :  { %1493 = vperm.xlu1 %2630, %v3717_v8  }
 0x9d8   :  { %2636 = vset.pattern.permute.xlu0 %v5890_v49  ;;  %v6151_v49 = vmov 30  }
 0x9d9   :  { %1584 = vperm.xlu0 %2636, %v3643_v5  }
 0x9db   :  { %1500 = vrot.lane.b32.xlu1 %v3243_v26, %s2905_s22 }
 0x9dc   :  { %2631 = vset.pattern.permute.xlu1 %v2922_v58  ;;  %v3872_v58 = vpop.permute.xlu0 %1229 }
 0x9dd   :  { %1601 = vrot.lane.b32.xlu0 %v3198_v21, %s2919_s23  ;;  %6152 = vst [vmem:[#allocation163_spill] sm:$0xff] %v3872_v58  ;;  %v5891_v58 = vmov 6  }
 0x9de   :  { %2639 = vset.pattern.permute.xlu0 %v2923_v47 }
 0x9df   :  { %1507 = vperm.xlu1 %2631, %v3643_v5  }
 0x9e0   :  { %v3877_v47 = vpop.permute.xlu0 %1247 }
 0x9e1   :  { %1614 = vperm.xlu0 %2639, %v3643_v5   ;;  %6153 = vst [vmem:[#allocation164_spill] sm:$0xff] %v3877_v47 }
 0x9e3   :  { %1522 = vrot.lane.b32.xlu1 %v3711_v46, %s2905_s22 }
 0x9e4   :  { %2633 = vset.pattern.permute.xlu1 %v6151_v49  ;;  %v3883_v49 = vpop.permute.xlu0 %1251 }
 0x9e5   :  { %1645 = vrot.lane.b32.xlu0 %v3218_v39, %s2919_s23  ;;  %6154 = vst [vmem:[#allocation165_spill] sm:$0xff] %v3883_v49 }
 0x9e6   :  { %2642 = vset.pattern.permute.xlu0 %v2924_v1  ;;  %v6155_v1 = vmov 13  }
 0x9e7   :  { %1524 = vrot.lane.b32.xlu1 %v3729_v33, %s2905_s22 }
 0x9e8   :  { %v3890_v47 = vpop.permute.xlu0 %1269 }
 0x9e9   :  { %1658 = vperm.xlu0 %2642, %v3643_v5   ;;  %6156 = vst [vmem:[#allocation166_spill] sm:$0xff] %v3890_v47  ;;  %v2933_v47 = vmov 25  }
 0x9eb   :  { %1537 = vperm.xlu1 %2633, %v3717_v8  }
 0x9ec   :  { %v3895_v49 = vpop.permute.xlu0 %1273 }
 0x9ed   :  { %2643 = vset.pattern.permute.xlu0 %v2925_v61  ;;  %v2927_v61 = vmov 96   ;;  %6157 = vst [vmem:[#allocation167_spill] sm:$0xff] %v3895_v49 }
 0x9ee   :  { %1672 = vperm.xlu0 %2643, %v3643_v5  }
 0x9ef   :  { %1554 = vrot.lane.b32.xlu1 %v3723_v48, %s2919_s23 }
 0x9f0   :  { %2634 = vset.pattern.permute.xlu1 %v5891_v58  ;;  %v3900_v58 = vpop.permute.xlu0 %1291 }
 0x9f1   :  { %6158 = vst [vmem:[#allocation168_spill] sm:$0xff] %v3900_v58  ;;  %v6161_v58 = vmov 7  }
 0x9f2   :  { %1689 = vrot.lane.b32.xlu0 %v3238_v20, %s2919_s23 }
 0x9f3   :  { %1562 = vperm.xlu1 %2634, %v3643_v5   ;;  %2646 = vset.pattern.permute.xlu0 %v6155_v1  ;;  %v6159_v1 = vmov 31  }
 0x9f6   :  { %1702 = vperm.xlu0 %2646, %v3717_v8  }
 0x9f7   :  { %1577 = vrot.lane.b32.xlu1 %v3183_v12, %s2919_s23 }
 0x9f8   :  { %2637 = vset.pattern.permute.xlu1 %v2927_v61  ;;  %v5892_v61 = vmov 24  }
 0x9fa   :  { %2647 = vset.pattern.permute.xlu0 %v2928_v31  ;;  %v3909_v31 = vpop.permute.xlu0 %1295 }
 0x9fb   :  { %1579 = vrot.lane.b32.xlu1 %v3186_v13, %s2919_s23  ;;  %1716 = vperm.xlu0 %2647, %v3643_v5   ;;  %6160 = vst [vmem:[#allocation169_spill] sm:$0xff] %v3909_v31 }
 0x9fe   :  { %v3914_v49 = vpop.permute.xlu0 %1313 }
 0x9ff   :  { %1592 = vperm.xlu1 %2637, %v3643_v5   ;;  %1733 = vrot.lane.b32.xlu0 %v3729_v33, %s2919_s23  ;;  %6162 = vst [vmem:[#allocation170_spill] sm:$0xff] %v3914_v49  ;;  %v3917_v33 = vpop.permute.xlu1 %1315 }
 0xa00   :  { %2650 = vset.pattern.permute.xlu0 %v6159_v1  ;;  %6163 = vst [vmem:[#allocation171_spill] sm:$0xff] %v3917_v33  ;;  %v2931_v1 = vmov 114  }
 0xa02   :  { %v3923_v31 = vpop.permute.xlu0 %1317 }
 0xa03   :  { %1599 = vrot.lane.b32.xlu1 %v3193_v19, %s2919_s23  ;;  %1746 = vperm.xlu0 %2650, %v3717_v8   ;;  %6164 = vst [vmem:[#allocation172_spill] sm:$0xff] %v3923_v31 }
 0xa04   :  { %2638 = vset.pattern.permute.xlu1 %v5892_v61  ;;  %v2932_v61 = vmov 97  }
 0xa07   :  { %1606 = vperm.xlu1 %2638, %v3643_v5   ;;  %2651 = vset.pattern.permute.xlu0 %v6161_v58 }
 0xa08   :  { %1771 = vperm.xlu0 %2651, %v3643_v5  }
 0xa0b   :  { %1621 = vrot.lane.b32.xlu1 %v3203_v25, %s2919_s23 }
 0xa0c   :  { %1788 = vrot.lane.b32.xlu0 %v3186_v13, %s2930_s24  ;;  %2640 = vset.pattern.permute.xlu1 %v2931_v1 }
 0xa0d   :  { %2654 = vset.pattern.permute.xlu0 %v2932_v61 }
 0xa0e   :  { %v3925_v58 = vpop.permute.xlu1 %1326 }
 0xa0f   :  { %6165 = vst [vmem:[#allocation173_spill] sm:$0xff] %v3925_v58  ;;  %1623 = vrot.lane.b32.xlu1 %v3208_v28, %s2919_s23  ;;  %v2934_v58 = vmov 42  }
 0xa10   :  { %1801 = vperm.xlu0 %2654, %v3643_v5  }
 0xa12   :  { %v3930_v49 = vpop.permute.xlu1 %1345  ;;  %v3932_v33 = vpop.permute.xlu0 %1334 }
 0xa13   :  { %6166 = vst [vmem:[#allocation174_spill] sm:$0xff] %v3930_v49  ;;  %6167 = vst [vmem:[#allocation175_spill] sm:$0xff] %v3932_v33  ;;  %1636 = vperm.xlu1 %2640, %v3643_v5  }
 0xa14   :  { %2655 = vset.pattern.permute.xlu0 %v2933_v47 }
 0xa15   :  { %357 = vperm.xlu0 %2655, %v3717_v8  }
 0xa16   :  { %v3936_v61 = vpop.permute.xlu1 %1347  ;;  %v3938_v1 = vpop.permute.xlu0 %1370 }
 0xa17   :  { %6168 = vst [vmem:[#allocation176_spill] sm:$0xff] %v3936_v61  ;;  %6169 = vst [vmem:[#allocation177_spill] sm:$0xff] %v3938_v1  ;;  %1643 = vrot.lane.b32.xlu1 %v3213_v35, %s2919_s23  ;;  %v2935_v61 = vmov 115  }
 0xa18   :  { %2641 = vset.pattern.permute.xlu1 %v2934_v58  ;;  %v6174_v58 = vmov 4  }
 0xa19   :  { %1815 = vperm.xlu0 %2655, %v3643_v5  }
 0xa1a   :  { %v3943_v31 = vpop.permute.xlu1 %1361  ;;  %v3945_v33 = vpop.permute.xlu0 %1383 }
 0xa1b   :  { %6170 = vst [vmem:[#allocation178_spill] sm:$0xff] %v3943_v31  ;;  %6171 = vst [vmem:[#allocation179_spill] sm:$0xff] %v3945_v33  ;;  %1650 = vperm.xlu1 %2641, %v3643_v5  }
 0xa1d   :  { %1832 = vrot.lane.b32.xlu0 %v3208_v28, %s2930_s24  ;;  %v2936_v28 = vmov 43  }
 0xa1e   :  { %v3950_v47 = vpop.permute.xlu1 %1368  ;;  %v3952_v49 = vpop.permute.xlu0 %1414  ;;  %2658 = vset.pattern.permute.xlu0 %v2935_v61 }
 0xa1f   :  { %6172 = vst [vmem:[#allocation180_spill] sm:$0xff] %v3950_v47  ;;  %6173 = vst [vmem:[#allocation181_spill] sm:$0xff] %v3952_v49  ;;  %1665 = vrot.lane.b32.xlu1 %v3223_v55, %s2919_s23  ;;  %v2937_v49 = vmov 5  }
 0xa20   :  { %2644 = vset.pattern.permute.xlu1 %v6174_v58 }
 0xa21   :  { %1845 = vperm.xlu0 %2658, %v3643_v5  }
 0xa22   :  { %v3958_v31 = vpop.permute.xlu1 %1375  ;;  %v3960_v33 = vpop.permute.xlu0 %1427 }
 0xa23   :  { %6175 = vst [vmem:[#allocation182_spill] sm:$0xff] %v3958_v31  ;;  %6176 = vst [vmem:[#allocation183_spill] sm:$0xff] %v3960_v33  ;;  %1667 = vrot.lane.b32.xlu1 %v3228_v7, %s2919_s23 }
 0xa25   :  { %2659 = vset.pattern.permute.xlu0 %v2936_v28  ;;  %v2938_v28 = vmov 60  }
 0xa26   :  { %v3964_v13 = vpop.permute.xlu1 %1390  ;;  %1859 = vperm.xlu0 %2659, %v3643_v5  }
 0xa27   :  { %6177 = vst [vmem:[#allocation184_spill] sm:$0xff] %v3964_v13  ;;  %1680 = vperm.xlu1 %2644, %v3717_v8   ;;  %v3968_v61 = vpop.permute.xlu0 %1441 }
 0xa28   :  { %6178 = vst [vmem:[#allocation185_spill] sm:$0xff] %v3968_v61 }
 0xa2a   :  { %v3970_v58 = vpop.permute.xlu1 %1392  ;;  %2660 = vset.pattern.permute.xlu0 %v2937_v49 }
 0xa2b   :  { %6179 = vst [vmem:[#allocation186_spill] sm:$0xff] %v3970_v58  ;;  %1687 = vrot.lane.b32.xlu1 %v3233_v14, %s2919_s23  ;;  %1353 = vperm.xlu0 %2660, %v3643_v5   ;;  %v5917_v58 = vlaneseq }
 0xa2c   :  { %v3975_v31 = vpop.permute.xlu0 %800  ;;  %2645 = vset.pattern.permute.xlu1 %v2938_v28 }
 0xa2d   :  { %6180 = vst [vmem:[#allocation187_spill] sm:$0xff] %v3975_v31  ;;  %v6185_v31 = vmov 22  }
 0xa2e   :  { %v3977_v33 = vpop.permute.xlu1 %1405 }
 0xa2f   :  { %6181 = vst [vmem:[#allocation188_spill] sm:$0xff] %v3977_v33  ;;  %1694 = vperm.xlu1 %2645, %v3643_v5   ;;  %1876 = vrot.lane.b32.xlu0 %v3228_v7, %s2930_s24  ;;  %v2939_v33 = vmov 61  }
 0xa30   :  { %v3982_v61 = vpop.permute.xlu0 %1458 }
 0xa31   :  { %6182 = vst [vmem:[#allocation189_spill] sm:$0xff] %v3982_v61 }
 0xa32   :  { %v3984_v13 = vpop.permute.xlu1 %1412 }
 0xa33   :  { %6183 = vst [vmem:[#allocation190_spill] sm:$0xff] %v3984_v13  ;;  %1709 = vrot.lane.b32.xlu1 %v3243_v26, %s2919_s23  ;;  %1889 = vperm.xlu0 %2660, %v3717_v8  }
 0xa34   :  { %v3989_v49 = vpop.permute.xlu0 %1471  ;;  %2648 = vset.pattern.permute.xlu1 %v6185_v31  ;;  %v2940_v31 = vmov 17  }
 0xa35   :  { %6184 = vst [vmem:[#allocation191_spill] sm:$0xff] %v3989_v49  ;;  %v4003_v49 = vand.u32 127, %v5917_v58 }
 0xa36   :  { %v3992_v28 = vpop.permute.xlu1 %1419 }
 0xa37   :  { %6186 = vst [vmem:[#allocation192_spill] sm:$0xff] %v3992_v28  ;;  %1711 = vrot.lane.b32.xlu1 %v3248_v30, %s2919_s23  ;;  %2663 = vset.pattern.permute.xlu0 %v2939_v33  ;;  %vm86_vm8 = vcmp.lt.s32.totalorder %v4003_v49, 4  ;;  %v2941_v33 = vmov 78   ;;  %vm378_vm9 = vcmp.lt.s32.totalorder %v4003_v49, 3  ;;  %vm587_vm10 = vcmp.lt.s32.totalorder %v4003_v49, 2 }
 0xa38   :  { %1903 = vperm.xlu0 %2663, %v3643_v5   ;;  %v556_v1 = vsel %vm378_vm9, %v3317_v53, %v3312_v22  ;;  %vm1349_vm11 = vcmp.lt.s32.totalorder %v4003_v49, 127  ;;  %vm1558_vm12 = vcmp.lt.s32.totalorder %v4003_v49, 126  ;;  %vm796_vm14 = vcmp.lt.s32.totalorder %v4003_v49, 1 }
 0xa39   :  { %v3997_v61 = vpop.permute.xlu0 %1485 }
 0xa3a   :  { %6187 = vst [vmem:[#allocation193_spill] sm:$0xff] %v3997_v61  ;;  %v3999_v13 = vpop.permute.xlu1 %1434 }
 0xa3b   :  { %6188 = vst [vmem:[#allocation194_spill] sm:$0xff] %v3999_v13  ;;  %1724 = vperm.xlu1 %2648, %v3717_v8  }
 0xa3c   :  { %2664 = vset.pattern.permute.xlu0 %v2940_v31  ;;  %v87_v31 = vsel %vm86_vm8, %v3176_v3, %v3268_v43 }
 0xa3d   :  { %544 = vperm.xlu0 %2664, %v3717_v8   ;;  %v4032_v13 = vmul.f32 %v3123_v44, %v87_v31  ;;  %v104_v47 = vmul.f32 %v3092_v34, %v87_v31  ;;  %v4082_v31 = vsel %vm86_vm8, %v3275_v50, %v3179_v6 }
 0xa3e   :  { %v4006_v28 = vpop.permute.xlu1 %1436  ;;  %v4008_v30 = vpop.permute.xlu0 %844  ;;  %6194 = vst [vmem:[#allocation200_spill] sm:$0xff] %v4082_v31 }
 0xa3f   :  { %6189 = vst [vmem:[#allocation195_spill] sm:$0xff] %v4006_v28  ;;  %6190 = vst [vmem:[#allocation196_spill] sm:$0xff] %v4008_v30  ;;  %1731 = vrot.lane.b32.xlu1 %v3711_v46, %s2919_s23  ;;  %v88_v30 = vsel %vm86_vm8, %v3268_v43, %v3176_v3  ;;  %v4039_v28 = vsel %vm86_vm8, %v3351_v9, %v3518_v41 }
 0xa40   :  { %2649 = vset.pattern.permute.xlu1 %v2941_v33  ;;  %v2942_v33 = vmov 107  }
 0xa41   :  { %2002 = vperm.xlu0 %2664, %v3643_v5  }
 0xa42   :  { %v4014_v61 = vpop.permute.xlu1 %1449  ;;  %v4016_v58 = vpop.permute.xlu0 %1502 }
 0xa43   :  { %6191 = vst [vmem:[#allocation197_spill] sm:$0xff] %v4014_v61  ;;  %1738 = vperm.xlu1 %2649, %v3643_v5   ;;  %v4029_v61 = vmul.f32 %v3123_v44, %v88_v30  ;;  %v4052_v44 = vsel %vm86_vm8, %v3518_v41, %v3351_v9  ;;  %v159_v9 = vsel %vm86_vm8, %v3355_v27, %v3524_v63  ;;  %v2943_v41 = vmov 88  }
 0xa45   :  { %2669 = vset.pattern.permute.xlu0 %v2942_v33  ;;  %v103_v33 = vmul.f32 %v3092_v34, %v88_v30  ;;  %v4066_v34 = vsel %vm378_vm9, %v3260_v37, %v3282_v10  ;;  %v4072_v30 = vsel %vm378_vm9, %v3282_v10, %v3260_v37  ;;  %v139_v37 = vmul.f32 %v3097_v36, %v4039_v28 }
 0xa46   :  { %v4041_v3 = vpop.permute.xlu1 %1456  ;;  %2032 = vperm.xlu0 %2669, %v3643_v5   ;;  %v4044_v43 = vpop.permute.xlu0 %1515  ;;  %v158_v10 = vsel %vm86_vm8, %v3524_v63, %v3355_v27  ;;  %v4123_v63 = vsel %vm86_vm8, %v3528_v17, %v3363_v0 }
 0xa47   :  { %6192 = vst [vmem:[#allocation198_spill] sm:$0xff] %v4041_v3  ;;  %1763 = vrot.lane.b32.xlu1 %v3723_v48, %s2930_s24  ;;  %v4060_v3 = vsel %vm86_vm8, %v3179_v6, %v3275_v50  ;;  %v140_v6 = vmul.f32 %v3097_v36, %v4052_v44  ;;  %v4104_v50 = vsel %vm86_vm8, %v3363_v0, %v3528_v17  ;;  %v2945_v17 = vmov 44  }
 0xa48   :  { %6193 = vst [vmem:[#allocation199_spill] sm:$0xff] %v4060_v3  ;;  %2652 = vset.pattern.permute.xlu1 %v2943_v41  ;;  %v555_v41 = vsel %vm378_vm9, %v3312_v22, %v3317_v53  ;;  %v4112_v27 = vmul.f32 %v3143_v52, %v4060_v3  ;;  %v4116_v53 = vmul.f32 %v3149_v56, %v4072_v30 }
 0xa49   :  { %v172_v36 = vmul.f32 %v3104_v38, %v159_v9  ;;  %v4138_v3 = vmul.f32 %v3500_v23, %v556_v1  ;;  %v173_v62 = vmul.f32 %v3104_v38, %v158_v10  ;;  %v224_v0 = vsel %vm86_vm8, %v3367_v24, %v3532_v57 }
 0xa4a   :  { %v4106_v32 = vpop.permute.xlu1 %1463  ;;  %1972 = vrot.lane.b32.xlu0 %v3723_v48, %s2944_s25  ;;  %v4131_v48 = vmul.f32 %v3143_v52, %v4082_v31  ;;  %v141_v52 = vadd.f32 %v139_v37, %v103_v33  ;;  %v588_v38 = vsel %vm587_vm10, %v3331_v59, %v3504_v15  ;;  %v206_v33 = vmul.f32 %v3110_v40, %v4123_v63 }
 0xa4b   :  { %6195 = vst [vmem:[#allocation201_spill] sm:$0xff] %v4106_v32  ;;  %1765 = vrot.lane.b32.xlu1 %v3711_v46, %s2930_s24  ;;  %v4127_v22 = vpop.permute.xlu0 %1529  ;;  %v4135_v32 = vmul.f32 %v3149_v56, %v4066_v34  ;;  %6197 = vst [vmem:[#allocation203_spill] sm:$0xff] %v4138_v3  ;;  %2672 = vset.pattern.permute.xlu0 %v2945_v17  ;;  %v4146_v46 = vmul.f32 %v3500_v23, %v555_v41 }
 0xa4c   :  { %6196 = vst [vmem:[#allocation202_spill] sm:$0xff] %v4127_v22  ;;  %v205_v56 = vmul.f32 %v3110_v40, %v4104_v50  ;;  %v223_v22 = vsel %vm86_vm8, %v3532_v57, %v3367_v24  ;;  %v589_v23 = vsel %vm587_vm10, %v3504_v15, %v3331_v59  ;;  %v142_v17 = vadd.f32 %v140_v6, %v104_v47 }
 0xa4d   :  { %6198 = vst [vmem:[#allocation204_spill] sm:$0xff] %v4146_v46  ;;  %v174_v24 = vadd.f32 %v172_v36, %v141_v52  ;;  %v237_v57 = vmul.f32 %v3119_v42, %v224_v0  ;;  %v256_v31 = vsel %vm86_vm8, %v3536_v60, %v3373_v4  ;;  %v257_v59 = vsel %vm86_vm8, %v3373_v4, %v3536_v60  ;;  %v6216_v46 = vld [vmem:[#allocation46_spill] sm:$0xff] }
 0xa4e   :  { %v4164_v37 = vpop.permute.xlu1 %1478  ;;  %1995 = vrot.lane.b32.xlu0 %v3183_v12, %s2944_s25  ;;  %v4181_v15 = vmul.f32 %v3324_v11, %v556_v1  ;;  %v4184_v47 = vmul.f32 %v3324_v11, %v555_v41  ;;  %v175_v6 = vadd.f32 %v173_v62, %v142_v17  ;;  %v238_v36 = vmul.f32 %v3119_v42, %v223_v22 }
 0xa4f   :  { %6199 = vst [vmem:[#allocation205_spill] sm:$0xff] %v4164_v37  ;;  %1779 = vperm.xlu1 %2652, %v3643_v5   ;;  %v4178_v40 = vpop.permute.xlu0 %1556  ;;  %v4188_v52 = vmul.f32 %v3508_v29, %v589_v23  ;;  %v207_v37 = vadd.f32 %v205_v56, %v174_v24  ;;  %v289_v60 = vsel %vm86_vm8, %v3540_v54, %v3377_v16  ;;  %v6203_v24 = vld [vmem:[#allocation15_spill] sm:$0xff] }
 0xa50   :  { %6200 = vst [vmem:[#allocation206_spill] sm:$0xff] %v4181_v15  ;;  %6201 = vst [vmem:[#allocation207_spill] sm:$0xff] %v4184_v47  ;;  %v290_v4 = vsel %vm86_vm8, %v3377_v16, %v3540_v54  ;;  %v4199_v11 = vmul.f32 %v3508_v29, %v588_v38  ;;  %v208_v62 = vadd.f32 %v206_v33, %v175_v6  ;;  %v6204_v33 = vld [vmem:[#allocation16_spill] sm:$0xff]  ;;  %v6205_v15 = vmov 16  }
 0xa51   :  { %v270_v42 = vmul.f32 %v3125_v45, %v257_v59  ;;  %v271_v1 = vmul.f32 %v3125_v45, %v256_v31  ;;  %v4207_v56 = vmul.f32 %v3337_v18, %v589_v23  ;;  %v4210_v17 = vmul.f32 %v3337_v18, %v588_v38  ;;  %v6206_v18 = vld [vmem:[#allocation17_spill] sm:$0xff] }
 0xa52   :  { %v4203_v41 = vpop.permute.xlu1 %1480  ;;  %2068 = vperm.xlu0 %2672, %v3643_v5   ;;  %v4213_v54 = vmul.f32 %v6203_v24, %v159_v9  ;;  %v239_v16 = vadd.f32 %v237_v57, %v207_v37  ;;  %v240_v45 = vadd.f32 %v238_v36, %v208_v62  ;;  %v305_v6 = vmul.f32 %v6204_v33, %v290_v4  ;;  %v6207_v37 = vld [vmem:[#allocation19_spill] sm:$0xff] }
 0xa53   :  { %6202 = vst [vmem:[#allocation208_spill] sm:$0xff] %v4203_v41  ;;  %1786 = vrot.lane.b32.xlu1 %v3183_v12, %s2930_s24  ;;  %v4217_v29 = vpop.permute.xlu0 %1570  ;;  %v306_v47 = vmul.f32 %v6204_v33, %v289_v60  ;;  %v4223_v23 = vmul.f32 %v6203_v24, %v158_v10  ;;  %v4226_v38 = vmul.f32 %v6206_v18, %v224_v0  ;;  %v6208_v62 = vld [vmem:[#allocation43_spill] sm:$0xff]  ;;  %v6209_v41 = vld [vmem:[#allocation90_spill] sm:$0xff] }
 0xa54   :  { %2653 = vset.pattern.permute.xlu1 %v6205_v15  ;;  %v4229_v9 = vmul.f32 %v6206_v18, %v223_v22  ;;  %v4232_v12 = vmul.f32 %v6207_v37, %v257_v59  ;;  %v272_v57 = vadd.f32 %v270_v42, %v239_v16  ;;  %v273_v36 = vadd.f32 %v271_v1, %v240_v45  ;;  %v6211_v59 = vld [vmem:[#allocation20_spill] sm:$0xff] }
 0xa55   :  { %v324_v33 = vsel %vm86_vm8, %v6209_v41, %v6208_v62  ;;  %v325_v10 = vsel %vm86_vm8, %v6208_v62, %v6209_v41  ;;  %v4247_v22 = vmul.f32 %v6207_v37, %v256_v31  ;;  %v4250_v15 = vmul.f32 %v6211_v59, %v290_v4  ;;  %v6212_v42 = vld [vmem:[#allocation44_spill] sm:$0xff]  ;;  %v6214_v37 = vld [vmem:[#allocation18_spill] sm:$0xff] }
 0xa56   :  { %v4242_v0 = vpop.permute.xlu1 %1493  ;;  %2017 = vrot.lane.b32.xlu0 %v3193_v19, %s2944_s25  ;;  %v6213_v1 = vld [vmem:[#allocation92_spill] sm:$0xff]  ;;  %v2946_v16 = vmov 53   ;;  %v4258_v41 = vmul.f32 %v6211_v59, %v289_v60  ;;  %v307_v45 = vadd.f32 %v305_v6, %v272_v57  ;;  %v308_v18 = vadd.f32 %v306_v47, %v273_v36  ;;  %v6217_v60 = vld [vmem:[#allocation23_spill] sm:$0xff] }
 0xa57   :  { %6210 = vst [vmem:[#allocation15_spill] sm:$0xff] %v4242_v0  ;;  %v402_v24 = vsel %vm378_vm9, %v6213_v1, %v6212_v42  ;;  %1793 = vperm.xlu1 %2653, %v3643_v5   ;;  %2675 = vset.pattern.permute.xlu0 %v2946_v16  ;;  %v401_v31 = vsel %vm378_vm9, %v6212_v42, %v6213_v1  ;;  %v6221_v1 = vld [vmem:[#allocation24_spill] sm:$0xff] }
 0xa58   :  { %v4264_v4 = vpop.permute.xlu0 %1584  ;;  %v338_v62 = vmul.f32 %v6214_v37, %v325_v10  ;;  %v339_v0 = vmul.f32 %v6214_v37, %v324_v33  ;;  %v4272_v16 = vsel %vm378_vm9, %v6216_v46, %v6215_v51  ;;  %v415_v6 = vmul.f32 %v6217_v60, %v402_v24 }
 0xa59   :  { %v4279_v47 = vsel %vm378_vm9, %v6215_v51, %v6216_v46  ;;  %v131_v57 = vmul.f32 %v3592_v2, %v4039_v28  ;;  %v416_v59 = vmul.f32 %v6217_v60, %v401_v31  ;;  %v6220_v28 = vld [vmem:[#allocation21_spill] sm:$0xff]  ;;  %v437_v37 = vmul.f32 %v6221_v1, %v4272_v16 }
 0xa5a   :  { %v1501_v36 = vpop.permute.xlu1 %1500  ;;  %2090 = vperm.xlu0 %2675, %v3643_v5   ;;  %v4299_v46 = vmul.f32 %v6220_v28, %v325_v10  ;;  %v438_v10 = vmul.f32 %v6221_v1, %v4279_v47  ;;  %v4320_v20 = vadd.f32 %v338_v62, %v307_v45  ;;  %v6232_v62 = vld [vmem:[#allocation113_spill] sm:$0xff] }
 0xa5b   :  { %v4289_v42 = vsel %vm1349_vm11, %v1501_v36, %v4016_v58  ;;  %v4294_v51 = vsel %vm1349_vm11, %v4016_v58, %v1501_v36  ;;  %1808 = vrot.lane.b32.xlu1 %v3193_v19, %s2930_s24  ;;  %v2947_v58 = vmov 106   ;;  %v4314_v19 = vmul.f32 %v6220_v28, %v324_v33 }
 0xa5c   :  { %6218 = vst [vmem:[#allocation16_spill] sm:$0xff] %v4289_v42  ;;  %6219 = vst [vmem:[#allocation17_spill] sm:$0xff] %v4294_v51  ;;  %v4305_v60 = vmul.f32 %v4044_v43, %v4289_v42  ;;  %v4309_v3 = vmul.f32 %v4044_v43, %v4294_v51  ;;  %v4311_v26 = vpop.permute.xlu0 %1601  ;;  %2656 = vset.pattern.permute.xlu1 %v2947_v58  ;;  %v132_v36 = vmul.f32 %v3592_v2, %v4052_v44  ;;  %v6226_v43 = vld [vmem:[#allocation95_spill] sm:$0xff]  ;;  %v2948_v33 = vmov 23   ;;  %v6229_v44 = vld [vmem:[#allocation48_spill] sm:$0xff] }
 0xa5d   :  { %6224 = vst [vmem:[#allocation90_spill] sm:$0xff] %v4320_v20  ;;  %v417_v42 = vadd.f32 %v415_v6, %v4116_v53  ;;  %v133_v58 = vadd.f32 %v131_v57, %v4029_v61  ;;  %v4330_v28 = vadd.f32 %v339_v0, %v308_v18  ;;  %v418_v1 = vadd.f32 %v416_v59, %v4135_v32  ;;  %v6230_v53 = vld [vmem:[#allocation49_spill] sm:$0xff]  ;;  %v6231_v61 = vld [vmem:[#allocation22_spill] sm:$0xff]  ;;  %v6242_v20 = vld [vmem:[#allocation72_spill] sm:$0xff] }
 0xa5e   :  { %6222 = vst [vmem:[#allocation19_spill] sm:$0xff] %v4305_v60  ;;  %6223 = vst [vmem:[#allocation43_spill] sm:$0xff] %v4309_v3  ;;  %v6225_v60 = vld [vmem:[#allocation47_spill] sm:$0xff]  ;;  %v4328_v3 = vpop.permute.xlu1 %1507  ;;  %2676 = vset.pattern.permute.xlu0 %v2948_v33  ;;  %v468_v45 = vsel %vm378_vm9, %v6230_v53, %v6229_v44  ;;  %v4345_v0 = vmul.f32 %v6231_v61, %v402_v24  ;;  %v4348_v32 = vmul.f32 %v6231_v61, %v401_v31  ;;  %v6235_v33 = vld [vmem:[#allocation26_spill] sm:$0xff] }
 0xa5f   :  { %v446_v51 = vsel %vm378_vm9, %v6226_v43, %v6225_v60  ;;  %6227 = vst [vmem:[#allocation20_spill] sm:$0xff] %v4328_v3  ;;  %6228 = vst [vmem:[#allocation44_spill] sm:$0xff] %v4330_v28  ;;  %v445_v2 = vsel %vm378_vm9, %v6225_v60, %v6226_v43  ;;  %1810 = vrot.lane.b32.xlu1 %v3198_v21, %s2930_s24  ;;  %1397 = vperm.xlu0 %2676, %v3643_v5   ;;  %v6234_v60 = vld [vmem:[#allocation25_spill] sm:$0xff] }
 0xa60   :  { %v439_v18 = vadd.f32 %v437_v37, %v417_v42  ;;  %v197_v6 = vmul.f32 %v6232_v62, %v4104_v50  ;;  %v4352_v57 = vpop.permute.xlu0 %1614  ;;  %v440_v59 = vadd.f32 %v438_v10, %v418_v1  ;;  %v459_v43 = vmul.f32 %v6234_v60, %v446_v51  ;;  %v6236_v42 = vld [vmem:[#allocation38_spill] sm:$0xff]  ;;  %v6238_v10 = vld [vmem:[#allocation97_spill] sm:$0xff] }
 0xa61   :  { %6233 = vst [vmem:[#allocation92_spill] sm:$0xff] %v4352_v57  ;;  %v467_v5 = vsel %vm378_vm9, %v6229_v44, %v6230_v53  ;;  %v134_v24 = vadd.f32 %v132_v36, %v4032_v13  ;;  %v4361_v3 = vmul.f32 %v6235_v33, %v446_v51  ;;  %v460_v31 = vmul.f32 %v6234_v60, %v445_v2  ;;  %v6239_v1 = vld [vmem:[#allocation50_spill] sm:$0xff]  ;;  %v4378_v36 = vld [vmem:[#allocation7] sm:$0xff] }
 0xa62   :  { %v481_v37 = vmul.f32 %v6236_v42, %v468_v45  ;;  %v166_v50 = vadd.f32 %v4213_v54, %v133_v58  ;;  %v4366_v61 = vpop.permute.xlu1 %1522  ;;  %v489_v28 = vsel %vm378_vm9, %v6239_v1, %v6238_v10  ;;  %v490_v13 = vsel %vm378_vm9, %v6238_v10, %v6239_v1  ;;  %v6241_v10 = vld [vmem:[#allocation52_spill] sm:$0xff] }
 0xa63   :  { %6237 = vst [vmem:[#allocation18_spill] sm:$0xff] %v4366_v61  ;;  %v198_v51 = vmul.f32 %v6232_v62, %v4123_v63  ;;  %1823 = vperm.xlu1 %2656, %v4378_v36   ;;  %1933 = vperm.xlu0 %2676, %v3717_v8   ;;  %v4383_v54 = vmul.f32 %v6235_v33, %v445_v2  ;;  %v6240_v61 = vld [vmem:[#allocation51_spill] sm:$0xff] }
 0xa64   :  { %v482_v58 = vmul.f32 %v6236_v42, %v467_v5  ;;  %v199_v44 = vadd.f32 %v197_v6, %v166_v50  ;;  %v4386_v53 = vpop.permute.xlu0 %1645  ;;  %v461_v60 = vadd.f32 %v459_v43, %v439_v18  ;;  %v512_v63 = vsel %vm378_vm9, %v6241_v10, %v6240_v61  ;;  %v6244_v18 = vld [vmem:[#allocation27_spill] sm:$0xff] }
 0xa65   :  { %v167_v62 = vadd.f32 %v4223_v23, %v134_v24  ;;  %v462_v1 = vadd.f32 %v460_v31, %v440_v59  ;;  %v503_v21 = vmul.f32 %v6242_v20, %v490_v13  ;;  %v504_v57 = vmul.f32 %v6242_v20, %v489_v28  ;;  %v6245_v24 = vld [vmem:[#allocation40_spill] sm:$0xff] }
 0xa66   :  { %v511_v2 = vsel %vm378_vm9, %v6240_v61, %v6241_v10  ;;  %v4399_v6 = vpop.permute.xlu1 %1524  ;;  %v4402_v43 = vmul.f32 %v6244_v18, %v468_v45  ;;  %v483_v33 = vadd.f32 %v481_v37, %v461_v60  ;;  %v2949_v23 = vmov 62   ;;  %v6246_v37 = vld [vmem:[#allocation39_spill] sm:$0xff] }
 0xa67   :  { %6243 = vst [vmem:[#allocation45_spill] sm:$0xff] %v4399_v6  ;;  %v200_v42 = vadd.f32 %v198_v51, %v167_v62  ;;  %1830 = vrot.lane.b32.xlu1 %v3203_v25, %s2930_s24  ;;  %2679 = vset.pattern.permute.xlu0 %v2949_v23  ;;  %v484_v59 = vadd.f32 %v482_v58, %v462_v1  ;;  %v2950_v61 = vmov 34   ;;  %v2952_v25 = vmov 71   ;;  %v6265_v6 = vld [vmem:[#allocation102_spill] sm:$0xff] }
 0xa68   :  { %v525_v20 = vmul.f32 %v6245_v24, %v512_v63  ;;  %v231_v31 = vadd.f32 %v4226_v38, %v199_v44  ;;  %2112 = vperm.xlu0 %2679, %v4378_v36   ;;  %v4409_v50 = vpop.permute.xlu0 %1658  ;;  %2657 = vset.pattern.permute.xlu1 %v2950_v61  ;;  %v4412_v45 = vmul.f32 %v6244_v18, %v467_v5  ;;  %v6247_v38 = vld [vmem:[#allocation54_spill] sm:$0xff]  ;;  %v6248_v44 = vld [vmem:[#allocation55_spill] sm:$0xff]  ;;  %v6250_v61 = vld [vmem:[#allocation53_spill] sm:$0xff] }
 0xa69   :  { %v4415_v51 = vmul.f32 %v6246_v37, %v490_v13  ;;  %v4418_v60 = vmul.f32 %v6246_v37, %v489_v28  ;;  %v526_v58 = vmul.f32 %v6245_v24, %v511_v2  ;;  %v505_v10 = vadd.f32 %v503_v21, %v483_v33  ;;  %v6251_v5 = vld [vmem:[#allocation100_spill] sm:$0xff]  ;;  %v6253_v18 = vld [vmem:[#allocation74_spill] sm:$0xff] }
 0xa6a   :  { %v506_v62 = vadd.f32 %v504_v57, %v484_v59  ;;  %v611_v1 = vsel %vm587_vm10, %v6248_v44, %v6247_v38  ;;  %v4425_v23 = vpop.permute.xlu1 %1537  ;;  %v4431_v13 = vsel %vm378_vm9, %v6251_v5, %v6250_v61  ;;  %v4434_v28 = vmul.f32 %v6253_v18, %v512_v63 }
 0xa6b   :  { %6249 = vst [vmem:[#allocation46_spill] sm:$0xff] %v4425_v23  ;;  %6252 = vst [vmem:[#allocation23_spill] sm:$0xff] %v4431_v13  ;;  %v610_v21 = vsel %vm587_vm10, %v6247_v38, %v6248_v44  ;;  %v232_v57 = vadd.f32 %v4229_v9, %v200_v42  ;;  %1837 = vperm.xlu1 %2657, %v4378_v36   ;;  %v4446_v33 = vsel %vm378_vm9, %v6250_v61, %v6251_v5  ;;  %v6255_v24 = vmov 32   ;;  %v6257_v9 = vld [vmem:[#allocation42_spill] sm:$0xff]  ;;  %v6260_v61 = vld [vmem:[#allocation41_spill] sm:$0xff] }
 0xa6c   :  { %6254 = vst [vmem:[#allocation21_spill] sm:$0xff] %v4446_v33  ;;  %v4449_v59 = vmul.f32 %v6253_v18, %v511_v2  ;;  %v264_v63 = vadd.f32 %v4232_v12, %v231_v31  ;;  %2682 = vset.pattern.permute.xlu0 %v6255_v24  ;;  %v4454_v37 = vadd.f32 %v525_v20, %v505_v10  ;;  %v6261_v31 = vld [vmem:[#allocation104_spill] sm:$0xff] }
 0xa6d   :  { %v624_v42 = vmul.f32 %v6257_v9, %v611_v1  ;;  %1955 = vperm.xlu0 %2682, %v3717_v8   ;;  %v4458_v38 = vpop.permute.xlu0 %1672  ;;  %v4460_v44 = vadd.f32 %v526_v58, %v506_v62  ;;  %v4464_v2 = vmul.f32 %v6260_v61, %v4431_v13  ;;  %v625_v12 = vmul.f32 %v6257_v9, %v610_v21  ;;  %v6262_v5 = vld [vmem:[#allocation56_spill] sm:$0xff]  ;;  %v6263_v9 = vld [vmem:[#allocation121_spill] sm:$0xff] }
 0xa6e   :  { %6256 = vst [vmem:[#allocation24_spill] sm:$0xff] %v4454_v37  ;;  %6258 = vst [vmem:[#allocation47_spill] sm:$0xff] %v4458_v38  ;;  %v632_v20 = vsel %vm587_vm10, %v6262_v5, %v6261_v31  ;;  %v1555_v10 = vpop.permute.xlu1 %1554  ;;  %v4473_v18 = vmul.f32 %v6260_v61, %v4446_v33  ;;  %v633_v8 = vsel %vm587_vm10, %v6261_v31, %v6262_v5  ;;  %v6271_v33 = vld [vmem:[#allocation61_spill] sm:$0xff]  ;;  %v6272_v13 = vld [vmem:[#allocation108_spill] sm:$0xff] }
 0xa6f   :  { %6259 = vst [vmem:[#allocation95_spill] sm:$0xff] %v4460_v44  ;;  %v265_v58 = vadd.f32 %v4247_v22, %v232_v57  ;;  %v4483_v62 = vsel %vm1558_vm12, %v1555_v10, %v4178_v40  ;;  %v4488_v24 = vsel %vm1558_vm12, %v4178_v40, %v1555_v10  ;;  %1852 = vrot.lane.b32.xlu1 %v3213_v35, %s2930_s24  ;;  %v2951_v57 = vmov 124   ;;  %v6264_v40 = vld [vmem:[#allocation81_spill] sm:$0xff] }
 0xa70   :  { %v385_v61 = vmul.f32 %v6263_v9, %v4072_v30  ;;  %v4496_v31 = vmul.f32 %v4217_v29, %v4483_v62  ;;  %v4500_v22 = vmul.f32 %v4217_v29, %v4488_v24  ;;  %2661 = vset.pattern.permute.xlu1 %v2951_v57  ;;  %v298_v5 = vadd.f32 %v4250_v15, %v264_v63  ;;  %v6266_v15 = vld [vmem:[#allocation125_spill] sm:$0xff] }
 0xa71   :  { %v616_v10 = vmul.f32 %v6264_v40, %v611_v1  ;;  %v617_v38 = vmul.f32 %v6264_v40, %v610_v21  ;;  %v626_v35 = vadd.f32 %v624_v42, %v4188_v52  ;;  %v386_v30 = vmul.f32 %v6263_v9, %v4066_v34  ;;  %2683 = vset.pattern.permute.xlu0 %v2952_v25  ;;  %v4508_v23 = vpop.permute.xlu0 %1689  ;;  %v6267_v52 = vld [vmem:[#allocation57_spill] sm:$0xff]  ;;  %v6269_v42 = vld [vmem:[#allocation59_spill] sm:$0xff] }
 0xa72   :  { %v627_v29 = vadd.f32 %v625_v12, %v4199_v11  ;;  %v646_v44 = vmul.f32 %v6265_v6, %v633_v8  ;;  %v647_v57 = vmul.f32 %v6265_v6, %v632_v20  ;;  %v429_v1 = vmul.f32 %v6266_v15, %v4272_v16  ;;  %v1563_v63 = vpop.permute.xlu1 %1562  ;;  %2134 = vperm.xlu0 %2683, %v4378_v36   ;;  %v6268_v11 = vld [vmem:[#allocation58_spill] sm:$0xff] }
 0xa73   :  { %v638_v21 = vmul.f32 %v6267_v52, %v633_v8  ;;  %v639_v34 = vmul.f32 %v6267_v52, %v632_v20  ;;  %v430_v25 = vmul.f32 %v6266_v15, %v4279_v47  ;;  %1854 = vrot.lane.b32.xlu1 %v3218_v39, %s2930_s24  ;;  %v4526_v6 = vsel %vm587_vm10, %v6269_v42, %v6268_v11  ;;  %v6270_v47 = vld [vmem:[#allocation60_spill] sm:$0xff] }
 0xa74   :  { %v409_v16 = vadd.f32 %v4345_v0, %v385_v61  ;;  %v299_v12 = vadd.f32 %v4258_v41, %v265_v58  ;;  %v332_v8 = vadd.f32 %v4299_v46, %v298_v5  ;;  %v618_v20 = vadd.f32 %v616_v10, %v4207_v56  ;;  %v6273_v10 = vld [vmem:[#allocation107_spill] sm:$0xff] }
 0xa75   :  { %v619_v9 = vadd.f32 %v617_v38, %v4210_v17  ;;  %v668_v40 = vmul.f32 %v6270_v47, %v4526_v6  ;;  %v410_v15 = vadd.f32 %v4348_v32, %v386_v30  ;;  %v4536_v52 = vpop.permute.xlu0 %1702  ;;  %v648_v39 = vadd.f32 %v646_v44, %v626_v35 }
 0xa76   :  { %v649_v37 = vadd.f32 %v647_v57, %v627_v29  ;;  %v677_v41 = vsel %vm587_vm10, %v6272_v13, %v6271_v33  ;;  %v431_v0 = vadd.f32 %v429_v1, %v409_v16  ;;  %v1578_v46 = vpop.permute.xlu1 %1577  ;;  %v2953_v58 = vmov 33   ;;  %v6274_v57 = vld [vmem:[#allocation64_spill] sm:$0xff]  ;;  %v6275_v1 = vld [vmem:[#allocation63_spill] sm:$0xff] }
 0xa77   :  { %2684 = vset.pattern.permute.xlu0 %v2953_v58  ;;  %v4542_v56 = vadd.f32 %v638_v21, %v618_v20  ;;  %v676_v17 = vsel %vm587_vm10, %v6271_v33, %v6272_v13  ;;  %v432_v32 = vadd.f32 %v430_v25, %v410_v15  ;;  %v79_v35 = vadd.s32 128, %v4003_v49  ;;  %1867 = vperm.xlu1 %2661, %v4378_v36  }
 0xa78   :  { %1628 = vperm.xlu0 %2684, %v4378_v36   ;;  %v4551_v38 = vadd.f32 %v639_v34, %v619_v9  ;;  %v4557_v44 = vsel %vm587_vm10, %v6268_v11, %v6269_v42  ;;  %v333_v61 = vadd.f32 %v4314_v19, %v299_v12  ;;  %v4561_v5 = vadd.f32 %v4112_v27, %v332_v8 }
 0xa79   :  { %v669_v13 = vmul.f32 %v6270_v47, %v4557_v44  ;;  %v670_v33 = vadd.f32 %v668_v40, %v648_v39  ;;  %v690_v30 = vmul.f32 %v6273_v10, %v677_v41  ;;  %v691_v29 = vmul.f32 %v6273_v10, %v676_v17  ;;  %v6276_v40 = vld [vmem:[#allocation65_spill] sm:$0xff] }
 0xa7a   :  { %v4571_v21 = vsel %vm587_vm10, %v6275_v1, %v6274_v57  ;;  %v4577_v27 = vsel %vm587_vm10, %v6274_v57, %v6275_v1  ;;  %v453_v19 = vadd.f32 %v4361_v3, %v431_v0  ;;  %v1580_v34 = vpop.permute.xlu1 %1579  ;;  %v4580_v39 = vpop.permute.xlu0 %1716  ;;  %v454_v25 = vadd.f32 %v4383_v54, %v432_v32 }
 0xa7b   :  { %v4584_v11 = vand.u32 15, %v4003_v49  ;;  %v1581_v42 = vsel %vm1558_vm12, %v1578_v46, %v1580_v34  ;;  %v1582_v16 = vsel %vm1558_vm12, %v1580_v34, %v1578_v46  ;;  %1874 = vrot.lane.b32.xlu1 %v3223_v55, %s2930_s24  ;;  %v1565_v3 = vmul.f32 %v1563_v63, %v4483_v62  ;;  %v6277_v46 = vld [vmem:[#allocation66_spill] sm:$0xff] }
 0xa7c   :  { %2085 = vrot.lane.b32.xlu0 %v3228_v7, %s2944_s25  ;;  %v1566_v12 = vmul.f32 %v1563_v63, %v4488_v24  ;;  %v1587_v54 = vmul.f32 %v4264_v4, %v1581_v42  ;;  %v1588_v8 = vmul.f32 %v4264_v4, %v1582_v16  ;;  %v2954_v20 = vmov 52   ;;  %v6278_v7 = vld [vmem:[#allocation110_spill] sm:$0xff] }
 0xa7d   :  { %2662 = vset.pattern.permute.xlu1 %v2954_v20  ;;  %v671_v9 = vadd.f32 %v669_v13, %v649_v37  ;;  %v692_v47 = vadd.f32 %v690_v30, %v670_v33  ;;  %v712_v15 = vmul.f32 %v6276_v40, %v4577_v27  ;;  %v713_v0 = vmul.f32 %v6276_v40, %v4571_v21  ;;  %v6279_v30 = vld [vmem:[#allocation62_spill] sm:$0xff] }
 0xa7e   :  { %v4606_v62 = vsel %vm587_vm10, %v6278_v7, %v6277_v46  ;;  %v475_v24 = vadd.f32 %v4402_v43, %v453_v19  ;;  %v4609_v63 = vadd.f32 %v1587_v54, %v1565_v3  ;;  %v4611_v4 = vadd.f32 %v1588_v8, %v1566_v12  ;;  %v1593_v37 = vpop.permute.xlu1 %1592  ;;  %v4613_v58 = vpop.permute.xlu0 %1733  ;;  %v4625_v43 = vld [vmem:[#allocation7 + $0x8] sm:$0xff] }
 0xa7f   :  { %v693_v32 = vadd.f32 %v691_v29, %v671_v9  ;;  %v4619_v13 = vsel %vm587_vm10, %v6277_v46, %v6278_v7  ;;  %v476_v33 = vadd.f32 %v4412_v45, %v454_v25  ;;  %v4622_v10 = vand.u32 15, %v79_v35  ;;  %1881 = vperm.xlu1 %2662, %v4378_v36   ;;  %v6280_v25 = vld [vmem:[#allocation111_spill] sm:$0xff]  ;;  %v6282_v54 = vld [vmem:[#allocation69_spill] sm:$0xff] }
 0xa80   :  { %2164 = vperm.xlu0 %2684, %v4625_v43   ;;  %v4629_v57 = vmul.f32 %v6279_v30, %v677_v41  ;;  %v1595_v29 = vmul.f32 %v1593_v37, %v1581_v42  ;;  %v1596_v1 = vmul.f32 %v1593_v37, %v1582_v16  ;;  %v4632_v19 = vadd.f32 %v4131_v48, %v333_v61  ;;  %v6281_v41 = vld [vmem:[#allocation68_spill] sm:$0xff]  ;;  %v6283_v48 = vld [vmem:[#allocation71_spill] sm:$0xff]  ;;  %v6284_v61 = vld [vmem:[#allocation114_spill] sm:$0xff] }
 0xa81   :  { %vm364_vm13 = vcmp.ge.s32.totalorder %v4584_v11, 4  ;;  %v4636_v45 = vmul.f32 %v6279_v30, %v676_v17  ;;  %v714_v35 = vadd.f32 %v712_v15, %v692_v47  ;;  %v715_v34 = vadd.f32 %v713_v0, %v693_v32  ;;  %v6285_v0 = vld [vmem:[#allocation92_spill] sm:$0xff]  ;;  %v6287_v37 = vld [vmem:[#allocation70_spill] sm:$0xff] }
 0xa82   :  { %v734_v3 = vmul.f32 %v6280_v25, %v4606_v62  ;;  %v735_v12 = vmul.f32 %v6280_v25, %v4619_v13  ;;  %v743_v42 = vsel %vm587_vm10, %v6282_v54, %v6281_v41  ;;  %v765_v16 = vsel %vm587_vm10, %v6284_v61, %v6283_v48  ;;  %v1600_v17 = vpop.permute.xlu1 %1599  ;;  %v4650_v8 = vpop.permute.xlu0 %1746 }
 0xa83   :  { %v497_v20 = vadd.f32 %v4415_v51, %v475_v24  ;;  %v1603_v9 = vsel %vm1558_vm12, %v1600_v17, %v4311_v26  ;;  %v1604_v47 = vsel %vm1558_vm12, %v4311_v26, %v1600_v17  ;;  %1896 = vrot.lane.b32.xlu1 %v3233_v14, %s2930_s24  ;;  %v498_v40 = vadd.f32 %v4418_v60, %v476_v33 }
 0xa84   :  { %2105 = vrot.lane.b32.xlu0 %v3233_v14, %s2944_s25  ;;  %v1597_v51 = vadd.f32 %v1595_v29, %v4496_v31  ;;  %v1598_v15 = vadd.f32 %v1596_v1, %v4500_v22  ;;  %v1617_v46 = vmul.f32 %v6285_v0, %v1603_v9  ;;  %v1618_v7 = vmul.f32 %v6285_v0, %v1604_v47  ;;  %v6288_v1 = vld [vmem:[#allocation115_spill] sm:$0xff] }
 0xa85   :  { %v6286_v24 = vmov 8   ;;  %vm365_vm15 = vcmp.ge.s32.totalorder %v4622_v10, 4  ;;  %v736_v26 = vadd.f32 %v734_v3, %v714_v35  ;;  %v742_v14 = vsel %vm587_vm10, %v6281_v41, %v6282_v54  ;;  %v6289_v41 = vld [vmem:[#allocation35_spill] sm:$0xff]  ;;  %v4691_v54 = vld [vmem:[#allocation2 + $0x8] sm:$0xff] }
 0xa86   :  { %2665 = vset.pattern.permute.xlu1 %v6286_v24  ;;  %v756_v60 = vmul.f32 %v6287_v37, %v743_v42  ;;  %vm5964_vm0 = vcmp.ge.s32.totalorder %v4584_v11, 2  ;;  %vm5961_vm8 = vcmp.ge.s32.totalorder %v4622_v10, 2  ;;  %v764_v31 = vsel %vm587_vm10, %v6283_v48, %v6284_v61  ;;  %v1607_v30 = vpop.permute.xlu1 %1606  ;;  %6290 = vst [vmem:[#allocation48_spill] sm:$0xff] %v4691_v54  ;;  %v6292_v61 = vld [vmem:[#allocation109_spill] sm:$0xff] }
 0xa87   :  { %v757_v22 = vmul.f32 %v6287_v37, %v742_v14  ;;  %v4683_v32 = vadd.f32 %v1617_v46, %v1597_v51  ;;  %v4685_v33 = vadd.f32 %v1618_v7, %v1598_v15  ;;  %v519_v29 = vadd.f32 %v4434_v28, %v497_v20  ;;  %1898 = vrot.lane.b32.xlu1 %v6289_v41, %s2930_s24  ;;  %v4695_v48 = vpop.permute.xlu0 %1771  ;;  %v6295_v46 = vld [vmem:[#allocation67_spill] sm:$0xff]  ;;  %v6297_v7 = vld [vmem:[#allocation116_spill] sm:$0xff] }
 0xa88   :  { %v778_v35 = vmul.f32 %v6288_v1, %v765_v16  ;;  %v1609_v25 = vmul.f32 %v1607_v30, %v1603_v9  ;;  %v1610_v3 = vmul.f32 %v1607_v30, %v1604_v47  ;;  %1940 = vrot.lane.b32.xlu0 %v4691_v54, %s2930_s24  ;;  %6291 = vst [vmem:[#allocation49_spill] sm:$0xff] %v4695_v48  ;;  %vm573_vm9 = vcmp.ge.s32.totalorder %v4584_v11, 3  ;;  %v6304_v30 = vld [vmem:[#allocation73_spill] sm:$0xff]  ;;  %v6318_v41 = vld [vmem:[#allocation204_spill] sm:$0xff] }
 0xa89   :  { %v4700_v17 = vmul.f32 %v6292_v61, %v4577_v27  ;;  %v737_v28 = vadd.f32 %v735_v12, %v715_v34  ;;  %v779_v20 = vmul.f32 %v6288_v1, %v764_v31  ;;  %v520_v9 = vadd.f32 %v4449_v59, %v498_v40  ;;  %v6296_v12 = vld [vmem:[#allocation78_spill] sm:$0xff]  ;;  %v6306_v1 = vld [vmem:[#allocation75_spill] sm:$0xff] }
 0xa8a   :  { %v4706_v47 = vmul.f32 %v6292_v61, %v4571_v21  ;;  %v758_v51 = vadd.f32 %v756_v60, %v736_v26  ;;  %v4709_v15 = vadd.f32 %v1609_v25, %v4609_v63  ;;  %v4712_v0 = vadd.f32 %v1610_v3, %v4611_v4  ;;  %v1622_v21 = vpop.permute.xlu1 %1621  ;;  %v6299_v4 = vld [vmem:[#allocation112_spill] sm:$0xff]  ;;  %v6308_v25 = vld [vmem:[#allocation117_spill] sm:$0xff] }
 0xa8b   :  { %v4716_v27 = vmul.f32 %v6295_v46, %v4606_v62  ;;  %v759_v34 = vadd.f32 %v757_v22, %v737_v28  ;;  %v4722_v59 = vsel %vm796_vm14, %v6297_v7, %v6296_v12  ;;  %v541_v40 = vadd.f32 %v4464_v2, %v519_v29  ;;  %1980 = vperm.xlu1 %2665, %v4378_v36   ;;  %v6301_v26 = vld [vmem:[#allocation36_spill] sm:$0xff]  ;;  %v4736_v37 = vpop.permute.xlu0 %1788 }
 0xa8c   :  { %6293 = vst [vmem:[#allocation22_spill] sm:$0xff] %v4709_v15  ;;  %6294 = vst [vmem:[#allocation113_spill] sm:$0xff] %v4712_v0  ;;  %vm574_vm10 = vcmp.ge.s32.totalorder %v4622_v10, 3  ;;  %v4728_v63 = vmul.f32 %v6295_v46, %v4619_v13  ;;  %v4731_v24 = vmul.f32 %v6299_v4, %v743_v42  ;;  %v780_v62 = vadd.f32 %v778_v35, %v758_v51  ;;  %v6307_v35 = vld [vmem:[#allocation76_spill] sm:$0xff]  ;;  %v6313_v51 = vld [vmem:[#allocation203_spill] sm:$0xff] }
 0xa8d   :  { %2127 = vrot.lane.b32.xlu0 %v6301_v26, %s2944_s25  ;;  %6302 = vst [vmem:[#allocation38_spill] sm:$0xff] %v4736_v37  ;;  %v366_v2 = vsel %vm364_vm13, %v4561_v5, 0.0  ;;  %v781_v60 = vadd.f32 %v779_v20, %v759_v34  ;;  %v4745_v13 = vsel %vm796_vm14, %v6296_v12, %v6297_v7  ;;  %v542_v42 = vadd.f32 %v4473_v18, %v520_v9  ;;  %v6310_v18 = vld [vmem:[#allocation77_spill] sm:$0xff]  ;;  %v6312_v20 = vld [vmem:[#allocation82_spill] sm:$0xff]  ;;  %v6314_v12 = vld [vmem:[#allocation84_spill] sm:$0xff] }
 0xa8e   :  { %6298 = vst [vmem:[#allocation25_spill] sm:$0xff] %v4728_v63  ;;  %6300 = vst [vmem:[#allocation26_spill] sm:$0xff] %v4731_v24  ;;  %v4749_v22 = vmul.f32 %v6299_v4, %v742_v14  ;;  %v4752_v29 = vmul.f32 %v6304_v30, %v765_v16  ;;  %v4758_v5 = vsel %vm796_vm14, %v6307_v35, %v6306_v1  ;;  %v6311_v14 = vld [vmem:[#allocation80_spill] sm:$0xff]  ;;  %v1624_v9 = vpop.permute.xlu1 %1623  ;;  %v6315_v7 = vld [vmem:[#allocation118_spill] sm:$0xff]  ;;  %v2955_v0 = vmov 89  }
 0xa8f   :  { %v833_v3 = vmul.f32 %v6308_v25, %v4722_v59  ;;  %v4763_v61 = vmul.f32 %v6304_v30, %v764_v31  ;;  %v811_v28 = vmul.f32 %v6310_v18, %v4758_v5  ;;  %v4771_v16 = vsel %vm796_vm14, %v6312_v20, %v6311_v14  ;;  %v6316_v4 = vld [vmem:[#allocation83_spill] sm:$0xff]  ;;  %2666 = vset.pattern.permute.xlu1 %v2955_v0  ;;  %v4786_v15 = vpop.permute.xlu0 %1801 }
 0xa90   :  { %6303 = vst [vmem:[#allocation97_spill] sm:$0xff] %v4749_v22  ;;  %6305 = vst [vmem:[#allocation50_spill] sm:$0xff] %v4752_v29  ;;  %v563_v46 = vadd.f32 %v6313_v51, %v541_v40  ;;  %v834_v34 = vmul.f32 %v6308_v25, %v4745_v13  ;;  %v4780_v31 = vsel %vm796_vm14, %v6315_v7, %v6314_v12  ;;  %v367_v40 = vsel %vm365_vm15, %v4632_v19, 0.0 }
 0xa91   :  { %6309 = vst [vmem:[#allocation51_spill] sm:$0xff] %v4763_v61  ;;  %v855_v30 = vmul.f32 %v6316_v4, %v4771_v16  ;;  %2149 = vrot.lane.b32.xlu0 %v4691_v54, %s2944_s25  ;;  %6317 = vst [vmem:[#allocation52_spill] sm:$0xff] %v4786_v15  ;;  %v4793_v25 = vsel %vm5964_vm0, %v780_v62, 0.0  ;;  %v4797_v51 = vsel %vm5961_vm8, %v781_v60, 0.0  ;;  %v4803_v0 = vsel %vm796_vm14, %v6306_v1, %v6307_v35  ;;  %v6319_v1 = vld [vmem:[#allocation119_spill] sm:$0xff]  ;;  %v6325_v61 = vld [vmem:[#allocation122_spill] sm:$0xff] }
 0xa92   :  { %1988 = vperm.xlu1 %2666, %v4378_v36   ;;  %v564_v26 = vadd.f32 %v6318_v41, %v542_v42  ;;  %v812_v19 = vmul.f32 %v6310_v18, %v4803_v0  ;;  %v835_v55 = vadd.f32 %v833_v3, %v811_v28  ;;  %v4813_v62 = vsel %vm796_vm14, %v6311_v14, %v6312_v20  ;;  %v1637_v42 = vpop.permute.xlu1 %1636  ;;  %v6326_v15 = vld [vmem:[#allocation88_spill] sm:$0xff] }
 0xa93   :  { %v4819_v60 = vsel %vm796_vm14, %v6314_v12, %v6315_v7  ;;  %v877_v35 = vmul.f32 %v6319_v1, %v4780_v31  ;;  %v856_v41 = vmul.f32 %v6316_v4, %v4813_v62  ;;  %v575_v3 = vsel %vm573_vm9, %v563_v46, 0.0  ;;  %v6322_v12 = vld [vmem:[#allocation86_spill] sm:$0xff]  ;;  %v6323_v7 = vld [vmem:[#allocation87_spill] sm:$0xff]  ;;  %v6324_v4 = vld [vmem:[#allocation89_spill] sm:$0xff] }
 0xa94   :  { %v836_v18 = vadd.f32 %v834_v34, %v812_v19  ;;  %v857_v28 = vadd.f32 %v855_v30, %v835_v55  ;;  %v4829_v14 = vsel %vm1558_vm12, %v1622_v21, %v1624_v9  ;;  %v4833_v20 = vsel %vm1558_vm12, %v1624_v9, %v1622_v21  ;;  %v4847_v34 = vpop.permute.xlu0 %357 }
 0xa95   :  { %6320 = vst [vmem:[#allocation72_spill] sm:$0xff] %v4829_v14  ;;  %6321 = vst [vmem:[#allocation27_spill] sm:$0xff] %v4833_v20  ;;  %v4839_v48 = vsel %vm796_vm14, %v6323_v7, %v6322_v12  ;;  %v4845_v46 = vsel %vm796_vm14, %v6325_v61, %v6324_v4  ;;  %v2956_v55 = vmov 98   ;;  %v1639_v30 = vmul.f32 %v1637_v42, %v4829_v14 }
 0xa96   :  { %2667 = vset.pattern.permute.xlu1 %v2956_v55  ;;  %v1640_v21 = vmul.f32 %v1637_v42, %v4833_v20  ;;  %v878_v9 = vmul.f32 %v6319_v1, %v4819_v60  ;;  %v4857_v19 = vsel %vm796_vm14, %v6322_v12, %v6323_v7  ;;  %v899_v37 = vmul.f32 %v6326_v15, %v4839_v48  ;;  %v1644_v1 = vpop.permute.xlu1 %1643  ;;  %v6328_v7 = vld [vmem:[#allocation123_spill] sm:$0xff] }
 0xa97   :  { %2010 = vperm.xlu1 %2667, %v4378_v36   ;;  %v576_v55 = vsel %vm574_vm10, %v564_v26, 0.0  ;;  %v900_v42 = vmul.f32 %v6326_v15, %v4857_v19  ;;  %v858_v20 = vadd.f32 %v856_v41, %v836_v18  ;;  %v879_v14 = vadd.f32 %v877_v35, %v857_v28  ;;  %v6332_v18 = vld [vmem:[#allocation93_spill] sm:$0xff]  ;;  %v6333_v28 = vld [vmem:[#allocation94_spill] sm:$0xff] }
 0xa98   :  { %v4866_v29 = vadd.f32 %v575_v3, %v366_v2  ;;  %v907_v12 = vsel %vm796_vm14, %v6324_v4, %v6325_v61  ;;  %v921_v22 = vmul.f32 %v6328_v7, %v4845_v46  ;;  %v4877_v26 = vsel %vm1558_vm12, %v1644_v1, %v4386_v53  ;;  %v4888_v61 = vpop.permute.xlu0 %1815 }
 0xa99   :  { %6329 = vst [vmem:[#allocation39_spill] sm:$0xff] %v4877_v26  ;;  %v4882_v15 = vsel %vm1558_vm12, %v4386_v53, %v1644_v1  ;;  %v1661_v2 = vmul.f32 %v4409_v50, %v4877_v26  ;;  %6331 = vst [vmem:[#allocation55_spill] sm:$0xff] %v4888_v61  ;;  %v1641_v41 = vadd.f32 %v1639_v30, %v4683_v32  ;;  %v6335_v53 = vld [vmem:[#allocation126_spill] sm:$0xff]  ;;  %v6338_v32 = vld [vmem:[#allocation96_spill] sm:$0xff]  ;;  %vm991_vm8 = vcmp.ge.s32.totalorder %v4584_v11, 1 }
 0xa9a   :  { %6327 = vst [vmem:[#allocation40_spill] sm:$0xff] %v4866_v29  ;;  %6330 = vst [vmem:[#allocation54_spill] sm:$0xff] %v4882_v15  ;;  %v1662_v35 = vmul.f32 %v4409_v50, %v4882_v15  ;;  %v1642_v3 = vadd.f32 %v1640_v21, %v4685_v33  ;;  %v930_v4 = vsel %vm796_vm14, %v6333_v28, %v6332_v18  ;;  %v6334_v29 = vld [vmem:[#allocation98_spill] sm:$0xff]  ;;  %v6337_v50 = vmov 26   ;;  %v4906_v33 = vpop.permute.xlu1 %1650 }
 0xa9b   :  { %v4900_v1 = vsel %vm796_vm14, %v6335_v53, %v6334_v29  ;;  %v880_v26 = vadd.f32 %v878_v9, %v858_v20  ;;  %v901_v24 = vadd.f32 %v899_v37, %v879_v14  ;;  %2668 = vset.pattern.permute.xlu1 %v6337_v50  ;;  %v922_v15 = vmul.f32 %v6328_v7, %v907_v12  ;;  %v6342_v7 = vld [vmem:[#allocation127_spill] sm:$0xff] }
 0xa9c   :  { %6336 = vst [vmem:[#allocation53_spill] sm:$0xff] %v4900_v1  ;;  %v943_v30 = vmul.f32 %v6338_v32, %v930_v4  ;;  %2024 = vperm.xlu1 %2668, %v4378_v36   ;;  %6339 = vst [vmem:[#allocation100_spill] sm:$0xff] %v4906_v33  ;;  %v4908_v21 = vadd.f32 %v1661_v2, %v1641_v41  ;;  %v4910_v61 = vadd.f32 %v1662_v35, %v1642_v3  ;;  %v4928_v3 = vpop.permute.xlu0 %1832 }
 0xa9d   :  { %v929_v20 = vsel %vm796_vm14, %v6332_v18, %v6333_v28  ;;  %v4920_v37 = vsel %vm796_vm14, %v6334_v29, %v6335_v53  ;;  %v4923_v14 = vadd.f32 %v576_v55, %v367_v40  ;;  %v965_v2 = vmul.f32 %v6342_v7, %v4900_v1  ;;  %6343 = vst [vmem:[#allocation41_spill] sm:$0xff] %v4928_v3  ;;  %v2727_v18 = vld [vmem:[#allocation2] sm:$0xff]  ;;  %v6344_v28 = vld [vmem:[#allocation129_spill] sm:$0xff] }
 0xa9e   :  { %6340 = vst [vmem:[#allocation74_spill] sm:$0xff] %v4920_v37  ;;  %v944_v9 = vmul.f32 %v6338_v32, %v929_v20  ;;  %v902_v35 = vadd.f32 %v900_v42, %v880_v26  ;;  %v923_v41 = vadd.f32 %v921_v22, %v901_v24  ;;  %v1013_v50 = vmul.f32 %v2727_v18, %v6344_v28  ;;  %v6345_v53 = vld [vmem:[#allocation79_spill] sm:$0xff]  ;;  %v6346_v40 = vld [vmem:[#allocation101_spill] sm:$0xff] }
 0xa9f   :  { %6341 = vst [vmem:[#allocation42_spill] sm:$0xff] %v4923_v14  ;;  %v1014_v29 = vmul.f32 %v4691_v54, %v6344_v28  ;;  %v4935_v33 = vmul.f32 %v6345_v53, %v4722_v59  ;;  %v6347_v55 = vld [vmem:[#allocation103_spill] sm:$0xff]  ;;  %v966_v24 = vmul.f32 %v6342_v7, %v4920_v37  ;;  %v6349_v22 = vld [vmem:[#allocation105_spill] sm:$0xff]  ;;  %vm992_vm0 = vcmp.ge.s32.totalorder %v4622_v10, 1  ;;  %v1666_v59 = vpop.permute.xlu1 %1665 }
 0xaa0   :  { %v4941_v32 = vsel %vm796_vm14, %v6347_v55, %v6346_v40  ;;  %v924_v26 = vadd.f32 %v922_v15, %v902_v35  ;;  %v945_v3 = vadd.f32 %v943_v30, %v923_v41  ;;  %v2957_v28 = vmov 35   ;;  %v6350_v1 = vld [vmem:[#allocation85_spill] sm:$0xff]  ;;  %v4969_v41 = vpop.permute.xlu0 %1845 }
 0xaa1   :  { %6348 = vst [vmem:[#allocation104_spill] sm:$0xff] %v4941_v32  ;;  %v987_v42 = vmul.f32 %v6349_v22, %v4941_v32  ;;  %2670 = vset.pattern.permute.xlu1 %v2957_v28  ;;  %v4950_v14 = vmul.f32 %v6345_v53, %v4745_v13  ;;  %v4954_v63 = vmul.f32 %v6350_v1, %v4780_v31  ;;  %6352 = vst [vmem:[#allocation121_spill] sm:$0xff] %v4969_v41  ;;  %v6353_v31 = vld [vmem:[#allocation120_spill] sm:$0xff]  ;;  %v6356_v28 = vld [vmem:[#allocation134_spill] sm:$0xff] }
 0xaa2   :  { %v4958_v7 = vmul.f32 %v6350_v1, %v4819_v60  ;;  %v4964_v15 = vsel %vm796_vm14, %v6346_v40, %v6347_v55  ;;  %2046 = vperm.xlu1 %2670, %v4378_v36   ;;  %v946_v30 = vadd.f32 %v944_v9, %v924_v26  ;;  %v967_v35 = vadd.f32 %v965_v2, %v945_v3  ;;  %v6355_v60 = vld [vmem:[#allocation146_spill] sm:$0xff]  ;;  %v6357_v32 = vld [vmem:[#allocation133_spill] sm:$0xff]  ;;  %v6358_v55 = vld [vmem:[#allocation147_spill] sm:$0xff] }
 0xaa3   :  { %6351 = vst [vmem:[#allocation56_spill] sm:$0xff] %v4964_v15  ;;  %v988_v13 = vmul.f32 %v6349_v22, %v4964_v15  ;;  %v4973_v53 = vmul.f32 %v6353_v31, %v4839_v48  ;;  %v660_v1 = vmul.f32 %v6355_v60, %v4526_v6  ;;  %v1055_v40 = vsel %vm116_vm2, %v6357_v32, %v6356_v28  ;;  %v6359_v2 = vld [vmem:[#allocation91_spill] sm:$0xff]  ;;  %v1668_v26 = vpop.permute.xlu1 %1667  ;;  %v6362_v41 = vld [vmem:[#allocation124_spill] sm:$0xff] }
 0xaa4   :  { %v1056_v37 = vsel %vm116_vm2, %v6356_v28, %v6358_v55  ;;  %v4985_v9 = vmul.f32 %v6353_v31, %v4857_v19  ;;  %v4989_v3 = vmul.f32 %v6359_v2, %v4845_v46  ;;  %v968_v48 = vadd.f32 %v966_v24, %v946_v30  ;;  %v6364_v15 = vld [vmem:[#allocation136_spill] sm:$0xff]  ;;  %v6366_v55 = vld [vmem:[#allocation151_spill] sm:$0xff] }
 0xaa5   :  { %6354 = vst [vmem:[#allocation81_spill] sm:$0xff] %v4973_v53  ;;  %v989_v22 = vadd.f32 %v987_v42, %v967_v35  ;;  %v4992_v6 = vmul.f32 %v6359_v2, %v907_v12  ;;  %v4995_v32 = vmul.f32 %v6362_v41, %v930_v4  ;;  %v6365_v53 = vld [vmem:[#allocation150_spill] sm:$0xff]  ;;  %v1100_v19 = vsel %vm149_vm3, %v6364_v15, %v6366_v55 }
 0xaa6   :  { %6360 = vst [vmem:[#allocation102_spill] sm:$0xff] %v4989_v3  ;;  %v1099_v28 = vsel %vm149_vm3, %v6365_v53, %v6364_v15  ;;  %v2958_v31 = vmov 116   ;;  %v5004_v46 = vmul.f32 %v6362_v41, %v929_v20  ;;  %v1059_v24 = vadd.f32 %v1055_v40, %v1013_v50  ;;  %v6368_v35 = vld [vmem:[#allocation138_spill] sm:$0xff]  ;;  %v6370_v15 = vld [vmem:[#allocation155_spill] sm:$0xff]  ;;  %v5016_v20 = vpop.permute.xlu0 %1859  ;;  %v6447_v3 = vld [vmem:[#allocation24_spill] sm:$0xff] }
 0xaa7   :  { %6361 = vst [vmem:[#allocation125_spill] sm:$0xff] %v4992_v6  ;;  %6363 = vst [vmem:[#allocation57_spill] sm:$0xff] %v4995_v32  ;;  %2671 = vset.pattern.permute.xlu1 %v2958_v31  ;;  %v1060_v42 = vadd.f32 %v1056_v37, %v1014_v29  ;;  %v990_v12 = vadd.f32 %v988_v13, %v968_v48  ;;  %v661_v4 = vmul.f32 %v6355_v60, %v4557_v44  ;;  %v6369_v53 = vld [vmem:[#allocation154_spill] sm:$0xff]  ;;  %v1681_v13 = vpop.permute.xlu1 %1680  ;;  %v6372_v44 = vld [vmem:[#allocation140_spill] sm:$0xff] }
 0xaa8   :  { %6367 = vst [vmem:[#allocation58_spill] sm:$0xff] %v5004_v46  ;;  %2054 = vperm.xlu1 %2671, %v4378_v36   ;;  %v662_v30 = vadd.f32 %v660_v1, %v4542_v56  ;;  %v1143_v2 = vsel %vm182_vm4, %v6369_v53, %v6368_v35  ;;  %v1144_v55 = vsel %vm182_vm4, %v6368_v35, %v6370_v15  ;;  %6371 = vst [vmem:[#allocation59_spill] sm:$0xff] %v5016_v20  ;;  %v6373_v41 = vld [vmem:[#allocation158_spill] sm:$0xff]  ;;  %v6374_v60 = vld [vmem:[#allocation159_spill] sm:$0xff] }
 0xaa9   :  { %v1103_v50 = vadd.f32 %v1099_v28, %v1059_v24  ;;  %v1104_v37 = vadd.f32 %v1100_v19, %v1060_v42  ;;  %v5020_v29 = vsel %vm991_vm8, %v989_v22, 0.0  ;;  %v1187_v56 = vsel %vm63_vm1, %v6373_v41, %v6372_v44  ;;  %v6377_v24 = vld [vmem:[#allocation106_spill] sm:$0xff]  ;;  %v6410_v20 = vld [vmem:[#allocation131_spill] sm:$0xff] }
 0xaaa   :  { %v1188_v1 = vsel %vm63_vm1, %v6372_v44, %v6374_v60  ;;  %v5030_v40 = vsel %vm1558_vm12, %v1666_v59, %v1668_v26  ;;  %v5034_v48 = vsel %vm1558_vm12, %v1668_v26, %v1666_v59  ;;  %v5041_v42 = vmul.f32 %v2727_v18, %v6377_v24  ;;  %v6445_v6 = vld [vmem:[#allocation90_spill] sm:$0xff] }
 0xaab   :  { %6375 = vst [vmem:[#allocation60_spill] sm:$0xff] %v5030_v40  ;;  %6376 = vst [vmem:[#allocation61_spill] sm:$0xff] %v5034_v48  ;;  %v1147_v28 = vadd.f32 %v1143_v2, %v1103_v50  ;;  %v1148_v22 = vadd.f32 %v1144_v55, %v1104_v37  ;;  %v1683_v19 = vmul.f32 %v1681_v13, %v5030_v40  ;;  %v5047_v59 = vsel %vm992_vm0, %v990_v12, 0.0  ;;  %v6378_v55 = vld [vmem:[#allocation142_spill] sm:$0xff]  ;;  %v1688_v44 = vpop.permute.xlu1 %1687 }
 0xaac   :  { %v1684_v31 = vmul.f32 %v1681_v13, %v5034_v48  ;;  %1974 = vrot.lane.b32.xlu1 %v4691_v54, %s2944_s25  ;;  %v663_v35 = vadd.f32 %v661_v4, %v4551_v38  ;;  %v684_v53 = vadd.f32 %v4629_v57, %v662_v30  ;;  %v2959_v26 = vmov 125   ;;  %v6379_v50 = vld [vmem:[#allocation162_spill] sm:$0xff]  ;;  %v6380_v13 = vld [vmem:[#allocation163_spill] sm:$0xff]  ;;  %v5055_v38 = vpop.permute.xlu0 %1353  ;;  %v6382_v57 = vld [vmem:[#allocation177_spill] sm:$0xff] }
 0xaad   :  { %2673 = vset.pattern.permute.xlu1 %v2959_v26  ;;  %v1191_v2 = vadd.f32 %v1187_v56, %v1147_v28  ;;  %v1192_v15 = vadd.f32 %v1188_v1, %v1148_v22  ;;  %v1231_v37 = vsel %vm247_vm5, %v6379_v50, %v6378_v55  ;;  %v1232_v18 = vsel %vm247_vm5, %v6378_v55, %v6380_v13  ;;  %v6383_v4 = vld [vmem:[#allocation180_spill] sm:$0xff]  ;;  %v6390_v50 = vld [vmem:[#allocation166_spill] sm:$0xff] }
 0xaae   :  { %6381 = vst [vmem:[#allocation108_spill] sm:$0xff] %v5055_v38  ;;  %v5061_v12 = vsel %vm1349_vm11, %v6383_v4, %v6382_v57  ;;  %v5067_v30 = vsel %vm1349_vm11, %v6382_v57, %v6383_v4  ;;  %v5072_v41 = vsel %vm1558_vm12, %v1688_v44, %v4508_v23  ;;  %v5077_v56 = vsel %vm1558_vm12, %v4508_v23, %v1688_v44  ;;  %v6388_v28 = vld [vmem:[#allocation28_spill] sm:$0xff]  ;;  %v6391_v57 = vld [vmem:[#allocation167_spill] sm:$0xff]  ;;  %v6393_v4 = vld [vmem:[#allocation174_spill] sm:$0xff] }
 0xaaf   :  { %6384 = vst [vmem:[#allocation107_spill] sm:$0xff] %v5061_v12  ;;  %6385 = vst [vmem:[#allocation64_spill] sm:$0xff] %v5067_v30  ;;  %v1705_v60 = vmul.f32 %v4536_v52, %v5072_v41  ;;  %v1706_v1 = vmul.f32 %v4536_v52, %v5077_v56  ;;  %v1685_v22 = vadd.f32 %v1683_v19, %v4908_v21  ;;  %v6389_v55 = vld [vmem:[#allocation144_spill] sm:$0xff]  ;;  %vm1545_vm14 = vcmp.lt.s32.totalorder %v4622_v10, 15 }
 0xab0   :  { %6386 = vst [vmem:[#allocation63_spill] sm:$0xff] %v5072_v41  ;;  %6387 = vst [vmem:[#allocation65_spill] sm:$0xff] %v5077_v56  ;;  %1997 = vrot.lane.b32.xlu1 %v6388_v28, %s2944_s25  ;;  %v1686_v26 = vadd.f32 %v1684_v31, %v4910_v61  ;;  %v1275_v13 = vsel %vm280_vm6, %v6390_v50, %v6389_v55  ;;  %v1276_v23 = vsel %vm280_vm6, %v6389_v55, %v6391_v57  ;;  %v6392_v44 = vld [vmem:[#allocation176_spill] sm:$0xff]  ;;  %v6396_v61 = vld [vmem:[#allocation179_spill] sm:$0xff]  ;;  %v5109_v28 = vpop.permute.xlu1 %1694  ;;  %v5111_v55 = vpop.permute.xlu0 %1876 }
 0xab1   :  { %v5097_v52 = vsel %vm1349_vm11, %v6393_v4, %v6392_v44  ;;  %v5103_v21 = vsel %vm1349_vm11, %v6392_v44, %v6393_v4  ;;  %v1386_v19 = vmul.f32 %v6396_v61, %v5061_v12  ;;  %v1387_v31 = vmul.f32 %v6396_v61, %v5067_v30  ;;  %6397 = vst [vmem:[#allocation62_spill] sm:$0xff] %v5109_v28  ;;  %v6399_v56 = vld [vmem:[#allocation178_spill] sm:$0xff]  ;;  %v6401_v48 = vld [vmem:[#allocation184_spill] sm:$0xff] }
 0xab2   :  { %6394 = vst [vmem:[#allocation66_spill] sm:$0xff] %v5097_v52  ;;  %6395 = vst [vmem:[#allocation110_spill] sm:$0xff] %v5103_v21  ;;  %v5113_v50 = vadd.f32 %v1705_v60, %v1685_v22  ;;  %v5115_v57 = vadd.f32 %v1706_v1, %v1686_v26  ;;  %v1364_v41 = vmul.f32 %v6399_v56, %v5097_v52  ;;  %v6400_v4 = vld [vmem:[#allocation186_spill] sm:$0xff]  ;;  %v6404_v1 = vld [vmem:[#allocation181_spill] sm:$0xff] }
 0xab3   :  { %6398 = vst [vmem:[#allocation111_spill] sm:$0xff] %v5111_v55  ;;  %v1365_v44 = vmul.f32 %v6399_v56, %v5103_v21  ;;  %v5125_v40 = vsel %vm1349_vm11, %v6401_v48, %v6400_v4  ;;  %v5131_v60 = vsel %vm1349_vm11, %v6400_v4, %v6401_v48  ;;  %v6405_v22 = vld [vmem:[#allocation190_spill] sm:$0xff]  ;;  %v6408_v61 = vld [vmem:[#allocation188_spill] sm:$0xff]  ;;  %v5152_v4 = vmul.f32 %v4691_v54, %v6377_v24 }
 0xab4   :  { %6402 = vst [vmem:[#allocation68_spill] sm:$0xff] %v5125_v40  ;;  %6403 = vst [vmem:[#allocation69_spill] sm:$0xff] %v5131_v60  ;;  %v5137_v26 = vsel %vm1349_vm11, %v6405_v22, %v6404_v1  ;;  %v5143_v56 = vsel %vm1349_vm11, %v6404_v1, %v6405_v22  ;;  %2076 = vperm.xlu1 %2673, %v4378_v36   ;;  %v1408_v28 = vmul.f32 %v6408_v61, %v5125_v40  ;;  %v6409_v55 = vld [vmem:[#allocation130_spill] sm:$0xff] }
 0xab5   :  { %6406 = vst [vmem:[#allocation71_spill] sm:$0xff] %v5137_v26  ;;  %6407 = vst [vmem:[#allocation114_spill] sm:$0xff] %v5143_v56  ;;  %v1409_v48 = vmul.f32 %v6408_v61, %v5131_v60  ;;  %v5157_v30 = vsel %vm116_vm2, %v6410_v20, %v6409_v55  ;;  %v1235_v12 = vadd.f32 %v1231_v37, %v1191_v2  ;;  %v1710_v61 = vpop.permute.xlu1 %1709  ;;  %v5165_v60 = vpop.permute.xlu0 %1889  ;;  %v6412_v20 = vld [vmem:[#allocation183_spill] sm:$0xff] }
 0xab6   :  { %v1236_v1 = vadd.f32 %v1232_v18, %v1192_v15  ;;  %v5160_v22 = vadd.f32 %v4636_v45, %v663_v35  ;;  %v5163_v21 = vadd.f32 %v4700_v17, %v684_v53  ;;  %v1388_v40 = vadd.f32 %v1386_v19, %v1364_v41  ;;  %6411 = vst [vmem:[#allocation92_spill] sm:$0xff] %v5165_v60  ;;  %v6413_v45 = vld [vmem:[#allocation195_spill] sm:$0xff]  ;;  %v6414_v35 = vld [vmem:[#allocation194_spill] sm:$0xff] }
 0xab7   :  { %v1389_v38 = vadd.f32 %v1387_v31, %v1365_v44  ;;  %v5167_v24 = vadd.f32 %v1275_v13, %v1235_v12  ;;  %v1430_v46 = vmul.f32 %v6412_v20, %v5137_v26  ;;  %v1431_v2 = vmul.f32 %v6412_v20, %v5143_v56  ;;  %v6418_v12 = vld [vmem:[#allocation197_spill] sm:$0xff]  ;;  %v6420_v19 = vld [vmem:[#allocation198_spill] sm:$0xff]  ;;  %v6426_v20 = vld [vmem:[#allocation175_spill] sm:$0xff] }
 0xab8   :  { %v5169_v52 = vadd.f32 %v1276_v23, %v1236_v1  ;;  %v5179_v17 = vsel %vm1349_vm11, %v6414_v35, %v6413_v45  ;;  %v5185_v53 = vsel %vm1349_vm11, %v6413_v45, %v6414_v35  ;;  %v6417_v15 = vmov 14   ;;  %v6419_v23 = vld [vmem:[#allocation189_spill] sm:$0xff]  ;;  %v6429_v60 = vld [vmem:[#allocation191_spill] sm:$0xff] }
 0xab9   :  { %6415 = vst [vmem:[#allocation70_spill] sm:$0xff] %v5179_v17  ;;  %6416 = vst [vmem:[#allocation115_spill] sm:$0xff] %v5185_v53  ;;  %2674 = vset.pattern.permute.xlu1 %v6417_v15  ;;  %v1410_v37 = vadd.f32 %v1408_v28, %v1388_v40  ;;  %v1411_v18 = vadd.f32 %v1409_v48, %v1389_v38  ;;  %v1452_v41 = vmul.f32 %v6418_v12, %v5179_v17  ;;  %v6423_v40 = vld [vmem:[#allocation171_spill] sm:$0xff]  ;;  %v6424_v38 = vld [vmem:[#allocation170_spill] sm:$0xff] }
 0xaba   :  { %v1453_v13 = vmul.f32 %v6418_v12, %v5185_v53  ;;  %v5196_v31 = vsel %vm1349_vm11, %v6420_v19, %v6419_v23  ;;  %v5202_v44 = vsel %vm1349_vm11, %v6419_v23, %v6420_v19  ;;  %1911 = vperm.xlu1 %2674, %v4625_v43   ;;  %v5208_v28 = vsel %vm315_vm7, %v6424_v38, %v6423_v40  ;;  %v6425_v48 = vld [vmem:[#allocation172_spill] sm:$0xff]  ;;  %v5219_v35 = vld [vmem:[#allocation2 + $0x10] sm:$0xff]  ;;  %v1712_v12 = vpop.permute.xlu1 %1711  ;;  %v5229_v38 = vpop.permute.xlu0 %1903  ;;  %v6443_v26 = vld [vmem:[#allocation23_spill] sm:$0xff] }
 0xabb   :  { %6421 = vst [vmem:[#allocation109_spill] sm:$0xff] %v5196_v31  ;;  %6422 = vst [vmem:[#allocation67_spill] sm:$0xff] %v5202_v44  ;;  %v5213_v1 = vsel %vm315_vm7, %v6423_v40, %v6425_v48  ;;  %v5217_v45 = vmul.f32 %v4691_v54, %v6426_v20  ;;  %v5223_v15 = vmul.f32 %v5219_v35, %v6426_v20  ;;  %v6432_v17 = vld [vmem:[#allocation208_spill] sm:$0xff]  ;;  %v6433_v56 = vld [vmem:[#allocation205_spill] sm:$0xff] }
 0xabc   :  { %6427 = vst [vmem:[#allocation78_spill] sm:$0xff] %v5219_v35  ;;  %v1713_v23 = vsel %vm1558_vm12, %v1710_v61, %v1712_v12  ;;  %v1714_v19 = vsel %vm1558_vm12, %v1712_v12, %v1710_v61  ;;  %6428 = vst [vmem:[#allocation116_spill] sm:$0xff] %v5229_v38  ;;  %v1432_v40 = vadd.f32 %v1430_v46, %v1410_v37  ;;  %v6438_v38 = vld [vmem:[#allocation199_spill] sm:$0xff] }
 0xabd   :  { %v1433_v48 = vadd.f32 %v1431_v2, %v1411_v18  ;;  %v1474_v54 = vmul.f32 %v6429_v60, %v5196_v31  ;;  %v1475_v53 = vmul.f32 %v6429_v60, %v5202_v44  ;;  %v5236_v20 = vmul.f32 %v4580_v39, %v1713_v23  ;;  %v6436_v60 = vld [vmem:[#allocation29_spill] sm:$0xff] }
 0xabe   :  { %v5239_v35 = vmul.f32 %v4580_v39, %v1714_v19  ;;  %v5245_v61 = vsel %vm1349_vm11, %v6433_v56, %v6432_v17  ;;  %v5251_v46 = vsel %vm1349_vm11, %v6432_v17, %v6433_v56  ;;  %2019 = vrot.lane.b32.xlu1 %v6436_v60, %s2944_s25  ;;  %v1454_v2 = vadd.f32 %v1452_v41, %v1432_v40  ;;  %v6437_v39 = vld [vmem:[#allocation15_spill] sm:$0xff]  ;;  %v1725_v31 = vpop.permute.xlu1 %1724 }
 0xabf   :  { %6430 = vst [vmem:[#allocation112_spill] sm:$0xff] %v5236_v20  ;;  %6434 = vst [vmem:[#allocation75_spill] sm:$0xff] %v5245_v61  ;;  %v1455_v37 = vadd.f32 %v1453_v13, %v1433_v48  ;;  %v1496_v18 = vmul.f32 %v6437_v39, %v5245_v61  ;;  %v1497_v12 = vmul.f32 %v6437_v39, %v5251_v46  ;;  %v6439_v20 = vld [vmem:[#allocation200_spill] sm:$0xff]  ;;  %v6440_v56 = vmov 6   ;;  %v6441_v17 = vld [vmem:[#allocation187_spill] sm:$0xff] }
 0xac0   :  { %6431 = vst [vmem:[#allocation73_spill] sm:$0xff] %v5239_v35  ;;  %6435 = vst [vmem:[#allocation76_spill] sm:$0xff] %v5251_v46  ;;  %v360_v35 = vmul.f32 %v4847_v34, %v6438_v38  ;;  %v361_v44 = vmul.f32 %v4847_v34, %v6439_v20  ;;  %2677 = vset.pattern.permute.xlu1 %v6440_v56  ;;  %v803_v60 = vmul.f32 %v6441_v17, %v4758_v5  ;;  %v6442_v48 = vld [vmem:[#allocation196_spill] sm:$0xff]  ;;  %v545_v46 = vpop.permute.xlu0 %544  ;;  %v6444_v34 = vld [vmem:[#allocation21_spill] sm:$0xff] }
 0xac1   :  { %v804_v41 = vmul.f32 %v6441_v17, %v4803_v0  ;;  %v1727_v13 = vmul.f32 %v1725_v31, %v1713_v23  ;;  %v1728_v40 = vmul.f32 %v1725_v31, %v1714_v19  ;;  %v847_v39 = vmul.f32 %v6442_v48, %v4771_v16  ;;  %v6446_v23 = vld [vmem:[#allocation44_spill] sm:$0xff] }
 0xac2   :  { %v1476_v61 = vadd.f32 %v1474_v54, %v1454_v2  ;;  %v1477_v38 = vadd.f32 %v1475_v53, %v1455_v37  ;;  %v547_v32 = vmul.f32 %v545_v46, %v6443_v26  ;;  %v548_v20 = vmul.f32 %v545_v46, %v6444_v34  ;;  %2098 = vperm.xlu1 %2677, %v4625_v43   ;;  %v1732_v19 = vpop.permute.xlu1 %1731  ;;  %v6448_v53 = vld [vmem:[#allocation95_spill] sm:$0xff]  ;;  %v6450_v46 = vld [vmem:[#allocation18_spill] sm:$0xff] }
 0xac3   :  { %v1729_v56 = vadd.f32 %v1727_v13, %v5113_v50  ;;  %v1730_v5 = vadd.f32 %v1728_v40, %v5115_v57  ;;  %v362_v0 = vadd.f32 %v360_v35, %v6445_v6  ;;  %v363_v31 = vadd.f32 %v361_v44, %v6446_v23  ;;  %v6449_v57 = vld [vmem:[#allocation45_spill] sm:$0xff]  ;;  %v6453_v13 = vld [vmem:[#allocation207_spill] sm:$0xff] }
 0xac4   :  { %v1498_v17 = vadd.f32 %v1496_v18, %v1476_v61  ;;  %v1499_v16 = vadd.f32 %v1497_v12, %v1477_v38  ;;  %v549_v54 = vadd.f32 %v547_v32, %v6447_v3  ;;  %v550_v2 = vadd.f32 %v548_v20, %v6448_v53  ;;  %v5299_v35 = vpop.permute.xlu0 %2002  ;;  %v6452_v18 = vld [vmem:[#allocation206_spill] sm:$0xff] }
 0xac5   :  { %v1735_v26 = vsel %vm1558_vm12, %v1732_v19, %v4613_v58  ;;  %v1736_v50 = vsel %vm1558_vm12, %v4613_v58, %v1732_v19  ;;  %v5289_v6 = vsel %vm1349_vm11, %v6450_v46, %v6449_v57  ;;  %v5295_v3 = vsel %vm1349_vm11, %v6449_v57, %v6450_v46  ;;  %v6451_v58 = vld [vmem:[#allocation46_spill] sm:$0xff] }
 0xac6   :  { %v1749_v32 = vmul.f32 %v4650_v8, %v1735_v26  ;;  %v1750_v44 = vmul.f32 %v4650_v8, %v1736_v50  ;;  %vm1544_vm12 = vcmp.lt.s32.totalorder %v4584_v11, 15  ;;  %v1540_v61 = vmul.f32 %v6451_v58, %v5289_v6  ;;  %v1739_v20 = vpop.permute.xlu1 %1738 }
 0xac7   :  { %v1541_v37 = vmul.f32 %v6451_v58, %v5295_v3  ;;  %v571_v12 = vadd.f32 %v6452_v18, %v549_v54  ;;  %v572_v40 = vadd.f32 %v6453_v13, %v550_v2  ;;  %v2960_v38 = vmov 70   ;;  %v6455_v58 = vld [vmem:[#allocation43_spill] sm:$0xff] }
 0xac8   :  { %2678 = vset.pattern.permute.xlu1 %v2960_v38  ;;  %v370_v8 = vsel %vm364_vm13, %v362_v0, 0.0  ;;  %v371_v34 = vsel %vm365_vm15, %v363_v31, 0.0  ;;  %v1751_v23 = vadd.f32 %v1749_v32, %v1729_v56  ;;  %v1752_v19 = vadd.f32 %v1750_v44, %v1730_v5  ;;  %v5329_v32 = vpop.permute.xlu0 %2032  ;;  %v6454_v44 = vld [vmem:[#allocation19_spill] sm:$0xff]  ;;  %v6460_v38 = vld [vmem:[#allocation25_spill] sm:$0xff] }
 0xac9   :  { %1925 = vperm.xlu1 %2678, %v4378_v36   ;;  %v579_v53 = vsel %vm573_vm9, %v571_v12, 0.0  ;;  %v580_v54 = vsel %vm574_vm10, %v572_v40, 0.0  ;;  %v5318_v2 = vmul.f32 %v1739_v20, %v1735_v26  ;;  %v5320_v57 = vmul.f32 %v1739_v20, %v1736_v50 }
 0xaca   :  { %v1323_v0 = vadd.f32 %v5208_v28, %v5167_v24  ;;  %v848_v31 = vmul.f32 %v6442_v48, %v4813_v62  ;;  %v581_v36 = vadd.f32 %v579_v53, %v370_v8  ;;  %v582_v46 = vadd.f32 %v580_v54, %v371_v34  ;;  %v6456_v48 = vld [vmem:[#allocation30_spill] sm:$0xff] }
 0xacb   :  { %v1324_v56 = vadd.f32 %v5213_v1, %v5169_v52  ;;  %v827_v5 = vadd.f32 %v4935_v33, %v803_v60  ;;  %v1520_v26 = vadd.f32 %v6454_v44, %v1498_v17  ;;  %v1521_v50 = vadd.f32 %v6455_v58, %v1499_v16  ;;  %v1764_v52 = vpop.permute.xlu1 %1763  ;;  %v6461_v34 = vld [vmem:[#allocation26_spill] sm:$0xff] }
 0xacc   :  { %v1339_v18 = vadd.f32 %v5217_v45, %v1323_v0  ;;  %v828_v24 = vadd.f32 %v4950_v14, %v804_v41  ;;  %v790_v28 = vadd.f32 %v4793_v25, %v581_v36  ;;  %v791_v62 = vadd.f32 %v4797_v51, %v582_v46  ;;  %v6458_v51 = vld [vmem:[#allocation132_spill] sm:$0xff]  ;;  %v6464_v46 = vld [vmem:[#allocation149_spill] sm:$0xff] }
 0xacd   :  { %2039 = vrot.lane.b32.xlu1 %v6456_v48, %s2944_s25  ;;  %v1340_v33 = vadd.f32 %v5223_v15, %v1324_v56  ;;  %v849_v1 = vadd.f32 %v847_v39, %v827_v5  ;;  %v6457_v60 = vmov 15   ;;  %v1542_v17 = vadd.f32 %v1540_v61, %v1520_v26  ;;  %v5353_v61 = vpop.permute.xlu0 %1972  ;;  %v6463_v36 = vld [vmem:[#allocation148_spill] sm:$0xff] }
 0xace   :  { %2680 = vset.pattern.permute.xlu1 %v6457_v60  ;;  %v1543_v12 = vadd.f32 %v1541_v37, %v1521_v50  ;;  %v850_v16 = vadd.f32 %v848_v31, %v828_v24  ;;  %v999_v45 = vadd.f32 %v5020_v29, %v790_v28  ;;  %v1000_v14 = vadd.f32 %v5047_v59, %v791_v62  ;;  %v6459_v29 = vld [vmem:[#allocation31_spill] sm:$0xff]  ;;  %v6466_v50 = vld [vmem:[#allocation152_spill] sm:$0xff]  ;;  %v6467_v24 = vld [vmem:[#allocation153_spill] sm:$0xff] }
 0xacf   :  { %vm1767_vm11 = vcmp.lt.s32.totalorder %v4003_v49, 125  ;;  %v1037_v25 = vadd.f32 %v5157_v30, %v5041_v42  ;;  %v1034_v41 = vsel %vm116_vm2, %v6409_v55, %v6458_v51  ;;  %v707_v15 = vadd.f32 %v4706_v47, %v5160_v22  ;;  %v1766_v59 = vpop.permute.xlu1 %1765  ;;  %v6462_v31 = vld [vmem:[#allocation135_spill] sm:$0xff]  ;;  %v6468_v62 = vld [vmem:[#allocation81_spill] sm:$0xff]  ;;  %v6470_v60 = vld [vmem:[#allocation50_spill] sm:$0xff] }
 0xad0   :  { %v728_v39 = vadd.f32 %v4716_v27, %v5163_v21  ;;  %vm1753_vm13 = vcmp.lt.s32.totalorder %v4584_v11, 14  ;;  %vm1754_vm15 = vcmp.lt.s32.totalorder %v4622_v10, 14  ;;  %v1343_v42 = vadd.f32 %v1339_v18, %v999_v45  ;;  %v6471_v45 = vld [vmem:[#allocation53_spill] sm:$0xff] }
 0xad1   :  { %2041 = vrot.lane.b32.xlu1 %v6459_v29, %s2944_s25  ;;  %v1344_v30 = vadd.f32 %v1340_v33, %v1000_v14  ;;  %v1768_v55 = vsel %vm1767_vm11, %v1764_v52, %v1766_v59  ;;  %v1769_v47 = vsel %vm1767_vm11, %v1766_v59, %v1764_v52  ;;  %v1550_v27 = vsel %vm1544_vm12, %v1542_v17, 0.0  ;;  %v5371_v53 = vpop.permute.xlu0 %1995  ;;  %v6469_v33 = vld [vmem:[#allocation97_spill] sm:$0xff]  ;;  %v6472_v14 = vld [vmem:[#allocation99_spill] sm:$0xff]  ;;  %v6475_v29 = vld [vmem:[#allocation156_spill] sm:$0xff] }
 0xad2   :  { %v1551_v21 = vsel %vm1545_vm14, %v1543_v12, 0.0  ;;  %v871_v22 = vadd.f32 %v4954_v63, %v849_v1  ;;  %v872_v37 = vadd.f32 %v4958_v7, %v850_v16  ;;  %v1552_v13 = vadd.f32 %v1550_v27, %v1343_v42  ;;  %v6476_v42 = vld [vmem:[#allocation157_spill] sm:$0xff] }
 0xad3   :  { %v1553_v40 = vadd.f32 %v1551_v21, %v1344_v30  ;;  %v729_v8 = vadd.f32 %v6460_v38, %v707_v15  ;;  %v750_v20 = vadd.f32 %v6461_v34, %v728_v39  ;;  %v1759_v54 = vsel %vm1753_vm13, %v1751_v23, 0.0  ;;  %v1780_v56 = vpop.permute.xlu1 %1779  ;;  %v6474_v39 = vld [vmem:[#allocation139_spill] sm:$0xff]  ;;  %v6478_v38 = vld [vmem:[#allocation102_spill] sm:$0xff]  ;;  %v6479_v34 = vld [vmem:[#allocation125_spill] sm:$0xff] }
 0xad4   :  { %v1760_v0 = vsel %vm1754_vm15, %v1752_v19, 0.0  ;;  %v1077_v63 = vsel %vm149_vm3, %v6463_v36, %v6462_v31  ;;  %v1078_v7 = vsel %vm149_vm3, %v6462_v31, %v6464_v46  ;;  %v5384_v5 = vadd.f32 %v1759_v54, %v1552_v13  ;;  %v6465_v19 = vld [vmem:[#allocation137_spill] sm:$0xff]  ;;  %v6480_v54 = vld [vmem:[#allocation52_spill] sm:$0xff]  ;;  %v6481_v36 = vld [vmem:[#allocation51_spill] sm:$0xff] }
 0xad5   :  { %2120 = vperm.xlu1 %2680, %v4625_v43   ;;  %v5386_v44 = vadd.f32 %v1760_v0, %v1553_v40  ;;  %v1038_v23 = vadd.f32 %v1034_v41, %v5152_v4  ;;  %v1782_v26 = vmul.f32 %v1780_v56, %v1768_v55  ;;  %v1783_v58 = vmul.f32 %v1780_v56, %v1769_v47  ;;  %v5399_v16 = vpop.permute.xlu0 %2068  ;;  %v6473_v41 = vld [vmem:[#allocation74_spill] sm:$0xff]  ;;  %v5417_v40 = vld [vmem:[#allocation7] sm:$0xff] }
 0xad6   :  { %v1121_v18 = vsel %vm182_vm4, %v6466_v50, %v6465_v19  ;;  %v1122_v28 = vsel %vm182_vm4, %v6465_v19, %v6467_v24  ;;  %v893_v48 = vadd.f32 %v6468_v62, %v871_v22  ;;  %v894_v52 = vadd.f32 %v4985_v9, %v872_v37  ;;  %v6477_v22 = vld [vmem:[#allocation38_spill] sm:$0xff]  ;;  %v6483_v19 = vld [vmem:[#allocation141_spill] sm:$0xff]  ;;  %v6484_v50 = vld [vmem:[#allocation160_spill] sm:$0xff] }
 0xad7   :  { %v751_v1 = vadd.f32 %v6469_v33, %v729_v8  ;;  %v772_v17 = vadd.f32 %v6470_v60, %v750_v20  ;;  %v1081_v12 = vadd.f32 %v1077_v63, %v1037_v25  ;;  %v1082_v4 = vadd.f32 %v1078_v7, %v1038_v23  ;;  %v1787_v25 = vpop.permute.xlu1 %1786  ;;  %v6485_v24 = vld [vmem:[#allocation161_spill] sm:$0xff] }
 0xad8   :  { %v957_v51 = vmul.f32 %v6472_v14, %v6471_v45  ;;  %v958_v15 = vmul.f32 %v6472_v14, %v6473_v41  ;;  %v1165_v59 = vsel %vm63_vm1, %v6475_v29, %v6474_v39  ;;  %v1166_v9 = vsel %vm63_vm1, %v6474_v39, %v6476_v42  ;;  %v6486_v33 = vld [vmem:[#allocation49_spill] sm:$0xff]  ;;  %v6488_v45 = vld [vmem:[#allocation143_spill] sm:$0xff]  ;;  %v6489_v14 = vld [vmem:[#allocation164_spill] sm:$0xff] }
 0xad9   :  { %v2961_v30 = vmov 79   ;;  %v1125_v27 = vadd.f32 %v1121_v18, %v1081_v12  ;;  %v1126_v21 = vadd.f32 %v1122_v28, %v1082_v4  ;;  %v1790_v37 = vsel %vm1767_vm11, %v1787_v25, %v6477_v22  ;;  %v5427_v23 = vpop.permute.xlu0 %2017  ;;  %v6487_v4 = vld [vmem:[#allocation32_spill] sm:$0xff]  ;;  %v6490_v39 = vld [vmem:[#allocation165_spill] sm:$0xff] }
 0xada   :  { %2681 = vset.pattern.permute.xlu1 %v2961_v30  ;;  %v1791_v13 = vsel %vm1767_vm11, %v6477_v22, %v1787_v25  ;;  %v915_v8 = vadd.f32 %v6478_v38, %v893_v48  ;;  %v916_v20 = vadd.f32 %v6479_v34, %v894_v52  ;;  %v1804_v0 = vmul.f32 %v6480_v54, %v1790_v37  ;;  %v6495_v22 = vld [vmem:[#allocation168_spill] sm:$0xff] }
 0xadb   :  { %1947 = vperm.xlu1 %2681, %v5417_v40   ;;  %v1805_v31 = vmul.f32 %v6480_v54, %v1791_v13  ;;  %v773_v63 = vadd.f32 %v6481_v36, %v751_v1  ;;  %v1169_v46 = vadd.f32 %v1165_v59, %v1125_v27  ;;  %v1170_v7 = vadd.f32 %v1166_v9, %v1126_v21  ;;  %v1794_v52 = vpop.permute.xlu1 %1793  ;;  %v6492_v59 = vld [vmem:[#allocation58_spill] sm:$0xff]  ;;  %v6494_v21 = vld [vmem:[#allocation145_spill] sm:$0xff]  ;;  %v6497_v38 = vld [vmem:[#allocation108_spill] sm:$0xff] }
 0xadc   :  { %vm6482_vm1 = vcmp.ge.s32.totalorder %v4584_v11, 2  ;;  %v1209_v18 = vsel %vm247_vm5, %v6484_v50, %v6483_v19  ;;  %v1210_v28 = vsel %vm247_vm5, %v6483_v19, %v6485_v24  ;;  %v5435_v62 = vadd.f32 %v1804_v0, %v1782_v26  ;;  %v6498_v54 = vld [vmem:[#allocation110_spill] sm:$0xff]  ;;  %v6501_v36 = vld [vmem:[#allocation128_spill] sm:$0xff]  ;;  %v6502_v50 = vld [vmem:[#allocation169_spill] sm:$0xff] }
 0xadd   :  { %v784_v56 = vsel %vm6482_vm1, %v772_v17, 0.0  ;;  %v5437_v48 = vadd.f32 %v1805_v31, %v1783_v58  ;;  %v1774_v1 = vmul.f32 %v6486_v33, %v1768_v55  ;;  %v1775_v60 = vmul.f32 %v6486_v33, %v1769_v47  ;;  %v6491_v58 = vld [vmem:[#allocation57_spill] sm:$0xff]  ;;  %v5452_v27 = vpop.permute.xlu0 %2090  ;;  %v6500_v31 = vld [vmem:[#allocation104_spill] sm:$0xff] }
 0xade   :  { %v1796_v17 = vmul.f32 %v1794_v52, %v1790_v37  ;;  %v1797_v12 = vmul.f32 %v1794_v52, %v1791_v13  ;;  %v1253_v41 = vsel %vm280_vm6, %v6489_v14, %v6488_v45  ;;  %v1254_v26 = vsel %vm280_vm6, %v6488_v45, %v6490_v39  ;;  %v6496_v13 = vld [vmem:[#allocation66_spill] sm:$0xff]  ;;  %v6503_v24 = vld [vmem:[#allocation33_spill] sm:$0xff]  ;;  %v6508_v14 = vld [vmem:[#allocation40_spill] sm:$0xff] }
 0xadf   :  { %2061 = vrot.lane.b32.xlu1 %v6487_v4, %s2944_s25  ;;  %v937_v29 = vadd.f32 %v6491_v58, %v915_v8  ;;  %v938_v42 = vadd.f32 %v6492_v59, %v916_v20  ;;  %v6493_v55 = vmov 24   ;;  %v1213_v47 = vadd.f32 %v1209_v18, %v1169_v46  ;;  %v1809_v0 = vpop.permute.xlu1 %1808  ;;  %v6505_v52 = vld [vmem:[#allocation182_spill] sm:$0xff]  ;;  %v6510_v59 = vld [vmem:[#allocation71_spill] sm:$0xff] }
 0xae0   :  { %2685 = vset.pattern.permute.xlu1 %v6493_v55  ;;  %v1214_v9 = vadd.f32 %v1210_v28, %v1170_v7  ;;  %v1798_v30 = vadd.f32 %v1796_v17, %v1774_v1  ;;  %v1799_v25 = vadd.f32 %v1797_v12, %v1775_v60  ;;  %v1297_v37 = vsel %vm315_vm7, %v6495_v22, %v6494_v21  ;;  %v6504_v28 = vld [vmem:[#allocation107_spill] sm:$0xff]  ;;  %v6506_v1 = vld [vmem:[#allocation64_spill] sm:$0xff]  ;;  %v6509_v39 = vld [vmem:[#allocation42_spill] sm:$0xff] }
 0xae1   :  { %v1356_v34 = vmul.f32 %v6497_v38, %v6496_v13  ;;  %v1357_v8 = vmul.f32 %v6497_v38, %v6498_v54  ;;  %vm6499_vm2 = vcmp.ge.s32.totalorder %v4622_v10, 2  ;;  %v979_v46 = vmul.f32 %v6501_v36, %v6500_v31  ;;  %v6507_v12 = vld [vmem:[#allocation56_spill] sm:$0xff]  ;;  %v1398_v13 = vpop.permute.xlu0 %1397 }
 0xae2   :  { %v785_v20 = vsel %vm6499_vm2, %v773_v63, 0.0  ;;  %v1257_v7 = vadd.f32 %v1253_v41, %v1213_v47  ;;  %v1258_v19 = vadd.f32 %v1254_v26, %v1214_v9  ;;  %v1298_v18 = vsel %vm315_vm7, %v6494_v21, %v6502_v50  ;;  %v6511_v55 = vld [vmem:[#allocation192_spill] sm:$0xff]  ;;  %v6516_v50 = vld [vmem:[#allocation70_spill] sm:$0xff] }
 0xae3   :  { %2063 = vrot.lane.b32.xlu1 %v6503_v24, %s2944_s25  ;;  %v1378_v33 = vmul.f32 %v6505_v52, %v6504_v28  ;;  %v1379_v60 = vmul.f32 %v6505_v52, %v6506_v1  ;;  %v959_v63 = vadd.f32 %v957_v51, %v937_v29  ;;  %v960_v17 = vadd.f32 %v958_v15, %v938_v42  ;;  %v1811_v22 = vpop.permute.xlu1 %1810  ;;  %v6512_v29 = vld [vmem:[#allocation68_spill] sm:$0xff]  ;;  %v6518_v24 = vld [vmem:[#allocation115_spill] sm:$0xff] }
 0xae4   :  { %v980_v4 = vmul.f32 %v6501_v36, %v6507_v12  ;;  %v5476_v45 = vadd.f32 %v1297_v37, %v1257_v7  ;;  %v786_v41 = vadd.f32 %v784_v56, %v6508_v14  ;;  %v787_v26 = vadd.f32 %v785_v20, %v6509_v39  ;;  %v6513_v56 = vld [vmem:[#allocation69_spill] sm:$0xff]  ;;  %v6514_v20 = vld [vmem:[#allocation55_spill] sm:$0xff]  ;;  %v6519_v12 = vld [vmem:[#allocation34_spill] sm:$0xff] }
 0xae5   :  { %v5480_v58 = vadd.f32 %v1298_v18, %v1258_v19  ;;  %v1422_v47 = vmul.f32 %v6511_v55, %v6510_v59  ;;  %v1380_v9 = vadd.f32 %v1378_v33, %v1356_v34  ;;  %v1381_v21 = vadd.f32 %v1379_v60, %v1357_v8  ;;  %v6515_v8 = vld [vmem:[#allocation114_spill] sm:$0xff]  ;;  %v6517_v18 = vld [vmem:[#allocation185_spill] sm:$0xff]  ;;  %v6522_v59 = vld [vmem:[#allocation67_spill] sm:$0xff] }
 0xae6   :  { %v1812_v51 = vsel %vm1767_vm11, %v1809_v0, %v1811_v22  ;;  %v1813_v15 = vsel %vm1767_vm11, %v1811_v22, %v1809_v0  ;;  %v1400_v42 = vmul.f32 %v1398_v13, %v6512_v29  ;;  %v1401_v37 = vmul.f32 %v1398_v13, %v6513_v56  ;;  %v6521_v14 = vld [vmem:[#allocation201_spill] sm:$0xff] }
 0xae7   :  { %2142 = vperm.xlu1 %2685, %v4625_v43   ;;  %v981_v38 = vadd.f32 %v979_v46, %v959_v63  ;;  %v982_v54 = vadd.f32 %v980_v4, %v960_v17  ;;  %v1818_v31 = vmul.f32 %v6514_v20, %v1812_v51  ;;  %v1819_v34 = vmul.f32 %v6514_v20, %v1813_v15  ;;  %v1824_v43 = vpop.permute.xlu1 %1823  ;;  %v5499_v46 = vpop.permute.xlu0 %1933  ;;  %v6520_v4 = vld [vmem:[#allocation109_spill] sm:$0xff] }
 0xae8   :  { %v1423_v36 = vmul.f32 %v6511_v55, %v6515_v8  ;;  %v1402_v7 = vadd.f32 %v1400_v42, %v1380_v9  ;;  %v1403_v19 = vadd.f32 %v1401_v37, %v1381_v21  ;;  %v1444_v0 = vmul.f32 %v6517_v18, %v6516_v50  ;;  %v6525_v42 = vld [vmem:[#allocation78_spill] sm:$0xff]  ;;  %v6526_v37 = vld [vmem:[#allocation75_spill] sm:$0xff]  ;;  %v6527_v20 = vld [vmem:[#allocation193_spill] sm:$0xff] }
 0xae9   :  { %v1445_v28 = vmul.f32 %v6517_v18, %v6518_v24  ;;  %v1820_v52 = vadd.f32 %v1818_v31, %v1798_v30  ;;  %v1821_v33 = vadd.f32 %v1819_v34, %v1799_v25  ;;  %v1826_v63 = vmul.f32 %v1824_v43, %v1812_v51  ;;  %v6523_v51 = vld [vmem:[#allocation173_spill] sm:$0xff]  ;;  %v6528_v31 = vld [vmem:[#allocation76_spill] sm:$0xff] }
 0xaea   :  { %v1424_v1 = vadd.f32 %v1422_v47, %v1402_v7  ;;  %v1425_v60 = vadd.f32 %v1423_v36, %v1403_v19  ;;  %v1827_v17 = vmul.f32 %v1824_v43, %v1813_v15  ;;  %v1466_v39 = vmul.f32 %v6521_v14, %v6520_v4  ;;  %v6524_v15 = vld [vmem:[#allocation48_spill] sm:$0xff]  ;;  %v6529_v7 = vld [vmem:[#allocation41_spill] sm:$0xff] }
 0xaeb   :  { %2083 = vrot.lane.b32.xlu1 %v6519_v12, %s2944_s25  ;;  %v1467_v55 = vmul.f32 %v6521_v14, %v6522_v59  ;;  %v993_v30 = vsel %vm991_vm8, %v981_v38, 0.0  ;;  %v994_v25 = vsel %vm992_vm0, %v982_v54, 0.0  ;;  %v2962_v9 = vmov 80   ;;  %v1831_v34 = vpop.permute.xlu1 %1830  ;;  %v5528_v19 = vpop.permute.xlu0 %2112  ;;  %v6531_v43 = vld [vmem:[#allocation16_spill] sm:$0xff]  ;;  %v6534_v14 = vld [vmem:[#allocation202_spill] sm:$0xff] }
 0xaec   :  { %2686 = vset.pattern.permute.xlu1 %v2962_v9  ;;  %v1446_v47 = vadd.f32 %v1444_v0, %v1424_v1  ;;  %v1447_v21 = vadd.f32 %v1445_v28, %v1425_v60  ;;  %v1828_v22 = vadd.f32 %v1826_v63, %v5435_v62  ;;  %v1829_v13 = vadd.f32 %v1827_v17, %v5437_v48  ;;  %v6530_v0 = vld [vmem:[#allocation121_spill] sm:$0xff]  ;;  %v6532_v1 = vld [vmem:[#allocation20_spill] sm:$0xff] }
 0xaed   :  { %v1329_v29 = vmul.f32 %v6524_v15, %v6523_v51  ;;  %v1330_v56 = vmul.f32 %v6525_v42, %v6523_v51  ;;  %v1488_v38 = vmul.f32 %v6527_v20, %v6526_v37  ;;  %v1489_v54 = vmul.f32 %v6527_v20, %v6528_v31  ;;  %v6533_v63 = vld [vmem:[#allocation17_spill] sm:$0xff] }
 0xaee   :  { %v1468_v8 = vadd.f32 %v1466_v39, %v1446_v47  ;;  %v1469_v36 = vadd.f32 %v1467_v55, %v1447_v21  ;;  %v1834_v62 = vsel %vm1767_vm11, %v1831_v34, %v6529_v7  ;;  %v1835_v48 = vsel %vm1767_vm11, %v6529_v7, %v1831_v34  ;;  %v6535_v47 = vld [vmem:[#allocation36_spill] sm:$0xff]  ;;  %v6536_v31 = vld [vmem:[#allocation37_spill] sm:$0xff] }
 0xaef   :  { %2156 = vperm.xlu1 %2686, %v5417_v40   ;;  %v995_v50 = vadd.f32 %v993_v30, %v786_v41  ;;  %v996_v18 = vadd.f32 %v994_v25, %v787_v26  ;;  %v1848_v24 = vmul.f32 %v6530_v0, %v1834_v62  ;;  %v1849_v28 = vmul.f32 %v6530_v0, %v1835_v48  ;;  %v1838_v59 = vpop.permute.xlu1 %1837  ;;  %v5544_v15 = vpop.permute.xlu0 %1955 }
 0xaf0   :  { %v1510_v60 = vmul.f32 %v6532_v1, %v6531_v43  ;;  %v1511_v17 = vmul.f32 %v6532_v1, %v6533_v63  ;;  %v1490_v12 = vadd.f32 %v1488_v38, %v1468_v8  ;;  %v1491_v4 = vadd.f32 %v1489_v54, %v1469_v36  ;;  %v6537_v8 = vld [vmem:[#allocation35_spill] sm:$0xff]  ;;  %v6539_v43 = vld [vmem:[#allocation72_spill] sm:$0xff] }
 0xaf1   :  { %v1532_v39 = vmul.f32 %v6534_v14, %v5289_v6  ;;  %v1533_v40 = vmul.f32 %v6534_v14, %v5295_v3  ;;  %v1850_v41 = vadd.f32 %v1848_v24, %v1828_v22  ;;  %v1851_v26 = vadd.f32 %v1849_v28, %v1829_v13  ;;  %v6538_v36 = vld [vmem:[#allocation59_spill] sm:$0xff]  ;;  %v6543_v14 = vld [vmem:[#allocation54_spill] sm:$0xff] }
 0xaf2   :  { %v1512_v55 = vadd.f32 %v1510_v60, %v1490_v12  ;;  %v1513_v30 = vadd.f32 %v1511_v17, %v1491_v4  ;;  %v1840_v25 = vmul.f32 %v1838_v59, %v1834_v62  ;;  %v1841_v9 = vmul.f32 %v1838_v59, %v1835_v48  ;;  %v6540_v60 = vld [vmem:[#allocation27_spill] sm:$0xff]  ;;  %v6542_v12 = vld [vmem:[#allocation100_spill] sm:$0xff] }
 0xaf3   :  { %1918 = vrot.lane.b32.xlu1 %v6535_v47, %s2930_s24  ;;  %v1331_v21 = vadd.f32 %v1329_v29, %v5476_v45  ;;  %v1332_v51 = vadd.f32 %v1330_v56, %v5480_v58  ;;  %v1853_v22 = vpop.permute.xlu1 %1852  ;;  %v5552_v56 = vpop.permute.xlu0 %2134  ;;  %v6541_v17 = vld [vmem:[#allocation39_spill] sm:$0xff]  ;;  %v6546_v47 = vld [vmem:[#allocation60_spill] sm:$0xff]  ;;  %vm1976_vm3 = vcmp.lt.s32.totalorder %v4003_v49, 124  ;;  %vm1962_vm4 = vcmp.lt.s32.totalorder %v4584_v11, 13 }
 0xaf4   :  { %v1842_v6 = vadd.f32 %v1840_v25, %v1820_v52  ;;  %v1843_v37 = vadd.f32 %v1841_v9, %v1821_v33  ;;  %v1534_v20 = vadd.f32 %v1532_v39, %v1512_v55  ;;  %v1535_v3 = vadd.f32 %v1533_v40, %v1513_v30  ;;  %v6544_v55 = vld [vmem:[#allocation22_spill] sm:$0xff]  ;;  %v6545_v25 = vld [vmem:[#allocation113_spill] sm:$0xff] }
 0xaf5   :  { %v1341_v13 = vadd.f32 %v1331_v21, %v995_v50  ;;  %v1342_v38 = vadd.f32 %v1332_v51, %v996_v18  ;;  %v1653_v4 = vmul.f32 %v6542_v12, %v6541_v17  ;;  %v1654_v39 = vmul.f32 %v6542_v12, %v6543_v14  ;;  %v6547_v21 = vld [vmem:[#allocation47_spill] sm:$0xff]  ;;  %v6555_v17 = vld [vmem:[#allocation73_spill] sm:$0xff] }
 0xaf6   :  { %v1546_v54 = vsel %vm1544_vm12, %v1534_v20, 0.0  ;;  %v1547_v45 = vsel %vm1545_vm14, %v1535_v3, 0.0  ;;  %v1675_v51 = vmul.f32 %v6547_v21, %v6546_v47  ;;  %vm1963_vm5 = vcmp.lt.s32.totalorder %v4622_v10, 13 }
 0xaf7   :  { %1920 = vrot.lane.b32.xlu1 %v6536_v31, %s2930_s24  ;;  %v1548_v29 = vadd.f32 %v1546_v54, %v1341_v13  ;;  %v1549_v58 = vadd.f32 %v1547_v45, %v1342_v38  ;;  %v1855_v52 = vpop.permute.xlu1 %1854  ;;  %v1629_v0 = vpop.permute.xlu0 %1628  ;;  %v6549_v13 = vld [vmem:[#allocation111_spill] sm:$0xff]  ;;  %vm2171_vm6 = vcmp.lt.s32.totalorder %v4584_v11, 12  ;;  %vm2172_vm7 = vcmp.lt.s32.totalorder %v4622_v10, 12 }
 0xaf8   :  { %v1856_v33 = vsel %vm1767_vm11, %v1853_v22, %v1855_v52  ;;  %v1857_v34 = vsel %vm1767_vm11, %v1855_v52, %v1853_v22  ;;  %v1631_v1 = vmul.f32 %v1629_v0, %v6539_v43  ;;  %v1632_v63 = vmul.f32 %v1629_v0, %v6540_v60  ;;  %v6551_v52 = vld [vmem:[#allocation63_spill] sm:$0xff] }
 0xaf9   :  { %v1862_v7 = vmul.f32 %v6538_v36, %v1856_v33  ;;  %v1863_v62 = vmul.f32 %v6538_v36, %v1857_v34  ;;  %vm2181_vm0 = vcmask 1043456  }
 0xafa   :  { %v1633_v30 = vadd.f32 %v1631_v1, %v6544_v55  ;;  %v1634_v9 = vadd.f32 %v1632_v63, %v6545_v25 }
 0xafb   :  { %2107 = vrot.lane.b32.xlu1 %v6537_v8, %s2944_s25  ;;  %v1864_v48 = vadd.f32 %v1862_v7, %v1842_v6  ;;  %v1865_v50 = vadd.f32 %v1863_v62, %v1843_v37  ;;  %v1868_v18 = vpop.permute.xlu1 %1867  ;;  %v6548_v6 = vld [vmem:[#allocation61_spill] sm:$0xff] }
 0xafc   :  { %v1870_v24 = vmul.f32 %v1868_v18, %v1856_v33  ;;  %v1871_v28 = vmul.f32 %v1868_v18, %v1857_v34  ;;  %v1676_v37 = vmul.f32 %v6547_v21, %v6548_v6  ;;  %v1655_v3 = vadd.f32 %v1653_v4, %v1633_v30  ;;  %v6552_v33 = vld [vmem:[#allocation62_spill] sm:$0xff]  ;;  %v6553_v8 = vld [vmem:[#allocation65_spill] sm:$0xff] }
 0xafd   :  { %v1656_v22 = vadd.f32 %v1654_v39, %v1634_v9  ;;  %v1697_v34 = vmul.f32 %v6552_v33, %v6551_v52  ;;  %v1698_v36 = vmul.f32 %v6552_v33, %v6553_v8 }
 0xafe   :  { %v1872_v40 = vadd.f32 %v1870_v24, %v1850_v41  ;;  %v1873_v59 = vadd.f32 %v1871_v28, %v1851_v26  ;;  %v6550_v26 = vld [vmem:[#allocation92_spill] sm:$0xff]  ;;  %v1677_v7 = vadd.f32 %v1675_v51, %v1655_v3 }
 0xaff   :  { %1942 = vrot.lane.b32.xlu1 %v6525_v42, %s2930_s24  ;;  %v1875_v20 = vpop.permute.xlu1 %1874  ;;  %v1678_v62 = vadd.f32 %v1676_v37, %v1656_v22 }
 0xb00   :  { %v1878_v38 = vsel %vm1767_vm11, %v1875_v20, %v6549_v13  ;;  %v1879_v41 = vsel %vm1767_vm11, %v6549_v13, %v1875_v20  ;;  %v1699_v28 = vadd.f32 %v1697_v34, %v1677_v7 }
 0xb01   :  { %v1892_v54 = vmul.f32 %v6550_v26, %v1878_v38  ;;  %v1893_v45 = vmul.f32 %v6550_v26, %v1879_v41  ;;  %v1700_v43 = vadd.f32 %v1698_v36, %v1678_v62 }
 0xb03   :  { %2129 = vrot.lane.b32.xlu1 %v6536_v31, %s2944_s25  ;;  %v1894_v18 = vadd.f32 %v1892_v54, %v1872_v40  ;;  %v1895_v0 = vadd.f32 %v1893_v45, %v1873_v59  ;;  %v1882_v24 = vpop.permute.xlu1 %1881  ;;  %v6554_v31 = vld [vmem:[#allocation112_spill] sm:$0xff]  ;;  %v1722_v12 = vadd.f32 %v6555_v17, %v1700_v43 }
 0xb04   :  { %v1884_v1 = vmul.f32 %v1882_v24, %v1878_v38  ;;  %v1885_v60 = vmul.f32 %v1882_v24, %v1879_v41  ;;  %v1721_v63 = vadd.f32 %v6554_v31, %v1699_v28 }
 0xb05   :  { %v1744_v40 = vadd.f32 %v5320_v57, %v1722_v12 }
 0xb06   :  { %v1886_v4 = vadd.f32 %v1884_v1, %v1864_v48  ;;  %v1887_v14 = vadd.f32 %v1885_v60, %v1865_v50  ;;  %v1743_v55 = vadd.f32 %v5318_v2, %v1721_v63  ;;  %v6556_v2 = vld [vmem:[#allocation116_spill] sm:$0xff] }
 0xb07   :  { %2151 = vrot.lane.b32.xlu1 %v6525_v42, %s2944_s25  ;;  %v1897_v39 = vpop.permute.xlu1 %1896  ;;  %v1756_v30 = vsel %vm1754_vm15, %v1744_v40, 0.0 }
 0xb08   :  { %v1755_v59 = vsel %vm1753_vm13, %v1743_v55, 0.0  ;;  %v5602_v42 = vadd.f32 %v1756_v30, %v1549_v58 }
 0xb09   :  { %v5600_v9 = vadd.f32 %v1755_v59, %v1548_v29 }
 0xb0b   :  { %v1899_v25 = vpop.permute.xlu1 %1898 }
 0xb0c   :  { %v1900_v48 = vsel %vm1767_vm11, %v1897_v39, %v1899_v25  ;;  %v1901_v50 = vsel %vm1767_vm11, %v1899_v25, %v1897_v39 }
 0xb0d   :  { %v1906_v47 = vmul.f32 %v6556_v2, %v1900_v48  ;;  %v1907_v57 = vmul.f32 %v6556_v2, %v1901_v50 }
 0xb0f   :  { %v5610_v21 = vadd.f32 %v1906_v47, %v1886_v4  ;;  %v5612_v51 = vadd.f32 %v1907_v57, %v1887_v14  ;;  %v1981_v6 = vpop.permute.xlu1 %1980 }
 0xb13   :  { %v1989_v37 = vpop.permute.xlu1 %1988 }
 0xb17   :  { %v2011_v29 = vpop.permute.xlu1 %2010 }
 0xb1b   :  { %v2025_v20 = vpop.permute.xlu1 %2024 }
 0xb21   :  { %v2047_v58 = vpop.permute.xlu1 %2046 }
 0xb27   :  { %v2055_v3 = vpop.permute.xlu1 %2054 }
 0xb2b   :  { %v1975_v22 = vpop.permute.xlu1 %1974 }
 0xb2c   :  { %v1977_v13 = vsel %vm1976_vm3, %v5353_v61, %v1975_v22  ;;  %v1978_v38 = vsel %vm1976_vm3, %v1975_v22, %v5353_v61 }
 0xb2d   :  { %v1983_v41 = vmul.f32 %v1981_v6, %v1977_v13  ;;  %v1984_v26 = vmul.f32 %v1981_v6, %v1978_v38  ;;  %v1991_v54 = vmul.f32 %v1989_v37, %v1977_v13  ;;  %v1992_v45 = vmul.f32 %v1989_v37, %v1978_v38 }
 0xb2f   :  { %v1998_v52 = vpop.permute.xlu1 %1997 }
 0xb30   :  { %v1999_v33 = vsel %vm1976_vm3, %v5371_v53, %v1998_v52  ;;  %v2000_v34 = vsel %vm1976_vm3, %v1998_v52, %v5371_v53 }
 0xb31   :  { %v2005_v8 = vmul.f32 %v5299_v35, %v1999_v33  ;;  %v2006_v36 = vmul.f32 %v5299_v35, %v2000_v34  ;;  %v2013_v7 = vmul.f32 %v2011_v29, %v1999_v33  ;;  %v2014_v62 = vmul.f32 %v2011_v29, %v2000_v34 }
 0xb33   :  { %v2007_v61 = vadd.f32 %v2005_v8, %v1983_v41  ;;  %v2008_v24 = vadd.f32 %v2006_v36, %v1984_v26  ;;  %v2015_v28 = vadd.f32 %v2013_v7, %v1991_v54  ;;  %v2016_v43 = vadd.f32 %v2014_v62, %v1992_v45  ;;  %v2077_v1 = vpop.permute.xlu1 %2076 }
 0xb39   :  { %v1912_v60 = vpop.permute.xlu1 %1911 }
 0xb3a   :  { %v1914_v31 = vmul.f32 %v1912_v60, %v1900_v48  ;;  %v1915_v63 = vmul.f32 %v1912_v60, %v1901_v50 }
 0xb3c   :  { %v5629_v17 = vadd.f32 %v1914_v31, %v1894_v18  ;;  %v5631_v12 = vadd.f32 %v1915_v63, %v1895_v0 }
 0xb3d   :  { %v2020_v4 = vpop.permute.xlu1 %2019 }
 0xb3e   :  { %v2021_v53 = vsel %vm1976_vm3, %v5427_v23, %v2020_v4  ;;  %v2022_v35 = vsel %vm1976_vm3, %v2020_v4, %v5427_v23 }
 0xb3f   :  { %v2027_v14 = vmul.f32 %v2025_v20, %v2021_v53  ;;  %v2028_v39 = vmul.f32 %v2025_v20, %v2022_v35  ;;  %v2035_v18 = vmul.f32 %v5329_v32, %v2021_v53  ;;  %v2036_v0 = vmul.f32 %v5329_v32, %v2022_v35 }
 0xb41   :  { %v2029_v55 = vadd.f32 %v2027_v14, %v2007_v61  ;;  %v2030_v40 = vadd.f32 %v2028_v39, %v2008_v24  ;;  %v2099_v59 = vpop.permute.xlu1 %2098  ;;  %v2037_v50 = vadd.f32 %v2035_v18, %v2015_v28  ;;  %v2038_v2 = vadd.f32 %v2036_v0, %v2016_v43 }
 0xb48   :  { %v1926_v30 = vpop.permute.xlu1 %1925 }
 0xb4c   :  { %v2040_v25 = vpop.permute.xlu1 %2039 }
 0xb50   :  { %v2042_v48 = vpop.permute.xlu1 %2041 }
 0xb51   :  { %v2043_v47 = vsel %vm1976_vm3, %v2040_v25, %v2042_v48  ;;  %v2044_v23 = vsel %vm1976_vm3, %v2042_v48, %v2040_v25 }
 0xb52   :  { %v2049_v57 = vmul.f32 %v2047_v58, %v2043_v47  ;;  %v2050_v6 = vmul.f32 %v2047_v58, %v2044_v23  ;;  %v2057_v37 = vmul.f32 %v2055_v3, %v2043_v47  ;;  %v2058_v29 = vmul.f32 %v2055_v3, %v2044_v23  ;;  %v2086_v3 = vpop.permute.xlu0 %2085 }
 0xb54   :  { %v2051_v20 = vadd.f32 %v2049_v57, %v2029_v55  ;;  %v2052_v22 = vadd.f32 %v2050_v6, %v2030_v40  ;;  %v2059_v13 = vadd.f32 %v2057_v37, %v2037_v50  ;;  %v2060_v38 = vadd.f32 %v2058_v29, %v2038_v2  ;;  %v2121_v41 = vpop.permute.xlu1 %2120 }
 0xb56   :  { %v5651_v62 = vpop.permute.xlu0 %2164 }
 0xb5a   :  { %v1948_v26 = vpop.permute.xlu1 %1947  ;;  %v2106_v28 = vpop.permute.xlu0 %2105 }
 0xb5e   :  { %v2062_v32 = vpop.permute.xlu1 %2061  ;;  %v1941_v39 = vpop.permute.xlu0 %1940 }
 0xb62   :  { %v2064_v54 = vpop.permute.xlu1 %2063 }
 0xb63   :  { %v2065_v45 = vsel %vm1976_vm3, %v2062_v32, %v2064_v54  ;;  %v2066_v52 = vsel %vm1976_vm3, %v2064_v54, %v2062_v32  ;;  %v2128_v54 = vpop.permute.xlu0 %2127 }
 0xb64   :  { %v2079_v33 = vmul.f32 %v2077_v1, %v2065_v45  ;;  %v2080_v34 = vmul.f32 %v2077_v1, %v2066_v52  ;;  %v2071_v1 = vmul.f32 %v5399_v16, %v2065_v45  ;;  %v2072_v63 = vmul.f32 %v5399_v16, %v2066_v52 }
 0xb66   :  { %v2081_v8 = vadd.f32 %v2079_v33, %v2059_v13  ;;  %v2082_v58 = vadd.f32 %v2080_v34, %v2060_v38  ;;  %v5649_v36 = vpop.permute.xlu1 %2142  ;;  %v2073_v48 = vadd.f32 %v2071_v1, %v2051_v20  ;;  %v2074_v16 = vadd.f32 %v2072_v63, %v2052_v22 }
 0xb6a   :  { %v2084_v7 = vpop.permute.xlu1 %2083 }
 0xb6b   :  { %v2087_v43 = vsel %vm1976_vm3, %v2084_v7, %v2086_v3  ;;  %v2088_v60 = vsel %vm1976_vm3, %v2086_v3, %v2084_v7 }
 0xb6c   :  { %v2093_v35 = vmul.f32 %v5452_v27, %v2087_v43  ;;  %v2094_v14 = vmul.f32 %v5452_v27, %v2088_v60  ;;  %v2101_v47 = vmul.f32 %v2099_v59, %v2087_v43  ;;  %v2102_v23 = vmul.f32 %v2099_v59, %v2088_v60 }
 0xb6e   :  { %v5653_v61 = vpop.permute.xlu1 %2156  ;;  %v2095_v27 = vadd.f32 %v2093_v35, %v2073_v48  ;;  %v2103_v52 = vadd.f32 %v2101_v47, %v2081_v8  ;;  %v2150_v35 = vpop.permute.xlu0 %2149 }
 0xb72   :  { %v1919_v24 = vpop.permute.xlu1 %1918 }
 0xb76   :  { %v1921_v31 = vpop.permute.xlu1 %1920 }
 0xb77   :  { %v1922_v4 = vsel %vm1767_vm11, %v1919_v24, %v1921_v31  ;;  %v1923_v53 = vsel %vm1767_vm11, %v1921_v31, %v1919_v24 }
 0xb78   :  { %v1928_v55 = vmul.f32 %v1926_v30, %v1922_v4  ;;  %v1929_v40 = vmul.f32 %v1926_v30, %v1923_v53  ;;  %v1936_v25 = vmul.f32 %v5499_v46, %v1922_v4  ;;  %v1937_v18 = vmul.f32 %v5499_v46, %v1923_v53 }
 0xb79   :  { %v2096_v30 = vadd.f32 %v2094_v14, %v2074_v16 }
 0xb7a   :  { %v2108_v0 = vpop.permute.xlu1 %2107  ;;  %v1930_v6 = vadd.f32 %v1928_v55, %v5610_v21  ;;  %v1931_v37 = vadd.f32 %v1929_v40, %v5612_v51  ;;  %v1938_v29 = vadd.f32 %v1936_v25, %v5629_v17  ;;  %v1939_v20 = vadd.f32 %v1937_v18, %v5631_v12 }
 0xb7b   :  { %v2109_v50 = vsel %vm1976_vm3, %v2106_v28, %v2108_v0  ;;  %v2110_v2 = vsel %vm1976_vm3, %v2108_v0, %v2106_v28  ;;  %v2104_v17 = vadd.f32 %v2102_v23, %v2082_v58 }
 0xb7c   :  { %v2115_v57 = vmul.f32 %v5528_v19, %v2109_v50  ;;  %v2116_v46 = vmul.f32 %v5528_v19, %v2110_v2  ;;  %v2123_v59 = vmul.f32 %v2121_v41, %v2109_v50  ;;  %v2124_v13 = vmul.f32 %v2121_v41, %v2110_v2 }
 0xb7e   :  { %v1943_v22 = vpop.permute.xlu1 %1942  ;;  %v2117_v33 = vadd.f32 %v2115_v57, %v2095_v27  ;;  %v2118_v12 = vadd.f32 %v2116_v46, %v2096_v30  ;;  %v2125_v28 = vadd.f32 %v2123_v59, %v2103_v52  ;;  %v2126_v43 = vadd.f32 %v2124_v13, %v2104_v17 }
 0xb7f   :  { %v1944_v38 = vsel %vm1767_vm11, %v1941_v39, %v1943_v22  ;;  %v1945_v32 = vsel %vm1767_vm11, %v1943_v22, %v1941_v39 }
 0xb80   :  { %v1950_v45 = vmul.f32 %v1948_v26, %v1944_v38  ;;  %v1951_v19 = vmul.f32 %v1948_v26, %v1945_v32  ;;  %v1958_v21 = vmul.f32 %v5544_v15, %v1944_v38  ;;  %v1959_v51 = vmul.f32 %v5544_v15, %v1945_v32 }
 0xb82   :  { %v1952_v34 = vadd.f32 %v1950_v45, %v1930_v6  ;;  %v1953_v3 = vadd.f32 %v1951_v19, %v1931_v37  ;;  %v1960_v41 = vadd.f32 %v1958_v21, %v1938_v29  ;;  %v1961_v7 = vadd.f32 %v1959_v51, %v1939_v20  ;;  %v2130_v24 = vpop.permute.xlu1 %2129 }
 0xb83   :  { %v2131_v60 = vsel %vm1976_vm3, %v2128_v54, %v2130_v24  ;;  %v2132_v26 = vsel %vm1976_vm3, %v2130_v24, %v2128_v54  ;;  %v5717_v29 = vstv %s2210_s26 }
 0xb84   :  { %v1964_v15 = vsel %vm1962_vm4, %v1952_v34, 0.0  ;;  %v1965_v8 = vsel %vm1963_vm5, %v1953_v3, 0.0  ;;  %v1968_v58 = vsel %vm1962_vm4, %v1960_v41, 0.0  ;;  %v1969_v31 = vsel %vm1963_vm5, %v1961_v7, 0.0 }
 0xb85   :  { %v1966_v1 = vadd.f32 %v1964_v15, %v5600_v9  ;;  %v1967_v63 = vadd.f32 %v1965_v8, %v5602_v42  ;;  %v1970_v4 = vadd.f32 %v1968_v58, %v5384_v5  ;;  %v1971_v53 = vadd.f32 %v1969_v31, %v5386_v44 }
 0xb86   :  { %v2137_v14 = vmul.f32 %v5552_v56, %v2131_v60  ;;  %v2138_v39 = vmul.f32 %v5552_v56, %v2132_v26  ;;  %v2145_v55 = vmul.f32 %v5649_v36, %v2131_v60  ;;  %v2146_v40 = vmul.f32 %v5649_v36, %v2132_v26  ;;  %v2152_v25 = vpop.permute.xlu1 %2151 }
 0xb87   :  { %v2153_v9 = vsel %vm1976_vm3, %v2150_v35, %v2152_v25  ;;  %v2154_v5 = vsel %vm1976_vm3, %v2152_v25, %v2150_v35 }
 0xb88   :  { %v2139_v42 = vadd.f32 %v2137_v14, %v2117_v33  ;;  %v2140_v44 = vadd.f32 %v2138_v39, %v2118_v12  ;;  %v2147_v18 = vadd.f32 %v2145_v55, %v2125_v28  ;;  %v2148_v0 = vadd.f32 %v2146_v40, %v2126_v43 }
 0xb89   :  { %v2159_v48 = vmul.f32 %v5653_v61, %v2153_v9  ;;  %v2160_v56 = vmul.f32 %v5653_v61, %v2154_v5  ;;  %v2167_v16 = vmul.f32 %v5651_v62, %v2153_v9  ;;  %v2168_v36 = vmul.f32 %v5651_v62, %v2154_v5 }
 0xb8a   :  { %v5719_v62 = vstv %s2380_s27 }
 0xb8b   :  { %v2161_v50 = vadd.f32 %v2159_v48, %v2139_v42  ;;  %v2162_v2 = vadd.f32 %v2160_v56, %v2140_v44  ;;  %v2169_v49 = vadd.f32 %v2167_v16, %v2147_v18  ;;  %v2170_v47 = vadd.f32 %v2168_v36, %v2148_v0 }
 0xb8d   :  { %v2173_v23 = vsel %vm2171_vm6, %v2161_v50, 0.0  ;;  %v2174_v27 = vsel %vm2172_vm7, %v2162_v2, 0.0  ;;  %v2177_v30 = vsel %vm2171_vm6, %v2169_v49, 0.0  ;;  %v2178_v57 = vsel %vm2172_vm7, %v2170_v47, 0.0 }
 0xb8e   :  { %v2175_v46 = vadd.f32 %v2173_v23, %v1966_v1  ;;  %v2176_v6 = vadd.f32 %v2174_v27, %v1967_v63  ;;  %v2179_v61 = vadd.f32 %v2177_v30, %v1970_v4  ;;  %v2180_v37 = vadd.f32 %v2178_v57, %v1971_v53 }
 0xb90   :  { %v2182_v11 = vsel %vm2181_vm0, %v2175_v46, 0.0  ;;  %v2189_v10 = vsel %vm2181_vm0, %v2176_v6, 0.0  ;;  %v2196_v20 = vsel %vm2181_vm0, %v2179_v61, 0.0  ;;  %v2203_v22 = vsel %vm2181_vm0, %v2180_v37, 0.0 }
 0xb91   :  { %v2183_v59 = vrot.slane %v2182_v11, 4  ;;  %v2190_v13 = vrot.slane %v2189_v10, 4  ;;  %v2197_v38 = vrot.slane %v2196_v20, 4  ;;  %v2204_v32 = vrot.slane %v2203_v22, 4 }
 0xb92   :  { %v2269_v54 = vrot.slane %v2175_v46, 4  ;;  %v2270_v45 = vrot.slane %v2176_v6, 4  ;;  %v2289_v19 = vrot.slane %v2179_v61, 4  ;;  %v2290_v21 = vrot.slane %v2180_v37, 4 }
 0xb93   :  { %v2184_v51 = vadd.f32 %v2183_v59, %v2182_v11  ;;  %v2191_v52 = vadd.f32 %v2190_v13, %v2189_v10  ;;  %v2198_v17 = vadd.f32 %v2197_v38, %v2196_v20  ;;  %v2205_v33 = vadd.f32 %v2204_v32, %v2203_v22 }
 0xb94   :  { %v2273_v12 = vsel %vm2181_vm0, %v2269_v54, 0.0  ;;  %v2280_v34 = vsel %vm2181_vm0, %v2270_v45, 0.0  ;;  %v2293_v3 = vsel %vm2181_vm0, %v2289_v19, 0.0  ;;  %v2300_v41 = vsel %vm2181_vm0, %v2290_v21, 0.0 }
 0xb95   :  { %v2185_v7 = vrot.slane %v2184_v51, 2  ;;  %v2192_v24 = vrot.slane %v2191_v52, 2  ;;  %v2199_v28 = vrot.slane %v2198_v17, 2  ;;  %v2206_v43 = vrot.slane %v2205_v33, 2 }
 0xb96   :  { %v2274_v60 = vrot.slane %v2273_v12, 4  ;;  %v2281_v26 = vrot.slane %v2280_v34, 4  ;;  %v2294_v15 = vrot.slane %v2293_v3, 4  ;;  %v2301_v8 = vrot.slane %v2300_v41, 4 }
 0xb97   :  { %v2186_v58 = vadd.f32 %v2185_v7, %v2184_v51  ;;  %v2193_v31 = vadd.f32 %v2192_v24, %v2191_v52  ;;  %v2200_v1 = vadd.f32 %v2199_v28, %v2198_v17  ;;  %v2207_v63 = vadd.f32 %v2206_v43, %v2205_v33 }
 0xb98   :  { %v2275_v4 = vadd.f32 %v2274_v60, %v2273_v12  ;;  %v2282_v53 = vadd.f32 %v2281_v26, %v2280_v34  ;;  %v2295_v35 = vadd.f32 %v2294_v15, %v2293_v3  ;;  %v2302_v14 = vadd.f32 %v2301_v8, %v2300_v41 }
 0xb99   :  { %v2187_v39 = vrot.slane %v2186_v58, 1  ;;  %v2194_v55 = vrot.slane %v2193_v31, 1  ;;  %v2201_v40 = vrot.slane %v2200_v1, 1  ;;  %v2208_v25 = vrot.slane %v2207_v63, 1 }
 0xb9a   :  { %v2276_v9 = vrot.slane %v2275_v4, 2  ;;  %v2283_v5 = vrot.slane %v2282_v53, 2  ;;  %v2296_v42 = vrot.slane %v2295_v35, 2  ;;  %v2303_v44 = vrot.slane %v2302_v14, 2 }
 0xb9b   :  { %v2188_v18 = vadd.f32 %v2187_v39, %v2186_v58  ;;  %v2195_v0 = vadd.f32 %v2194_v55, %v2193_v31  ;;  %v2202_v48 = vadd.f32 %v2201_v40, %v2200_v1  ;;  %v2209_v56 = vadd.f32 %v2208_v25, %v2207_v63 }
 0xb9c   :  { %v2277_v16 = vadd.f32 %v2276_v9, %v2275_v4  ;;  %v2284_v36 = vadd.f32 %v2283_v5, %v2282_v53  ;;  %v2297_v50 = vadd.f32 %v2296_v42, %v2295_v35  ;;  %v2304_v2 = vadd.f32 %v2303_v44, %v2302_v14 }
 0xb9d   :  { %v2212_v49 = vadd.f32 %v5717_v29, %v2188_v18  ;;  %v2213_v47 = vadd.f32 %v5717_v29, %v2195_v0  ;;  %v2228_v23 = vadd.f32 %v5719_v62, %v2202_v48  ;;  %v2229_v27 = vadd.f32 %v5719_v62, %v2209_v56 }
 0xb9e   :  { %v2278_v30 = vrot.slane %v2277_v16, 1  ;;  %v2285_v57 = vrot.slane %v2284_v36, 1  ;;  %v2298_v46 = vrot.slane %v2297_v50, 1  ;;  %v2305_v6 = vrot.slane %v2304_v2, 1 }
 0xb9f   :  { %v2378_v61 = vmul.f32 -1.442695, %v2212_v49  ;;  %v2379_v37 = vmul.f32 -1.442695, %v2213_v47  ;;  %v2381_v11 = vmul.f32 -1.442695, %v2228_v23  ;;  %v6557_v4 = vlaneseq }
 0xba0   :  { %v2382_v10 = vmul.f32 -1.442695, %v2229_v27  ;;  %v2279_v20 = vadd.f32 %v2278_v30, %v2277_v16  ;;  %v2286_v22 = vadd.f32 %v2285_v57, %v2284_v36  ;;  %v2299_v59 = vadd.f32 %v2298_v46, %v2297_v50 }
 0xba1   :  { %2687 = vpow2.f32 %v2378_v61  ;;  %v2306_v13 = vadd.f32 %v2305_v6, %v2304_v2  ;;  %v2963_v8 = vmov 1966171168   ;;  %v2251_v53 = vshrl.u32 %v6557_v4, 7 }
 0xba2   :  { %2689 = vpow2.f32 %v2379_v37  ;;  %v2309_v38 = vadd.f32 %v2279_v20, %v5717_v29  ;;  %v2310_v32 = vadd.f32 %v2286_v22, %v5717_v29  ;;  %v2325_v54 = vadd.f32 %v2299_v59, %v5719_v62 }
 0xba3   :  { %2691 = vpow2.f32 %v2381_v11  ;;  %v2326_v45 = vadd.f32 %v2306_v13, %v5719_v62  ;;  %v2248_v58 = vunpack.c.l.s4 %v2963_v8  ;;  %vm2264_vm8 = vcmp.lt.s32.totalorder %v6557_v4, 256 }
 0xba4   :  { %2693 = vpow2.f32 %v2382_v10  ;;  %v2383_v19 = vmul.f32 -1.442695, %v2309_v38  ;;  %v2384_v21 = vmul.f32 -1.442695, %v2310_v32  ;;  %v2386_v51 = vmul.f32 -1.442695, %v2325_v54 }
 0xba5   :  { %v2387_v52 = vmul.f32 -1.442695, %v2326_v45  ;;  %v2249_v63 = vunpack.c.0.s8 %v2248_v58 }
 0xba6   :  { %2695 = vpow2.f32 %v2383_v19 }
 0xba7   :  { %2697 = vpow2.f32 %v2384_v21  ;;  %v2252_v25 = vsub.s32 %v2249_v63, %v2251_v53 }
 0xba8   :  { %2699 = vpow2.f32 %v2386_v51 }
 0xba9   :  { %2701 = vpow2.f32 %v2387_v52 }
 0xbab   :  { %v2688_v17 = vpop.eup %2687 }
 0xbac   :  { %v2690_v33 = vpop.eup %2689  ;;  %v2220_v12 = vadd.f32 1.0, %v2688_v17 }
 0xbad   :  { %v2692_v34 = vpop.eup %2691  ;;  %v2221_v3 = vadd.f32 1.0, %v2690_v33 }
 0xbae   :  { %v2694_v29 = vpop.eup %2693  ;;  %v2236_v41 = vadd.f32 1.0, %v2692_v34  ;;  %2703 = vrcp.f32 %v2220_v12 }
 0xbaf   :  { %v2237_v7 = vadd.f32 1.0, %v2694_v29  ;;  %2705 = vrcp.f32 %v2221_v3 }
 0xbb0   :  { %v2696_v62 = vpop.eup %2695  ;;  %2707 = vrcp.f32 %v2236_v41 }
 0xbb1   :  { %v2698_v24 = vpop.eup %2697  ;;  %2709 = vrcp.f32 %v2237_v7  ;;  %v2317_v28 = vadd.f32 1.0, %v2696_v62 }
 0xbb2   :  { %v2700_v43 = vpop.eup %2699  ;;  %v2318_v60 = vadd.f32 1.0, %v2698_v24 }
 0xbb3   :  { %v2702_v26 = vpop.eup %2701  ;;  %2711 = vrcp.f32 %v2317_v28  ;;  %v2333_v15 = vadd.f32 1.0, %v2700_v43 }
 0xbb4   :  { %2713 = vrcp.f32 %v2318_v60  ;;  %v2334_v31 = vadd.f32 1.0, %v2702_v26 }
 0xbb5   :  { %2715 = vrcp.f32 %v2333_v15 }
 0xbb6   :  { %2717 = vrcp.f32 %v2334_v31 }
 0xbb8   :  { %v2704_v1 = vpop.eup %2703 }
 0xbb9   :  { %v2706_v35 = vpop.eup %2705 }
 0xbba   :  { %v2708_v14 = vpop.eup %2707 }
 0xbbb   :  { %v2710_v39 = vpop.eup %2709  ;;  %v2242_v55 = vmul.f32 %v2708_v14, %v2704_v1 }
 0xbbc   :  { %v2243_v40 = vmul.f32 %v2710_v39, %v2706_v35 }
 0xbbd   :  { %v2712_v9 = vpop.eup %2711 }
 0xbbe   :  { %v2714_v5 = vpop.eup %2713  ;;  %v2246_v42 = vcombine.low %v2242_v55, %v2243_v40 }
 0xbbf   :  { %v2716_v44 = vpop.eup %2715 }
 0xbc0   :  { %v2718_v18 = vpop.eup %2717  ;;  %v2253_v0 = vrot.slane %v2246_v42, %v2252_v25  ;;  %v2339_v48 = vmul.f32 %v2716_v44, %v2712_v9 }
 0xbc1   :  { %v2340_v56 = vmul.f32 %v2718_v18, %v2714_v5 }
 0xbc2   :  { %v2260_v16 = vrot.slane %v2253_v0, %v2252_v25 }
 0xbc3   :  { %v2343_v36 = vcombine.low %v2339_v48, %v2340_v56 }
 0xbc4   :  { %2266 = vst.msk [vmem:[#allocation10] ss:$2 sm:$0x3] %vm2264_vm8, %v2260_v16 }
 0xbc5   :  { %v2350_v50 = vrot.slane %v2343_v36, %v2252_v25 }
 0xbc7   :  { %v2357_v2 = vrot.slane %v2350_v50, %v2252_v25 }
 0xbc9   :  { %2360 = vst.msk [vmem:[#allocation10 + $0x1] ss:$2 sm:$0x3] %vm2264_vm8, %v2357_v2 }
 0xbca   :  { %2797 = shalt.err (!%p2794_p11)
}
 0xbcb   :  { %s2798_s6 = scalar_lea.hbm %s5754_s3, 64 }
 0xbcc   :  { %p2799_p12 = scmp.ne.s32.totalorder %s5754_s3, %s2798_s6  ;;  %p2802_p13 = scmp.lt.u32.totalorder %s2798_s6, %s5754_s3 }
 0xbce   :  { %p2804_p0 = pnand %p2802_p13, %p2799_p12 }
 0xbd0   :  { %2807 = shalt.err (!%p2804_p0)
}
 0xbd1   :  { %2370 = dma.vmem_to_hbm [thread:$0]  %s2368_s29, 64, %s5754_s3, [#allocation5]  }
 0xbd2   :  { %2814 = dma.done.wait [#allocation5], 64  }
 0xbd3   :  { %2815 = vsyncadd [#allocation5], 4294967232 }
 0xbd4   :  { %2374 = vsyncpa [#allocation4], 1 }
 0xbd5   :  { %2375 = vsyncpa [#allocation8], 1 }
 0xbd6   :  { %2376 = vsyncpa [#allocation5], 1 }
 0xbd7   :  { %2377 = vsyncpa [#allocation6], 1 }

</bundles_post_ra>
